<compile_context>
chip_gen: v7x
topology: tpu7x:2x2x1
jax: 0.10.0
libtpu: 0.0.40
codegen_flags: <defaults>
</compile_context>

<pallas_src>
import jax
import jax.numpy as jnp
from jax import lax
from jax.experimental import pallas as pl
from jax.experimental.pallas import tpu as pltpu

_BN_EPS = 1e-5

# (dilation, stride, padding) of dc1 / dc2 / dc3, kernel_size = 3 everywhere.
_LAYER_HPARAMS = (
    dict(dilation=5, stride=1, padding=5),
    dict(dilation=2, stride=2, padding=1),
    dict(dilation=1, stride=2, padding=1),
)


def _pick_batch_block(N):
    """Images per grid step: fold several images into the matmul M dimension but keep
    >= 2 grid steps when N >= 2 so both v7x TensorCores get work (v5e/v6e: 1 TC, the
    'parallel' marking is then a no-op)."""
    best = 1
    for nb in range(1, min(8, max(1, N // 2)) + 1):
        if N % nb == 0:
            best = nb
    return best


def _make_kernel(Nb, C0, C1, C2, C3):
    K = 3
    H = W = 16                 # dc1 input (and output) spatial size
    P1, D1 = 5, 5              # dc1 padding / dilation
    HP1, WP1 = H + 2 * P1, W + 2 * P1     # 26 x 26 zero-padded dc1 input
    WCOL1 = W                  # dc1 computed output columns (exact, no garbage)
    H2 = W2 = 7                # dc2 output spatial size
    NODD = 8                   # odd rows/cols of dc1's output feeding dc2
    HS2, WS2 = H2 + 2, 18      # decimated + padded dc2 input slab (9 x 18)
    WCOL2 = 16                 # dc2 computed output columns (7 valid + 9 masked)
    H3S1 = 7                   # dc3 output rows when run internally at stride 1
    HS3, WS3 = H3S1 + 2, 18    # zero-padded dc3 input slab (9 x 18)
    WCOL3 = 16                 # dc3 computed output columns (7 valid, rest unused)
    HOUT = WOUT = 4            # final output spatial size

    def kernel(x_ref, w1_ref, b1_ref, w2_ref, b2_ref, w3_ref, b3_ref, o_ref,
               pad1, col1, oddr, dec2, col2, pad3, col3, rsel):
        f32 = jnp.float32
        bf16 = jnp.bfloat16

        # ---------------- dc1: conv(k=3, d=5, s=1, p=5) + BN + ReLU ----------------
        # Border-only zeroing: the interior is fully overwritten every step.
        pad1[:, 0:P1, :, :] = jnp.zeros((Nb, P1, WP1, C0), f32)
        pad1[:, P1 + H:HP1, :, :] = jnp.zeros((Nb, HP1 - P1 - H, WP1, C0), f32)
        pad1[:, P1:P1 + H, 0:P1, :] = jnp.zeros((Nb, H, P1, C0), f32)
        pad1[:, P1:P1 + H, P1 + W:WP1, :] = jnp.zeros((Nb, H, WP1 - P1 - W, C0), f32)
        pad1[:, P1:P1 + H, P1:P1 + W, :] = x_ref[...]

        # bf16 im2col: col1[n, oh, ow, (ky*K+kx)*C0 + ci] = pad1[n, oh+5ky, ow+5kx, ci]
        for ky in range(K):
            for kx in range(K):
                t = ky * K + kx
                col1[:, :, :, t * C0:(t + 1) * C0] = (
                    pad1[:, D1 * ky:D1 * ky + H, D1 * kx:D1 * kx + WCOL1, :]
                    .astype(bf16))

        a1 = col1[...].reshape(Nb * H * WCOL1, K * K * C0)
        y1 = jnp.dot(a1, w1_ref[...], preferred_element_type=f32)
        y1 = jnp.maximum(y1 + b1_ref[...], 0.0).reshape(Nb, H, WCOL1, C1)

        # ------------- dc2: conv(k=3, d=2, s=2, p=1) + BN + ReLU -------------------
        # All of dc2's taps land on odd rows/cols of y1 (or on zero padding), so one
        # 2x decimation turns it into a plain d=1, s=1 conv on a 9x9 slab.
        for i in range(NODD):                         # y1 rows 1, 3, ..., 15
            oddr[:, i, :, :] = y1[:, 2 * i + 1, :, :]
        dec2[:, 0:1, :, :] = jnp.zeros((Nb, 1, WS2, C1), f32)            # top pad row
        dec2[:, 1:HS2, 0:1, :] = jnp.zeros((Nb, HS2 - 1, 1, C1), f32)    # left pad col
        dec2[:, 1:HS2, 1 + NODD:WS2, :] = jnp.zeros(
            (Nb, HS2 - 1, WS2 - 1 - NODD, C1), f32)                      # right zeros
        for j in range(NODD):                         # y1 cols 1, 3, ..., 15
            dec2[:, 1:HS2, 1 + j, :] = oddr[:, :, 2 * j + 1, :]

        for ky in range(K):
            for kx in range(K):
                t = ky * K + kx
                col2[:, :, :, t * C1:(t + 1) * C1] = (
                    dec2[:, ky:ky + H2, kx:kx + WCOL2, :].astype(bf16))

        a2 = col2[...].reshape(Nb * H2 * WCOL2, K * K * C1)
        y2 = jnp.dot(a2, w2_ref[...], preferred_element_type=f32)
        y2 = jnp.maximum(y2 + b2_ref[...], 0.0).reshape(Nb, H2, WCOL2, C2)
        # Zero the WCOL2 - W2 garbage columns (cheap VPU mask, no sub-tile slice);
        # they land in the zero-padding region of dc3's slab below.
        col_ids = lax.broadcasted_iota(jnp.int32, (Nb, H2, WCOL2, C2), 2)
        y2 = jnp.where(col_ids < W2, y2, 0.0)

        # ------------- dc3: conv(k=3, d=1, s=2, p=1) + BN + ReLU -------------------
        # Run at stride 1 (extra rows/cols are MXU-cheap), then decimate the output.
        pad3[:, 0:1, :, :] = jnp.zeros((Nb, 1, WS3, C2), f32)
        pad3[:, HS3 - 1:HS3, :, :] = jnp.zeros((Nb, 1, WS3, C2), f32)
        pad3[:, 1:1 + H2, 0:1, :] = jnp.zeros((Nb, H2, 1, C2), f32)
        pad3[:, 1:1 + H2, 1 + WCOL2:WS3, :] = jnp.zeros(
            (Nb, H2, WS3 - 1 - WCOL2, C2), f32)
        pad3[:, 1:1 + H2, 1:1 + WCOL2, :] = y2

        for ky in range(K):
            for kx in range(K):
                t = ky * K + kx
                col3[:, :, :, t * C2:(t + 1) * C2] = (
                    pad3[:, ky:ky + H3S1, kx:kx + WCOL3, :].astype(bf16))

        a3 = col3[...].reshape(Nb * H3S1 * WCOL3, K * K * C2)
        y3 = jnp.dot(a3, w3_ref[...], preferred_element_type=f32)
        y3 = jnp.maximum(y3 + b3_ref[...], 0.0).reshape(Nb, H3S1, WCOL3, C3)

        # stride-2 decimation of the stride-1 result -> (Nb, 4, 4, C3)
        for i in range(HOUT):
            rsel[:, i, :, :] = y3[:, 2 * i, :, :]
        for j in range(WOUT):
            o_ref[:, :, j, :] = rsel[:, :, 2 * j, :]

    return kernel


def dilated_net_forward(x_nchw, params):
    """Full DilatedNet forward (eval mode). Input/output follow PyTorch NCHW."""
    x = jnp.transpose(x_nchw, (0, 2, 3, 1)).astype(jnp.float32)      # NCHW -> NHWC
    N, H, W, C0 = x.shape
    # TODO(synk): generalize spatial size (halo-tiled row blocks) -- the fused kernel
    # is specialized to the 16x16 resolution used here.
    assert (H, W) == (16, 16), "kernel specialized to 16x16 inputs"

    # Fold BN(eval) into the conv weights/bias (one-time, XLA side):
    #   y = ((conv(x, w) + b) - rm) * gamma/sqrt(rv+eps) + beta
    #     = conv(x, w * inv) + ((b - rm) * inv + beta)
    folded = []
    for (w, b, gamma, beta, rm, rv) in params:
        K, _, cin, cout = w.shape
        inv = gamma / jnp.sqrt(rv + _BN_EPS)
        w_f = (w * inv[None, None, None, :]).reshape(K * K * cin, cout).astype(jnp.bfloat16)
        b_f = ((b - rm) * inv + beta).reshape(1, cout).astype(jnp.float32)
        folded.append((w_f, b_f))

    C1 = params[0][0].shape[3]
    C2 = params[1][0].shape[3]
    C3 = params[2][0].shape[3]
    assert params[0][0].shape[2] == C0 and params[1][0].shape[2] == C1
    assert params[2][0].shape[2] == C2

    Nb = _pick_batch_block(N)

    inputs = [x]
    in_specs = [pl.BlockSpec((Nb, H, W, C0), lambda nb: (nb, 0, 0, 0))]
    for w_f, b_f in folded:
        inputs += [w_f, b_f]
        in_specs += [pl.BlockSpec(w_f.shape, lambda nb: (0, 0)),
                     pl.BlockSpec(b_f.shape, lambda nb: (0, 0))]

    out_shape = jax.ShapeDtypeStruct((N, 4, 4, C3), jnp.float32)
    out_spec = pl.BlockSpec((Nb, 4, 4, C3), lambda nb: (nb, 0, 0, 0))

    scratch = [
        pltpu.VMEM((Nb, 26, 26, C0), jnp.float32),        # pad1: zero-padded dc1 input
        pltpu.VMEM((Nb, 16, 16, 9 * C0), jnp.bfloat16),   # col1: dc1 im2col (bf16)
        pltpu.VMEM((Nb, 8, 16, C1), jnp.float32),         # oddr: odd rows of dc1 output
        pltpu.VMEM((Nb, 9, 18, C1), jnp.float32),         # dec2: decimated+padded dc2 in
        pltpu.VMEM((Nb, 7, 16, 9 * C1), jnp.bfloat16),    # col2: dc2 im2col (bf16)
        pltpu.VMEM((Nb, 9, 18, C2), jnp.float32),         # pad3: zero-padded dc3 input
        pltpu.VMEM((Nb, 7, 16, 9 * C2), jnp.bfloat16),    # col3: dc3 im2col (bf16)
        pltpu.VMEM((Nb, 4, 16, C3), jnp.float32),         # rsel: row-decimated dc3 out
    ]

    y = pl.pallas_call(
        _make_kernel(Nb, C0, C1, C2, C3),
        out_shape=out_shape,
        grid_spec=pltpu.PrefetchScalarGridSpec(
            num_scalar_prefetch=0,
            grid=(N // Nb,),
            in_specs=in_specs,
            out_specs=out_spec,
            scratch_shapes=scratch),
        compiler_params=pltpu.CompilerParams(dimension_semantics=("parallel",)),
    )(*inputs)
    return jnp.transpose(y, (0, 3, 1, 2))                  # NHWC -> NCHW


# ----------------------------- pure-JAX reference -----------------------------
def dilated_net_reference(x_nchw, params):
    x = jnp.transpose(x_nchw, (0, 2, 3, 1))
    for (w, b, gamma, beta, rm, rv), hp in zip(params, _LAYER_HPARAMS):
        d, s, p = hp["dilation"], hp["stride"], hp["padding"]
        y = jax.lax.conv_general_dilated(
            x, w,
            window_strides=(s, s),
            padding=((p, p), (p, p)),
            rhs_dilation=(d, d),
            dimension_numbers=("NHWC", "HWIO", "NHWC")) + b
        inv = gamma / jnp.sqrt(rv + _BN_EPS)
        x = jnp.maximum((y - rm) * inv + beta, 0.0)
    return jnp.transpose(x, (0, 3, 1, 2))


# ------------------------------------ main ------------------------------------
if __name__ == "__main__":
    key = jax.random.PRNGKey(0)
    in_channels, out_channels = 4, 8
    inner = in_channels * 4
    N, H, W = 2, 16, 16

    keys = jax.random.split(key, 4)
    x_nchw = jax.random.normal(keys[0], (N, in_channels, H, W), jnp.float32)

    def init_block(k, cin, cout):
        ks = jax.random.split(k, 6)
        w = 0.05 * jax.random.normal(ks[0], (3, 3, cin, cout), jnp.float32)   # HWIO
        b = 0.05 * jax.random.normal(ks[1], (cout,), jnp.float32)             # conv bias
        gamma = 1.0 + 0.1 * jax.random.normal(ks[2], (cout,), jnp.float32)    # BN weight
        beta = 0.1 * jax.random.normal(ks[3], (cout,), jnp.float32)           # BN bias
        rm = 0.1 * jax.random.normal(ks[4], (cout,), jnp.float32)             # running_mean
        rv = 1.0 + 0.1 * jax.random.uniform(ks[5], (cout,), jnp.float32)      # running_var
        return (w, b, gamma, beta, rm, rv)

    params = [
        init_block(keys[1], in_channels, inner),   # dc1
        init_block(keys[2], inner, inner),         # dc2
        init_block(keys[3], inner, out_channels),  # dc3
    ]

    y = jax.block_until_ready(jax.jit(dilated_net_forward)(x_nchw, params))

    # shape check: dc1 keeps 16x16, dc2 -> 7x7, dc3 -> 4x4
    assert y.shape == (N, out_channels, 4, 4), y.shape

    y_ref = jax.block_until_ready(dilated_net_reference(x_nchw, params))
    max_err = float(jnp.max(jnp.abs(y - y_ref)))
    assert jnp.allclose(y, y_ref, atol=2e-2, rtol=2e-2), max_err

    print("KERNEL_OK")
</pallas_src>

<mosaic_0001>
module attributes {stable_mosaic.version = 11 : i64} {
  func.func @kernel(%arg0: i32, %arg1: memref<1x16x16x4xf32, #tpu.memory_space<vmem>>, %arg2: memref<36x16xbf16, #tpu.memory_space<vmem>>, %arg3: memref<1x16xf32, #tpu.memory_space<vmem>>, %arg4: memref<144x16xbf16, #tpu.memory_space<vmem>>, %arg5: memref<1x16xf32, #tpu.memory_space<vmem>>, %arg6: memref<144x8xbf16, #tpu.memory_space<vmem>>, %arg7: memref<1x8xf32, #tpu.memory_space<vmem>>, %arg8: memref<1x4x4x8xf32, #tpu.memory_space<vmem>>, %arg9: memref<1x26x26x4xf32, #tpu.memory_space<vmem>>, %arg10: memref<1x16x16x36xbf16, #tpu.memory_space<vmem>>, %arg11: memref<1x8x16x16xf32, #tpu.memory_space<vmem>>, %arg12: memref<1x9x18x16xf32, #tpu.memory_space<vmem>>, %arg13: memref<1x7x16x144xbf16, #tpu.memory_space<vmem>>, %arg14: memref<1x9x18x16xf32, #tpu.memory_space<vmem>>, %arg15: memref<1x7x16x144xbf16, #tpu.memory_space<vmem>>, %arg16: memref<1x4x16x8xf32, #tpu.memory_space<vmem>>) attributes {dimension_semantics = [#tpu.dimension_semantics<parallel>], iteration_bounds = array<i64: 2>, scalar_prefetch = 0 : i64, scratch_operands = 8 : i64, tpu.core_type = #tpu.core_type<tc>, window_params = [{transform_indices = @transform_0, window_bounds = array<i64: 1, 16, 16, 4>}, {pipeline_mode = #tpu.pipeline_mode<synchronous>, transform_indices = @transform_1, window_bounds = array<i64: 36, 16>}, {pipeline_mode = #tpu.pipeline_mode<synchronous>, transform_indices = @transform_2, window_bounds = array<i64: 1, 16>}, {pipeline_mode = #tpu.pipeline_mode<synchronous>, transform_indices = @transform_3, window_bounds = array<i64: 144, 16>}, {pipeline_mode = #tpu.pipeline_mode<synchronous>, transform_indices = @transform_4, window_bounds = array<i64: 1, 16>}, {pipeline_mode = #tpu.pipeline_mode<synchronous>, transform_indices = @transform_5, window_bounds = array<i64: 144, 8>}, {pipeline_mode = #tpu.pipeline_mode<synchronous>, transform_indices = @transform_6, window_bounds = array<i64: 1, 8>}, {transform_indices = @transform_7, window_bounds = array<i64: 1, 4, 4, 8>}]} {
    %cst = arith.constant 0.000000e+00 : f32
    %0 = vector.broadcast %cst : f32 to vector<1x5x26x4xf32>
    %c0 = arith.constant 0 : index
    %c0_0 = arith.constant 0 : index
    %c0_1 = arith.constant 0 : index
    %c0_2 = arith.constant 0 : index
    %1 = vector.load %arg9[%c0, %c0_0, %c0_1, %c0_2] : memref<1x26x26x4xf32, #tpu.memory_space<vmem>>, vector<1x5x26x4xf32>
    tpu.vector_store %arg9[%c0, %c0_0, %c0_1, %c0_2], %0 {strides = array<i32>} : memref<1x26x26x4xf32, #tpu.memory_space<vmem>>, vector<1x5x26x4xf32>,
    %cst_3 = arith.constant 0.000000e+00 : f32
    %2 = vector.broadcast %cst_3 : f32 to vector<1x5x26x4xf32>
    %c0_4 = arith.constant 0 : index
    %c21 = arith.constant 21 : index
    %c0_5 = arith.constant 0 : index
    %c0_6 = arith.constant 0 : index
    %3 = vector.load %arg9[%c0_4, %c21, %c0_5, %c0_6] : memref<1x26x26x4xf32, #tpu.memory_space<vmem>>, vector<1x5x26x4xf32>
    tpu.vector_store %arg9[%c0_4, %c21, %c0_5, %c0_6], %2 {strides = array<i32>} : memref<1x26x26x4xf32, #tpu.memory_space<vmem>>, vector<1x5x26x4xf32>,
    %cst_7 = arith.constant 0.000000e+00 : f32
    %4 = vector.broadcast %cst_7 : f32 to vector<1x16x5x4xf32>
    %c0_8 = arith.constant 0 : index
    %c5 = arith.constant 5 : index
    %c0_9 = arith.constant 0 : index
    %c0_10 = arith.constant 0 : index
    %5 = vector.load %arg9[%c0_8, %c5, %c0_9, %c0_10] : memref<1x26x26x4xf32, #tpu.memory_space<vmem>>, vector<1x16x5x4xf32>
    tpu.vector_store %arg9[%c0_8, %c5, %c0_9, %c0_10], %4 {strides = array<i32>} : memref<1x26x26x4xf32, #tpu.memory_space<vmem>>, vector<1x16x5x4xf32>,
    %cst_11 = arith.constant 0.000000e+00 : f32
    %6 = vector.broadcast %cst_11 : f32 to vector<1x16x5x4xf32>
    %c0_12 = arith.constant 0 : index
    %c5_13 = arith.constant 5 : index
    %c21_14 = arith.constant 21 : index
    %c0_15 = arith.constant 0 : index
    %7 = vector.load %arg9[%c0_12, %c5_13, %c21_14, %c0_15] : memref<1x26x26x4xf32, #tpu.memory_space<vmem>>, vector<1x16x5x4xf32>
    tpu.vector_store %arg9[%c0_12, %c5_13, %c21_14, %c0_15], %6 {strides = array<i32>} : memref<1x26x26x4xf32, #tpu.memory_space<vmem>>, vector<1x16x5x4xf32>,
    %c0_16 = arith.constant 0 : index
    %c0_17 = arith.constant 0 : index
    %c0_18 = arith.constant 0 : index
    %c0_19 = arith.constant 0 : index
    %8 = vector.load %arg1[%c0_16, %c0_17, %c0_18, %c0_19] : memref<1x16x16x4xf32, #tpu.memory_space<vmem>>, vector<1x16x16x4xf32>
    %c0_20 = arith.constant 0 : index
    %c5_21 = arith.constant 5 : index
    %c5_22 = arith.constant 5 : index
    %c0_23 = arith.constant 0 : index
    %9 = vector.load %arg9[%c0_20, %c5_21, %c5_22, %c0_23] : memref<1x26x26x4xf32, #tpu.memory_space<vmem>>, vector<1x16x16x4xf32>
    tpu.vector_store %arg9[%c0_20, %c5_21, %c5_22, %c0_23], %8 {strides = array<i32>} : memref<1x26x26x4xf32, #tpu.memory_space<vmem>>, vector<1x16x16x4xf32>,
    %c0_24 = arith.constant 0 : index
    %c0_25 = arith.constant 0 : index
    %c0_26 = arith.constant 0 : index
    %c0_27 = arith.constant 0 : index
    %10 = vector.load %arg9[%c0_24, %c0_25, %c0_26, %c0_27] : memref<1x26x26x4xf32, #tpu.memory_space<vmem>>, vector<1x16x16x4xf32>
    %11 = arith.truncf %10 : vector<1x16x16x4xf32> to vector<1x16x16x4xbf16>
    %c0_28 = arith.constant 0 : index
    %c0_29 = arith.constant 0 : index
    %c0_30 = arith.constant 0 : index
    %c0_31 = arith.constant 0 : index
    %12 = vector.load %arg10[%c0_28, %c0_29, %c0_30, %c0_31] : memref<1x16x16x36xbf16, #tpu.memory_space<vmem>>, vector<1x16x16x4xbf16>
    tpu.vector_store %arg10[%c0_28, %c0_29, %c0_30, %c0_31], %11 {strides = array<i32>} : memref<1x16x16x36xbf16, #tpu.memory_space<vmem>>, vector<1x16x16x4xbf16>,
    %c0_32 = arith.constant 0 : index
    %c0_33 = arith.constant 0 : index
    %c5_34 = arith.constant 5 : index
    %c0_35 = arith.constant 0 : index
    %13 = vector.load %arg9[%c0_32, %c0_33, %c5_34, %c0_35] : memref<1x26x26x4xf32, #tpu.memory_space<vmem>>, vector<1x16x16x4xf32>
    %14 = arith.truncf %13 : vector<1x16x16x4xf32> to vector<1x16x16x4xbf16>
    %c0_36 = arith.constant 0 : index
    %c0_37 = arith.constant 0 : index
    %c0_38 = arith.constant 0 : index
    %c4 = arith.constant 4 : index
    %15 = vector.load %arg10[%c0_36, %c0_37, %c0_38, %c4] : memref<1x16x16x36xbf16, #tpu.memory_space<vmem>>, vector<1x16x16x4xbf16>
    tpu.vector_store %arg10[%c0_36, %c0_37, %c0_38, %c4], %14 {strides = array<i32>} : memref<1x16x16x36xbf16, #tpu.memory_space<vmem>>, vector<1x16x16x4xbf16>,
    %c0_39 = arith.constant 0 : index
    %c0_40 = arith.constant 0 : index
    %c10 = arith.constant 10 : index
    %c0_41 = arith.constant 0 : index
    %16 = vector.load %arg9[%c0_39, %c0_40, %c10, %c0_41] : memref<1x26x26x4xf32, #tpu.memory_space<vmem>>, vector<1x16x16x4xf32>
    %17 = arith.truncf %16 : vector<1x16x16x4xf32> to vector<1x16x16x4xbf16>
    %c0_42 = arith.constant 0 : index
    %c0_43 = arith.constant 0 : index
    %c0_44 = arith.constant 0 : index
    %c8 = arith.constant 8 : index
    %18 = vector.load %arg10[%c0_42, %c0_43, %c0_44, %c8] : memref<1x16x16x36xbf16, #tpu.memory_space<vmem>>, vector<1x16x16x4xbf16>
    tpu.vector_store %arg10[%c0_42, %c0_43, %c0_44, %c8], %17 {strides = array<i32>} : memref<1x16x16x36xbf16, #tpu.memory_space<vmem>>, vector<1x16x16x4xbf16>,
    %c0_45 = arith.constant 0 : index
    %c5_46 = arith.constant 5 : index
    %c0_47 = arith.constant 0 : index
    %c0_48 = arith.constant 0 : index
    %19 = vector.load %arg9[%c0_45, %c5_46, %c0_47, %c0_48] : memref<1x26x26x4xf32, #tpu.memory_space<vmem>>, vector<1x16x16x4xf32>
    %20 = arith.truncf %19 : vector<1x16x16x4xf32> to vector<1x16x16x4xbf16>
    %c0_49 = arith.constant 0 : index
    %c0_50 = arith.constant 0 : index
    %c0_51 = arith.constant 0 : index
    %c12 = arith.constant 12 : index
    %21 = vector.load %arg10[%c0_49, %c0_50, %c0_51, %c12] : memref<1x16x16x36xbf16, #tpu.memory_space<vmem>>, vector<1x16x16x4xbf16>
    tpu.vector_store %arg10[%c0_49, %c0_50, %c0_51, %c12], %20 {strides = array<i32>} : memref<1x16x16x36xbf16, #tpu.memory_space<vmem>>, vector<1x16x16x4xbf16>,
    %c0_52 = arith.constant 0 : index
    %c5_53 = arith.constant 5 : index
    %c5_54 = arith.constant 5 : index
    %c0_55 = arith.constant 0 : index
    %22 = vector.load %arg9[%c0_52, %c5_53, %c5_54, %c0_55] : memref<1x26x26x4xf32, #tpu.memory_space<vmem>>, vector<1x16x16x4xf32>
    %23 = arith.truncf %22 : vector<1x16x16x4xf32> to vector<1x16x16x4xbf16>
    %c0_56 = arith.constant 0 : index
    %c0_57 = arith.constant 0 : index
    %c0_58 = arith.constant 0 : index
    %c16 = arith.constant 16 : index
    %24 = vector.load %arg10[%c0_56, %c0_57, %c0_58, %c16] : memref<1x16x16x36xbf16, #tpu.memory_space<vmem>>, vector<1x16x16x4xbf16>
    tpu.vector_store %arg10[%c0_56, %c0_57, %c0_58, %c16], %23 {strides = array<i32>} : memref<1x16x16x36xbf16, #tpu.memory_space<vmem>>, vector<1x16x16x4xbf16>,
    %c0_59 = arith.constant 0 : index
    %c5_60 = arith.constant 5 : index
    %c10_61 = arith.constant 10 : index
    %c0_62 = arith.constant 0 : index
    %25 = vector.load %arg9[%c0_59, %c5_60, %c10_61, %c0_62] : memref<1x26x26x4xf32, #tpu.memory_space<vmem>>, vector<1x16x16x4xf32>
    %26 = arith.truncf %25 : vector<1x16x16x4xf32> to vector<1x16x16x4xbf16>
    %c0_63 = arith.constant 0 : index
    %c0_64 = arith.constant 0 : index
    %c0_65 = arith.constant 0 : index
    %c20 = arith.constant 20 : index
    %27 = vector.load %arg10[%c0_63, %c0_64, %c0_65, %c20] : memref<1x16x16x36xbf16, #tpu.memory_space<vmem>>, vector<1x16x16x4xbf16>
    tpu.vector_store %arg10[%c0_63, %c0_64, %c0_65, %c20], %26 {strides = array<i32>} : memref<1x16x16x36xbf16, #tpu.memory_space<vmem>>, vector<1x16x16x4xbf16>,
    %c0_66 = arith.constant 0 : index
    %c10_67 = arith.constant 10 : index
    %c0_68 = arith.constant 0 : index
    %c0_69 = arith.constant 0 : index
    %28 = vector.load %arg9[%c0_66, %c10_67, %c0_68, %c0_69] : memref<1x26x26x4xf32, #tpu.memory_space<vmem>>, vector<1x16x16x4xf32>
    %29 = arith.truncf %28 : vector<1x16x16x4xf32> to vector<1x16x16x4xbf16>
    %c0_70 = arith.constant 0 : index
    %c0_71 = arith.constant 0 : index
    %c0_72 = arith.constant 0 : index
    %c24 = arith.constant 24 : index
    %30 = vector.load %arg10[%c0_70, %c0_71, %c0_72, %c24] : memref<1x16x16x36xbf16, #tpu.memory_space<vmem>>, vector<1x16x16x4xbf16>
    tpu.vector_store %arg10[%c0_70, %c0_71, %c0_72, %c24], %29 {strides = array<i32>} : memref<1x16x16x36xbf16, #tpu.memory_space<vmem>>, vector<1x16x16x4xbf16>,
    %c0_73 = arith.constant 0 : index
    %c10_74 = arith.constant 10 : index
    %c5_75 = arith.constant 5 : index
    %c0_76 = arith.constant 0 : index
    %31 = vector.load %arg9[%c0_73, %c10_74, %c5_75, %c0_76] : memref<1x26x26x4xf32, #tpu.memory_space<vmem>>, vector<1x16x16x4xf32>
    %32 = arith.truncf %31 : vector<1x16x16x4xf32> to vector<1x16x16x4xbf16>
    %c0_77 = arith.constant 0 : index
    %c0_78 = arith.constant 0 : index
    %c0_79 = arith.constant 0 : index
    %c28 = arith.constant 28 : index
    %33 = vector.load %arg10[%c0_77, %c0_78, %c0_79, %c28] : memref<1x16x16x36xbf16, #tpu.memory_space<vmem>>, vector<1x16x16x4xbf16>
    tpu.vector_store %arg10[%c0_77, %c0_78, %c0_79, %c28], %32 {strides = array<i32>} : memref<1x16x16x36xbf16, #tpu.memory_space<vmem>>, vector<1x16x16x4xbf16>,
    %c0_80 = arith.constant 0 : index
    %c10_81 = arith.constant 10 : index
    %c10_82 = arith.constant 10 : index
    %c0_83 = arith.constant 0 : index
    %34 = vector.load %arg9[%c0_80, %c10_81, %c10_82, %c0_83] : memref<1x26x26x4xf32, #tpu.memory_space<vmem>>, vector<1x16x16x4xf32>
    %35 = arith.truncf %34 : vector<1x16x16x4xf32> to vector<1x16x16x4xbf16>
    %c0_84 = arith.constant 0 : index
    %c0_85 = arith.constant 0 : index
    %c0_86 = arith.constant 0 : index
    %c32 = arith.constant 32 : index
    %36 = vector.load %arg10[%c0_84, %c0_85, %c0_86, %c32] : memref<1x16x16x36xbf16, #tpu.memory_space<vmem>>, vector<1x16x16x4xbf16>
    tpu.vector_store %arg10[%c0_84, %c0_85, %c0_86, %c32], %35 {strides = array<i32>} : memref<1x16x16x36xbf16, #tpu.memory_space<vmem>>, vector<1x16x16x4xbf16>,
    %c0_87 = arith.constant 0 : index
    %c0_88 = arith.constant 0 : index
    %c0_89 = arith.constant 0 : index
    %c0_90 = arith.constant 0 : index
    %37 = vector.load %arg10[%c0_87, %c0_88, %c0_89, %c0_90] : memref<1x16x16x36xbf16, #tpu.memory_space<vmem>>, vector<1x16x16x36xbf16>
    %38 = vector.shape_cast %37 : vector<1x16x16x36xbf16> to vector<256x36xbf16>
    %c0_91 = arith.constant 0 : index
    %c0_92 = arith.constant 0 : index
    %39 = vector.load %arg2[%c0_91, %c0_92] : memref<36x16xbf16, #tpu.memory_space<vmem>>, vector<36x16xbf16>
    %cst_93 = arith.constant dense<0.000000e+00> : vector<256x16xf32>
    %40 = tpu.matmul %38, %39, %cst_93 {dimension_numbers = #tpu.dot_dimension_numbers<[1], [0], [0], [1], [0, 0, 1, 1], [], []>} : vector<256x36xbf16>, vector<36x16xbf16>, vector<256x16xf32> -> vector<256x16xf32>
    %c0_94 = arith.constant 0 : index
    %c0_95 = arith.constant 0 : index
    %41 = vector.load %arg3[%c0_94, %c0_95] : memref<1x16xf32, #tpu.memory_space<vmem>>, vector<1x16xf32>
    %42 = vector.broadcast %41 : vector<1x16xf32> to vector<256x16xf32>
    %43 = arith.addf %40, %42 : vector<256x16xf32>
    %cst_96 = arith.constant 0.000000e+00 : f32
    %44 = vector.broadcast %cst_96 : f32 to vector<256x16xf32>
    %45 = arith.maximumf %43, %44 : vector<256x16xf32>
    %46 = vector.shape_cast %45 : vector<256x16xf32> to vector<1x16x16x16xf32>
    %47 = vector.extract_strided_slice %46 {offsets = [0, 1, 0, 0], sizes = [1, 1, 16, 16], strides = [1, 1, 1, 1]} : vector<1x16x16x16xf32> to vector<1x1x16x16xf32>
    %48 = vector.shape_cast %47 : vector<1x1x16x16xf32> to vector<1x16x16xf32>
    %c0_97 = arith.constant 0 : index
    %c0_98 = arith.constant 0 : index
    %c0_99 = arith.constant 0 : index
    %c0_100 = arith.constant 0 : index
    %49 = vector.load %arg11[%c0_97, %c0_98, %c0_99, %c0_100] : memref<1x8x16x16xf32, #tpu.memory_space<vmem>>, vector<1x1x16x16xf32>
    %50 = vector.shape_cast %49 : vector<1x1x16x16xf32> to vector<1x16x16xf32>
    %51 = vector.shape_cast %48 : vector<1x16x16xf32> to vector<1x1x16x16xf32>
    tpu.vector_store %arg11[%c0_97, %c0_98, %c0_99, %c0_100], %51 {strides = array<i32>} : memref<1x8x16x16xf32, #tpu.memory_space<vmem>>, vector<1x1x16x16xf32>,
    %52 = vector.extract_strided_slice %46 {offsets = [0, 3, 0, 0], sizes = [1, 1, 16, 16], strides = [1, 1, 1, 1]} : vector<1x16x16x16xf32> to vector<1x1x16x16xf32>
    %53 = vector.shape_cast %52 : vector<1x1x16x16xf32> to vector<1x16x16xf32>
    %c0_101 = arith.constant 0 : index
    %c1 = arith.constant 1 : index
    %c0_102 = arith.constant 0 : index
    %c0_103 = arith.constant 0 : index
    %54 = vector.load %arg11[%c0_101, %c1, %c0_102, %c0_103] : memref<1x8x16x16xf32, #tpu.memory_space<vmem>>, vector<1x1x16x16xf32>
    %55 = vector.shape_cast %54 : vector<1x1x16x16xf32> to vector<1x16x16xf32>
    %56 = vector.shape_cast %53 : vector<1x16x16xf32> to vector<1x1x16x16xf32>
    tpu.vector_store %arg11[%c0_101, %c1, %c0_102, %c0_103], %56 {strides = array<i32>} : memref<1x8x16x16xf32, #tpu.memory_space<vmem>>, vector<1x1x16x16xf32>,
    %57 = vector.extract_strided_slice %46 {offsets = [0, 5, 0, 0], sizes = [1, 1, 16, 16], strides = [1, 1, 1, 1]} : vector<1x16x16x16xf32> to vector<1x1x16x16xf32>
    %58 = vector.shape_cast %57 : vector<1x1x16x16xf32> to vector<1x16x16xf32>
    %c0_104 = arith.constant 0 : index
    %c2 = arith.constant 2 : index
    %c0_105 = arith.constant 0 : index
    %c0_106 = arith.constant 0 : index
    %59 = vector.load %arg11[%c0_104, %c2, %c0_105, %c0_106] : memref<1x8x16x16xf32, #tpu.memory_space<vmem>>, vector<1x1x16x16xf32>
    %60 = vector.shape_cast %59 : vector<1x1x16x16xf32> to vector<1x16x16xf32>
    %61 = vector.shape_cast %58 : vector<1x16x16xf32> to vector<1x1x16x16xf32>
    tpu.vector_store %arg11[%c0_104, %c2, %c0_105, %c0_106], %61 {strides = array<i32>} : memref<1x8x16x16xf32, #tpu.memory_space<vmem>>, vector<1x1x16x16xf32>,
    %62 = vector.extract_strided_slice %46 {offsets = [0, 7, 0, 0], sizes = [1, 1, 16, 16], strides = [1, 1, 1, 1]} : vector<1x16x16x16xf32> to vector<1x1x16x16xf32>
    %63 = vector.shape_cast %62 : vector<1x1x16x16xf32> to vector<1x16x16xf32>
    %c0_107 = arith.constant 0 : index
    %c3 = arith.constant 3 : index
    %c0_108 = arith.constant 0 : index
    %c0_109 = arith.constant 0 : index
    %64 = vector.load %arg11[%c0_107, %c3, %c0_108, %c0_109] : memref<1x8x16x16xf32, #tpu.memory_space<vmem>>, vector<1x1x16x16xf32>
    %65 = vector.shape_cast %64 : vector<1x1x16x16xf32> to vector<1x16x16xf32>
    %66 = vector.shape_cast %63 : vector<1x16x16xf32> to vector<1x1x16x16xf32>
    tpu.vector_store %arg11[%c0_107, %c3, %c0_108, %c0_109], %66 {strides = array<i32>} : memref<1x8x16x16xf32, #tpu.memory_space<vmem>>, vector<1x1x16x16xf32>,
    %67 = vector.extract_strided_slice %46 {offsets = [0, 9, 0, 0], sizes = [1, 1, 16, 16], strides = [1, 1, 1, 1]} : vector<1x16x16x16xf32> to vector<1x1x16x16xf32>
    %68 = vector.shape_cast %67 : vector<1x1x16x16xf32> to vector<1x16x16xf32>
    %c0_110 = arith.constant 0 : index
    %c4_111 = arith.constant 4 : index
    %c0_112 = arith.constant 0 : index
    %c0_113 = arith.constant 0 : index
    %69 = vector.load %arg11[%c0_110, %c4_111, %c0_112, %c0_113] : memref<1x8x16x16xf32, #tpu.memory_space<vmem>>, vector<1x1x16x16xf32>
    %70 = vector.shape_cast %69 : vector<1x1x16x16xf32> to vector<1x16x16xf32>
    %71 = vector.shape_cast %68 : vector<1x16x16xf32> to vector<1x1x16x16xf32>
    tpu.vector_store %arg11[%c0_110, %c4_111, %c0_112, %c0_113], %71 {strides = array<i32>} : memref<1x8x16x16xf32, #tpu.memory_space<vmem>>, vector<1x1x16x16xf32>,
    %72 = vector.extract_strided_slice %46 {offsets = [0, 11, 0, 0], sizes = [1, 1, 16, 16], strides = [1, 1, 1, 1]} : vector<1x16x16x16xf32> to vector<1x1x16x16xf32>
    %73 = vector.shape_cast %72 : vector<1x1x16x16xf32> to vector<1x16x16xf32>
    %c0_114 = arith.constant 0 : index
    %c5_115 = arith.constant 5 : index
    %c0_116 = arith.constant 0 : index
    %c0_117 = arith.constant 0 : index
    %74 = vector.load %arg11[%c0_114, %c5_115, %c0_116, %c0_117] : memref<1x8x16x16xf32, #tpu.memory_space<vmem>>, vector<1x1x16x16xf32>
    %75 = vector.shape_cast %74 : vector<1x1x16x16xf32> to vector<1x16x16xf32>
    %76 = vector.shape_cast %73 : vector<1x16x16xf32> to vector<1x1x16x16xf32>
    tpu.vector_store %arg11[%c0_114, %c5_115, %c0_116, %c0_117], %76 {strides = array<i32>} : memref<1x8x16x16xf32, #tpu.memory_space<vmem>>, vector<1x1x16x16xf32>,
    %77 = vector.extract_strided_slice %46 {offsets = [0, 13, 0, 0], sizes = [1, 1, 16, 16], strides = [1, 1, 1, 1]} : vector<1x16x16x16xf32> to vector<1x1x16x16xf32>
    %78 = vector.shape_cast %77 : vector<1x1x16x16xf32> to vector<1x16x16xf32>
    %c0_118 = arith.constant 0 : index
    %c6 = arith.constant 6 : index
    %c0_119 = arith.constant 0 : index
    %c0_120 = arith.constant 0 : index
    %79 = vector.load %arg11[%c0_118, %c6, %c0_119, %c0_120] : memref<1x8x16x16xf32, #tpu.memory_space<vmem>>, vector<1x1x16x16xf32>
    %80 = vector.shape_cast %79 : vector<1x1x16x16xf32> to vector<1x16x16xf32>
    %81 = vector.shape_cast %78 : vector<1x16x16xf32> to vector<1x1x16x16xf32>
    tpu.vector_store %arg11[%c0_118, %c6, %c0_119, %c0_120], %81 {strides = array<i32>} : memref<1x8x16x16xf32, #tpu.memory_space<vmem>>, vector<1x1x16x16xf32>,
    %82 = vector.extract_strided_slice %46 {offsets = [0, 15, 0, 0], sizes = [1, 1, 16, 16], strides = [1, 1, 1, 1]} : vector<1x16x16x16xf32> to vector<1x1x16x16xf32>
    %83 = vector.shape_cast %82 : vector<1x1x16x16xf32> to vector<1x16x16xf32>
    %c0_121 = arith.constant 0 : index
    %c7 = arith.constant 7 : index
    %c0_122 = arith.constant 0 : index
    %c0_123 = arith.constant 0 : index
    %84 = vector.load %arg11[%c0_121, %c7, %c0_122, %c0_123] : memref<1x8x16x16xf32, #tpu.memory_space<vmem>>, vector<1x1x16x16xf32>
    %85 = vector.shape_cast %84 : vector<1x1x16x16xf32> to vector<1x16x16xf32>
    %86 = vector.shape_cast %83 : vector<1x16x16xf32> to vector<1x1x16x16xf32>
    tpu.vector_store %arg11[%c0_121, %c7, %c0_122, %c0_123], %86 {strides = array<i32>} : memref<1x8x16x16xf32, #tpu.memory_space<vmem>>, vector<1x1x16x16xf32>,
    %cst_124 = arith.constant 0.000000e+00 : f32
    %87 = vector.broadcast %cst_124 : f32 to vector<1x1x18x16xf32>
    %c0_125 = arith.constant 0 : index
    %c0_126 = arith.constant 0 : index
    %c0_127 = arith.constant 0 : index
    %c0_128 = arith.constant 0 : index
    %88 = vector.load %arg12[%c0_125, %c0_126, %c0_127, %c0_128] : memref<1x9x18x16xf32, #tpu.memory_space<vmem>>, vector<1x1x18x16xf32>
    tpu.vector_store %arg12[%c0_125, %c0_126, %c0_127, %c0_128], %87 {strides = array<i32>} : memref<1x9x18x16xf32, #tpu.memory_space<vmem>>, vector<1x1x18x16xf32>,
    %cst_129 = arith.constant 0.000000e+00 : f32
    %89 = vector.broadcast %cst_129 : f32 to vector<1x8x1x16xf32>
    %c0_130 = arith.constant 0 : index
    %c1_131 = arith.constant 1 : index
    %c0_132 = arith.constant 0 : index
    %c0_133 = arith.constant 0 : index
    %90 = vector.load %arg12[%c0_130, %c1_131, %c0_132, %c0_133] : memref<1x9x18x16xf32, #tpu.memory_space<vmem>>, vector<1x8x1x16xf32>
    tpu.vector_store %arg12[%c0_130, %c1_131, %c0_132, %c0_133], %89 {strides = array<i32>} : memref<1x9x18x16xf32, #tpu.memory_space<vmem>>, vector<1x8x1x16xf32>,
    %cst_134 = arith.constant 0.000000e+00 : f32
    %91 = vector.broadcast %cst_134 : f32 to vector<1x8x9x16xf32>
    %c0_135 = arith.constant 0 : index
    %c1_136 = arith.constant 1 : index
    %c9 = arith.constant 9 : index
    %c0_137 = arith.constant 0 : index
    %92 = vector.load %arg12[%c0_135, %c1_136, %c9, %c0_137] : memref<1x9x18x16xf32, #tpu.memory_space<vmem>>, vector<1x8x9x16xf32>
    tpu.vector_store %arg12[%c0_135, %c1_136, %c9, %c0_137], %91 {strides = array<i32>} : memref<1x9x18x16xf32, #tpu.memory_space<vmem>>, vector<1x8x9x16xf32>,
    %c0_138 = arith.constant 0 : index
    %c0_139 = arith.constant 0 : index
    %c1_140 = arith.constant 1 : index
    %c0_141 = arith.constant 0 : index
    %93 = vector.load %arg11[%c0_138, %c0_139, %c1_140, %c0_141] : memref<1x8x16x16xf32, #tpu.memory_space<vmem>>, vector<1x8x1x16xf32>
    %94 = vector.shape_cast %93 : vector<1x8x1x16xf32> to vector<1x8x16xf32>
    %c0_142 = arith.constant 0 : index
    %c1_143 = arith.constant 1 : index
    %c1_144 = arith.constant 1 : index
    %c0_145 = arith.constant 0 : index
    %95 = vector.load %arg12[%c0_142, %c1_143, %c1_144, %c0_145] : memref<1x9x18x16xf32, #tpu.memory_space<vmem>>, vector<1x8x1x16xf32>
    %96 = vector.shape_cast %95 : vector<1x8x1x16xf32> to vector<1x8x16xf32>
    %97 = vector.shape_cast %94 : vector<1x8x16xf32> to vector<1x8x1x16xf32>
    tpu.vector_store %arg12[%c0_142, %c1_143, %c1_144, %c0_145], %97 {strides = array<i32>} : memref<1x9x18x16xf32, #tpu.memory_space<vmem>>, vector<1x8x1x16xf32>,
    %c0_146 = arith.constant 0 : index
    %c0_147 = arith.constant 0 : index
    %c3_148 = arith.constant 3 : index
    %c0_149 = arith.constant 0 : index
    %98 = vector.load %arg11[%c0_146, %c0_147, %c3_148, %c0_149] : memref<1x8x16x16xf32, #tpu.memory_space<vmem>>, vector<1x8x1x16xf32>
    %99 = vector.shape_cast %98 : vector<1x8x1x16xf32> to vector<1x8x16xf32>
    %c0_150 = arith.constant 0 : index
    %c1_151 = arith.constant 1 : index
    %c2_152 = arith.constant 2 : index
    %c0_153 = arith.constant 0 : index
    %100 = vector.load %arg12[%c0_150, %c1_151, %c2_152, %c0_153] : memref<1x9x18x16xf32, #tpu.memory_space<vmem>>, vector<1x8x1x16xf32>
    %101 = vector.shape_cast %100 : vector<1x8x1x16xf32> to vector<1x8x16xf32>
    %102 = vector.shape_cast %99 : vector<1x8x16xf32> to vector<1x8x1x16xf32>
    tpu.vector_store %arg12[%c0_150, %c1_151, %c2_152, %c0_153], %102 {strides = array<i32>} : memref<1x9x18x16xf32, #tpu.memory_space<vmem>>, vector<1x8x1x16xf32>,
    %c0_154 = arith.constant 0 : index
    %c0_155 = arith.constant 0 : index
    %c5_156 = arith.constant 5 : index
    %c0_157 = arith.constant 0 : index
    %103 = vector.load %arg11[%c0_154, %c0_155, %c5_156, %c0_157] : memref<1x8x16x16xf32, #tpu.memory_space<vmem>>, vector<1x8x1x16xf32>
    %104 = vector.shape_cast %103 : vector<1x8x1x16xf32> to vector<1x8x16xf32>
    %c0_158 = arith.constant 0 : index
    %c1_159 = arith.constant 1 : index
    %c3_160 = arith.constant 3 : index
    %c0_161 = arith.constant 0 : index
    %105 = vector.load %arg12[%c0_158, %c1_159, %c3_160, %c0_161] : memref<1x9x18x16xf32, #tpu.memory_space<vmem>>, vector<1x8x1x16xf32>
    %106 = vector.shape_cast %105 : vector<1x8x1x16xf32> to vector<1x8x16xf32>
    %107 = vector.shape_cast %104 : vector<1x8x16xf32> to vector<1x8x1x16xf32>
    tpu.vector_store %arg12[%c0_158, %c1_159, %c3_160, %c0_161], %107 {strides = array<i32>} : memref<1x9x18x16xf32, #tpu.memory_space<vmem>>, vector<1x8x1x16xf32>,
    %c0_162 = arith.constant 0 : index
    %c0_163 = arith.constant 0 : index
    %c7_164 = arith.constant 7 : index
    %c0_165 = arith.constant 0 : index
    %108 = vector.load %arg11[%c0_162, %c0_163, %c7_164, %c0_165] : memref<1x8x16x16xf32, #tpu.memory_space<vmem>>, vector<1x8x1x16xf32>
    %109 = vector.shape_cast %108 : vector<1x8x1x16xf32> to vector<1x8x16xf32>
    %c0_166 = arith.constant 0 : index
    %c1_167 = arith.constant 1 : index
    %c4_168 = arith.constant 4 : index
    %c0_169 = arith.constant 0 : index
    %110 = vector.load %arg12[%c0_166, %c1_167, %c4_168, %c0_169] : memref<1x9x18x16xf32, #tpu.memory_space<vmem>>, vector<1x8x1x16xf32>
    %111 = vector.shape_cast %110 : vector<1x8x1x16xf32> to vector<1x8x16xf32>
    %112 = vector.shape_cast %109 : vector<1x8x16xf32> to vector<1x8x1x16xf32>
    tpu.vector_store %arg12[%c0_166, %c1_167, %c4_168, %c0_169], %112 {strides = array<i32>} : memref<1x9x18x16xf32, #tpu.memory_space<vmem>>, vector<1x8x1x16xf32>,
    %c0_170 = arith.constant 0 : index
    %c0_171 = arith.constant 0 : index
    %c9_172 = arith.constant 9 : index
    %c0_173 = arith.constant 0 : index
    %113 = vector.load %arg11[%c0_170, %c0_171, %c9_172, %c0_173] : memref<1x8x16x16xf32, #tpu.memory_space<vmem>>, vector<1x8x1x16xf32>
    %114 = vector.shape_cast %113 : vector<1x8x1x16xf32> to vector<1x8x16xf32>
    %c0_174 = arith.constant 0 : index
    %c1_175 = arith.constant 1 : index
    %c5_176 = arith.constant 5 : index
    %c0_177 = arith.constant 0 : index
    %115 = vector.load %arg12[%c0_174, %c1_175, %c5_176, %c0_177] : memref<1x9x18x16xf32, #tpu.memory_space<vmem>>, vector<1x8x1x16xf32>
    %116 = vector.shape_cast %115 : vector<1x8x1x16xf32> to vector<1x8x16xf32>
    %117 = vector.shape_cast %114 : vector<1x8x16xf32> to vector<1x8x1x16xf32>
    tpu.vector_store %arg12[%c0_174, %c1_175, %c5_176, %c0_177], %117 {strides = array<i32>} : memref<1x9x18x16xf32, #tpu.memory_space<vmem>>, vector<1x8x1x16xf32>,
    %c0_178 = arith.constant 0 : index
    %c0_179 = arith.constant 0 : index
    %c11 = arith.constant 11 : index
    %c0_180 = arith.constant 0 : index
    %118 = vector.load %arg11[%c0_178, %c0_179, %c11, %c0_180] : memref<1x8x16x16xf32, #tpu.memory_space<vmem>>, vector<1x8x1x16xf32>
    %119 = vector.shape_cast %118 : vector<1x8x1x16xf32> to vector<1x8x16xf32>
    %c0_181 = arith.constant 0 : index
    %c1_182 = arith.constant 1 : index
    %c6_183 = arith.constant 6 : index
    %c0_184 = arith.constant 0 : index
    %120 = vector.load %arg12[%c0_181, %c1_182, %c6_183, %c0_184] : memref<1x9x18x16xf32, #tpu.memory_space<vmem>>, vector<1x8x1x16xf32>
    %121 = vector.shape_cast %120 : vector<1x8x1x16xf32> to vector<1x8x16xf32>
    %122 = vector.shape_cast %119 : vector<1x8x16xf32> to vector<1x8x1x16xf32>
    tpu.vector_store %arg12[%c0_181, %c1_182, %c6_183, %c0_184], %122 {strides = array<i32>} : memref<1x9x18x16xf32, #tpu.memory_space<vmem>>, vector<1x8x1x16xf32>,
    %c0_185 = arith.constant 0 : index
    %c0_186 = arith.constant 0 : index
    %c13 = arith.constant 13 : index
    %c0_187 = arith.constant 0 : index
    %123 = vector.load %arg11[%c0_185, %c0_186, %c13, %c0_187] : memref<1x8x16x16xf32, #tpu.memory_space<vmem>>, vector<1x8x1x16xf32>
    %124 = vector.shape_cast %123 : vector<1x8x1x16xf32> to vector<1x8x16xf32>
    %c0_188 = arith.constant 0 : index
    %c1_189 = arith.constant 1 : index
    %c7_190 = arith.constant 7 : index
    %c0_191 = arith.constant 0 : index
    %125 = vector.load %arg12[%c0_188, %c1_189, %c7_190, %c0_191] : memref<1x9x18x16xf32, #tpu.memory_space<vmem>>, vector<1x8x1x16xf32>
    %126 = vector.shape_cast %125 : vector<1x8x1x16xf32> to vector<1x8x16xf32>
    %127 = vector.shape_cast %124 : vector<1x8x16xf32> to vector<1x8x1x16xf32>
    tpu.vector_store %arg12[%c0_188, %c1_189, %c7_190, %c0_191], %127 {strides = array<i32>} : memref<1x9x18x16xf32, #tpu.memory_space<vmem>>, vector<1x8x1x16xf32>,
    %c0_192 = arith.constant 0 : index
    %c0_193 = arith.constant 0 : index
    %c15 = arith.constant 15 : index
    %c0_194 = arith.constant 0 : index
    %128 = vector.load %arg11[%c0_192, %c0_193, %c15, %c0_194] : memref<1x8x16x16xf32, #tpu.memory_space<vmem>>, vector<1x8x1x16xf32>
    %129 = vector.shape_cast %128 : vector<1x8x1x16xf32> to vector<1x8x16xf32>
    %c0_195 = arith.constant 0 : index
    %c1_196 = arith.constant 1 : index
    %c8_197 = arith.constant 8 : index
    %c0_198 = arith.constant 0 : index
    %130 = vector.load %arg12[%c0_195, %c1_196, %c8_197, %c0_198] : memref<1x9x18x16xf32, #tpu.memory_space<vmem>>, vector<1x8x1x16xf32>
    %131 = vector.shape_cast %130 : vector<1x8x1x16xf32> to vector<1x8x16xf32>
    %132 = vector.shape_cast %129 : vector<1x8x16xf32> to vector<1x8x1x16xf32>
    tpu.vector_store %arg12[%c0_195, %c1_196, %c8_197, %c0_198], %132 {strides = array<i32>} : memref<1x9x18x16xf32, #tpu.memory_space<vmem>>, vector<1x8x1x16xf32>,
    %c0_199 = arith.constant 0 : index
    %c0_200 = arith.constant 0 : index
    %c0_201 = arith.constant 0 : index
    %c0_202 = arith.constant 0 : index
    %133 = vector.load %arg12[%c0_199, %c0_200, %c0_201, %c0_202] : memref<1x9x18x16xf32, #tpu.memory_space<vmem>>, vector<1x7x16x16xf32>
    %134 = arith.truncf %133 : vector<1x7x16x16xf32> to vector<1x7x16x16xbf16>
    %c0_203 = arith.constant 0 : index
    %c0_204 = arith.constant 0 : index
    %c0_205 = arith.constant 0 : index
    %c0_206 = arith.constant 0 : index
    %135 = vector.load %arg13[%c0_203, %c0_204, %c0_205, %c0_206] : memref<1x7x16x144xbf16, #tpu.memory_space<vmem>>, vector<1x7x16x16xbf16>
    tpu.vector_store %arg13[%c0_203, %c0_204, %c0_205, %c0_206], %134 {strides = array<i32>} : memref<1x7x16x144xbf16, #tpu.memory_space<vmem>>, vector<1x7x16x16xbf16>,
    %c0_207 = arith.constant 0 : index
    %c0_208 = arith.constant 0 : index
    %c1_209 = arith.constant 1 : index
    %c0_210 = arith.constant 0 : index
    %136 = vector.load %arg12[%c0_207, %c0_208, %c1_209, %c0_210] : memref<1x9x18x16xf32, #tpu.memory_space<vmem>>, vector<1x7x16x16xf32>
    %137 = arith.truncf %136 : vector<1x7x16x16xf32> to vector<1x7x16x16xbf16>
    %c0_211 = arith.constant 0 : index
    %c0_212 = arith.constant 0 : index
    %c0_213 = arith.constant 0 : index
    %c16_214 = arith.constant 16 : index
    %138 = vector.load %arg13[%c0_211, %c0_212, %c0_213, %c16_214] : memref<1x7x16x144xbf16, #tpu.memory_space<vmem>>, vector<1x7x16x16xbf16>
    tpu.vector_store %arg13[%c0_211, %c0_212, %c0_213, %c16_214], %137 {strides = array<i32>} : memref<1x7x16x144xbf16, #tpu.memory_space<vmem>>, vector<1x7x16x16xbf16>,
    %c0_215 = arith.constant 0 : index
    %c0_216 = arith.constant 0 : index
    %c2_217 = arith.constant 2 : index
    %c0_218 = arith.constant 0 : index
    %139 = vector.load %arg12[%c0_215, %c0_216, %c2_217, %c0_218] : memref<1x9x18x16xf32, #tpu.memory_space<vmem>>, vector<1x7x16x16xf32>
    %140 = arith.truncf %139 : vector<1x7x16x16xf32> to vector<1x7x16x16xbf16>
    %c0_219 = arith.constant 0 : index
    %c0_220 = arith.constant 0 : index
    %c0_221 = arith.constant 0 : index
    %c32_222 = arith.constant 32 : index
    %141 = vector.load %arg13[%c0_219, %c0_220, %c0_221, %c32_222] : memref<1x7x16x144xbf16, #tpu.memory_space<vmem>>, vector<1x7x16x16xbf16>
    tpu.vector_store %arg13[%c0_219, %c0_220, %c0_221, %c32_222], %140 {strides = array<i32>} : memref<1x7x16x144xbf16, #tpu.memory_space<vmem>>, vector<1x7x16x16xbf16>,
    %c0_223 = arith.constant 0 : index
    %c1_224 = arith.constant 1 : index
    %c0_225 = arith.constant 0 : index
    %c0_226 = arith.constant 0 : index
    %142 = vector.load %arg12[%c0_223, %c1_224, %c0_225, %c0_226] : memref<1x9x18x16xf32, #tpu.memory_space<vmem>>, vector<1x7x16x16xf32>
    %143 = arith.truncf %142 : vector<1x7x16x16xf32> to vector<1x7x16x16xbf16>
    %c0_227 = arith.constant 0 : index
    %c0_228 = arith.constant 0 : index
    %c0_229 = arith.constant 0 : index
    %c48 = arith.constant 48 : index
    %144 = vector.load %arg13[%c0_227, %c0_228, %c0_229, %c48] : memref<1x7x16x144xbf16, #tpu.memory_space<vmem>>, vector<1x7x16x16xbf16>
    tpu.vector_store %arg13[%c0_227, %c0_228, %c0_229, %c48], %143 {strides = array<i32>} : memref<1x7x16x144xbf16, #tpu.memory_space<vmem>>, vector<1x7x16x16xbf16>,
    %c0_230 = arith.constant 0 : index
    %c1_231 = arith.constant 1 : index
    %c1_232 = arith.constant 1 : index
    %c0_233 = arith.constant 0 : index
    %145 = vector.load %arg12[%c0_230, %c1_231, %c1_232, %c0_233] : memref<1x9x18x16xf32, #tpu.memory_space<vmem>>, vector<1x7x16x16xf32>
    %146 = arith.truncf %145 : vector<1x7x16x16xf32> to vector<1x7x16x16xbf16>
    %c0_234 = arith.constant 0 : index
    %c0_235 = arith.constant 0 : index
    %c0_236 = arith.constant 0 : index
    %c64 = arith.constant 64 : index
    %147 = vector.load %arg13[%c0_234, %c0_235, %c0_236, %c64] : memref<1x7x16x144xbf16, #tpu.memory_space<vmem>>, vector<1x7x16x16xbf16>
    tpu.vector_store %arg13[%c0_234, %c0_235, %c0_236, %c64], %146 {strides = array<i32>} : memref<1x7x16x144xbf16, #tpu.memory_space<vmem>>, vector<1x7x16x16xbf16>,
    %c0_237 = arith.constant 0 : index
    %c1_238 = arith.constant 1 : index
    %c2_239 = arith.constant 2 : index
    %c0_240 = arith.constant 0 : index
    %148 = vector.load %arg12[%c0_237, %c1_238, %c2_239, %c0_240] : memref<1x9x18x16xf32, #tpu.memory_space<vmem>>, vector<1x7x16x16xf32>
    %149 = arith.truncf %148 : vector<1x7x16x16xf32> to vector<1x7x16x16xbf16>
    %c0_241 = arith.constant 0 : index
    %c0_242 = arith.constant 0 : index
    %c0_243 = arith.constant 0 : index
    %c80 = arith.constant 80 : index
    %150 = vector.load %arg13[%c0_241, %c0_242, %c0_243, %c80] : memref<1x7x16x144xbf16, #tpu.memory_space<vmem>>, vector<1x7x16x16xbf16>
    tpu.vector_store %arg13[%c0_241, %c0_242, %c0_243, %c80], %149 {strides = array<i32>} : memref<1x7x16x144xbf16, #tpu.memory_space<vmem>>, vector<1x7x16x16xbf16>,
    %c0_244 = arith.constant 0 : index
    %c2_245 = arith.constant 2 : index
    %c0_246 = arith.constant 0 : index
    %c0_247 = arith.constant 0 : index
    %151 = vector.load %arg12[%c0_244, %c2_245, %c0_246, %c0_247] : memref<1x9x18x16xf32, #tpu.memory_space<vmem>>, vector<1x7x16x16xf32>
    %152 = arith.truncf %151 : vector<1x7x16x16xf32> to vector<1x7x16x16xbf16>
    %c0_248 = arith.constant 0 : index
    %c0_249 = arith.constant 0 : index
    %c0_250 = arith.constant 0 : index
    %c96 = arith.constant 96 : index
    %153 = vector.load %arg13[%c0_248, %c0_249, %c0_250, %c96] : memref<1x7x16x144xbf16, #tpu.memory_space<vmem>>, vector<1x7x16x16xbf16>
    tpu.vector_store %arg13[%c0_248, %c0_249, %c0_250, %c96], %152 {strides = array<i32>} : memref<1x7x16x144xbf16, #tpu.memory_space<vmem>>, vector<1x7x16x16xbf16>,
    %c0_251 = arith.constant 0 : index
    %c2_252 = arith.constant 2 : index
    %c1_253 = arith.constant 1 : index
    %c0_254 = arith.constant 0 : index
    %154 = vector.load %arg12[%c0_251, %c2_252, %c1_253, %c0_254] : memref<1x9x18x16xf32, #tpu.memory_space<vmem>>, vector<1x7x16x16xf32>
    %155 = arith.truncf %154 : vector<1x7x16x16xf32> to vector<1x7x16x16xbf16>
    %c0_255 = arith.constant 0 : index
    %c0_256 = arith.constant 0 : index
    %c0_257 = arith.constant 0 : index
    %c112 = arith.constant 112 : index
    %156 = vector.load %arg13[%c0_255, %c0_256, %c0_257, %c112] : memref<1x7x16x144xbf16, #tpu.memory_space<vmem>>, vector<1x7x16x16xbf16>
    tpu.vector_store %arg13[%c0_255, %c0_256, %c0_257, %c112], %155 {strides = array<i32>} : memref<1x7x16x144xbf16, #tpu.memory_space<vmem>>, vector<1x7x16x16xbf16>,
    %c0_258 = arith.constant 0 : index
    %c2_259 = arith.constant 2 : index
    %c2_260 = arith.constant 2 : index
    %c0_261 = arith.constant 0 : index
    %157 = vector.load %arg12[%c0_258, %c2_259, %c2_260, %c0_261] : memref<1x9x18x16xf32, #tpu.memory_space<vmem>>, vector<1x7x16x16xf32>
    %158 = arith.truncf %157 : vector<1x7x16x16xf32> to vector<1x7x16x16xbf16>
    %c0_262 = arith.constant 0 : index
    %c0_263 = arith.constant 0 : index
    %c0_264 = arith.constant 0 : index
    %c128 = arith.constant 128 : index
    %159 = vector.load %arg13[%c0_262, %c0_263, %c0_264, %c128] : memref<1x7x16x144xbf16, #tpu.memory_space<vmem>>, vector<1x7x16x16xbf16>
    tpu.vector_store %arg13[%c0_262, %c0_263, %c0_264, %c128], %158 {strides = array<i32>} : memref<1x7x16x144xbf16, #tpu.memory_space<vmem>>, vector<1x7x16x16xbf16>,
    %c0_265 = arith.constant 0 : index
    %c0_266 = arith.constant 0 : index
    %c0_267 = arith.constant 0 : index
    %c0_268 = arith.constant 0 : index
    %160 = vector.load %arg13[%c0_265, %c0_266, %c0_267, %c0_268] : memref<1x7x16x144xbf16, #tpu.memory_space<vmem>>, vector<1x7x16x144xbf16>
    %161 = vector.shape_cast %160 : vector<1x7x16x144xbf16> to vector<112x144xbf16>
    %c0_269 = arith.constant 0 : index
    %c0_270 = arith.constant 0 : index
    %162 = vector.load %arg4[%c0_269, %c0_270] : memref<144x16xbf16, #tpu.memory_space<vmem>>, vector<144x16xbf16>
    %cst_271 = arith.constant dense<0.000000e+00> : vector<112x16xf32>
    %163 = tpu.matmul %161, %162, %cst_271 {dimension_numbers = #tpu.dot_dimension_numbers<[1], [0], [0], [1], [0, 0, 1, 1], [], []>} : vector<112x144xbf16>, vector<144x16xbf16>, vector<112x16xf32> -> vector<112x16xf32>
    %c0_272 = arith.constant 0 : index
    %c0_273 = arith.constant 0 : index
    %164 = vector.load %arg5[%c0_272, %c0_273] : memref<1x16xf32, #tpu.memory_space<vmem>>, vector<1x16xf32>
    %165 = vector.broadcast %164 : vector<1x16xf32> to vector<112x16xf32>
    %166 = arith.addf %163, %165 : vector<112x16xf32>
    %cst_274 = arith.constant 0.000000e+00 : f32
    %167 = vector.broadcast %cst_274 : f32 to vector<112x16xf32>
    %168 = arith.maximumf %166, %167 : vector<112x16xf32>
    %169 = vector.shape_cast %168 : vector<112x16xf32> to vector<1x7x16x16xf32>
    %170 = tpu.iota {dimensions = array<i32: 2>} : vector<1x7x16x16xi32>
    %c7_i32 = arith.constant 7 : i32
    %171 = vector.broadcast %c7_i32 : i32 to vector<1x7x16x16xi32>
    %172 = arith.cmpi slt, %170, %171 : vector<1x7x16x16xi32>
    %cst_275 = arith.constant 0.000000e+00 : f32
    %173 = vector.broadcast %cst_275 : f32 to vector<1x7x16x16xf32>
    %174 = arith.select %172, %169, %173 : vector<1x7x16x16xi1>, vector<1x7x16x16xf32>
    %cst_276 = arith.constant 0.000000e+00 : f32
    %175 = vector.broadcast %cst_276 : f32 to vector<1x1x18x16xf32>
    %c0_277 = arith.constant 0 : index
    %c0_278 = arith.constant 0 : index
    %c0_279 = arith.constant 0 : index
    %c0_280 = arith.constant 0 : index
    %176 = vector.load %arg14[%c0_277, %c0_278, %c0_279, %c0_280] : memref<1x9x18x16xf32, #tpu.memory_space<vmem>>, vector<1x1x18x16xf32>
    tpu.vector_store %arg14[%c0_277, %c0_278, %c0_279, %c0_280], %175 {strides = array<i32>} : memref<1x9x18x16xf32, #tpu.memory_space<vmem>>, vector<1x1x18x16xf32>,
    %cst_281 = arith.constant 0.000000e+00 : f32
    %177 = vector.broadcast %cst_281 : f32 to vector<1x1x18x16xf32>
    %c0_282 = arith.constant 0 : index
    %c8_283 = arith.constant 8 : index
    %c0_284 = arith.constant 0 : index
    %c0_285 = arith.constant 0 : index
    %178 = vector.load %arg14[%c0_282, %c8_283, %c0_284, %c0_285] : memref<1x9x18x16xf32, #tpu.memory_space<vmem>>, vector<1x1x18x16xf32>
    tpu.vector_store %arg14[%c0_282, %c8_283, %c0_284, %c0_285], %177 {strides = array<i32>} : memref<1x9x18x16xf32, #tpu.memory_space<vmem>>, vector<1x1x18x16xf32>,
    %cst_286 = arith.constant 0.000000e+00 : f32
    %179 = vector.broadcast %cst_286 : f32 to vector<1x7x1x16xf32>
    %c0_287 = arith.constant 0 : index
    %c1_288 = arith.constant 1 : index
    %c0_289 = arith.constant 0 : index
    %c0_290 = arith.constant 0 : index
    %180 = vector.load %arg14[%c0_287, %c1_288, %c0_289, %c0_290] : memref<1x9x18x16xf32, #tpu.memory_space<vmem>>, vector<1x7x1x16xf32>
    tpu.vector_store %arg14[%c0_287, %c1_288, %c0_289, %c0_290], %179 {strides = array<i32>} : memref<1x9x18x16xf32, #tpu.memory_space<vmem>>, vector<1x7x1x16xf32>,
    %cst_291 = arith.constant 0.000000e+00 : f32
    %181 = vector.broadcast %cst_291 : f32 to vector<1x7x1x16xf32>
    %c0_292 = arith.constant 0 : index
    %c1_293 = arith.constant 1 : index
    %c17 = arith.constant 17 : index
    %c0_294 = arith.constant 0 : index
    %182 = vector.load %arg14[%c0_292, %c1_293, %c17, %c0_294] : memref<1x9x18x16xf32, #tpu.memory_space<vmem>>, vector<1x7x1x16xf32>
    tpu.vector_store %arg14[%c0_292, %c1_293, %c17, %c0_294], %181 {strides = array<i32>} : memref<1x9x18x16xf32, #tpu.memory_space<vmem>>, vector<1x7x1x16xf32>,
    %c0_295 = arith.constant 0 : index
    %c1_296 = arith.constant 1 : index
    %c1_297 = arith.constant 1 : index
    %c0_298 = arith.constant 0 : index
    %183 = vector.load %arg14[%c0_295, %c1_296, %c1_297, %c0_298] : memref<1x9x18x16xf32, #tpu.memory_space<vmem>>, vector<1x7x16x16xf32>
    tpu.vector_store %arg14[%c0_295, %c1_296, %c1_297, %c0_298], %174 {strides = array<i32>} : memref<1x9x18x16xf32, #tpu.memory_space<vmem>>, vector<1x7x16x16xf32>,
    %c0_299 = arith.constant 0 : index
    %c0_300 = arith.constant 0 : index
    %c0_301 = arith.constant 0 : index
    %c0_302 = arith.constant 0 : index
    %184 = vector.load %arg14[%c0_299, %c0_300, %c0_301, %c0_302] : memref<1x9x18x16xf32, #tpu.memory_space<vmem>>, vector<1x7x16x16xf32>
    %185 = arith.truncf %184 : vector<1x7x16x16xf32> to vector<1x7x16x16xbf16>
    %c0_303 = arith.constant 0 : index
    %c0_304 = arith.constant 0 : index
    %c0_305 = arith.constant 0 : index
    %c0_306 = arith.constant 0 : index
    %186 = vector.load %arg15[%c0_303, %c0_304, %c0_305, %c0_306] : memref<1x7x16x144xbf16, #tpu.memory_space<vmem>>, vector<1x7x16x16xbf16>
    tpu.vector_store %arg15[%c0_303, %c0_304, %c0_305, %c0_306], %185 {strides = array<i32>} : memref<1x7x16x144xbf16, #tpu.memory_space<vmem>>, vector<1x7x16x16xbf16>,
    %c0_307 = arith.constant 0 : index
    %c0_308 = arith.constant 0 : index
    %c1_309 = arith.constant 1 : index
    %c0_310 = arith.constant 0 : index
    %187 = vector.load %arg14[%c0_307, %c0_308, %c1_309, %c0_310] : memref<1x9x18x16xf32, #tpu.memory_space<vmem>>, vector<1x7x16x16xf32>
    %188 = arith.truncf %187 : vector<1x7x16x16xf32> to vector<1x7x16x16xbf16>
    %c0_311 = arith.constant 0 : index
    %c0_312 = arith.constant 0 : index
    %c0_313 = arith.constant 0 : index
    %c16_314 = arith.constant 16 : index
    %189 = vector.load %arg15[%c0_311, %c0_312, %c0_313, %c16_314] : memref<1x7x16x144xbf16, #tpu.memory_space<vmem>>, vector<1x7x16x16xbf16>
    tpu.vector_store %arg15[%c0_311, %c0_312, %c0_313, %c16_314], %188 {strides = array<i32>} : memref<1x7x16x144xbf16, #tpu.memory_space<vmem>>, vector<1x7x16x16xbf16>,
    %c0_315 = arith.constant 0 : index
    %c0_316 = arith.constant 0 : index
    %c2_317 = arith.constant 2 : index
    %c0_318 = arith.constant 0 : index
    %190 = vector.load %arg14[%c0_315, %c0_316, %c2_317, %c0_318] : memref<1x9x18x16xf32, #tpu.memory_space<vmem>>, vector<1x7x16x16xf32>
    %191 = arith.truncf %190 : vector<1x7x16x16xf32> to vector<1x7x16x16xbf16>
    %c0_319 = arith.constant 0 : index
    %c0_320 = arith.constant 0 : index
    %c0_321 = arith.constant 0 : index
    %c32_322 = arith.constant 32 : index
    %192 = vector.load %arg15[%c0_319, %c0_320, %c0_321, %c32_322] : memref<1x7x16x144xbf16, #tpu.memory_space<vmem>>, vector<1x7x16x16xbf16>
    tpu.vector_store %arg15[%c0_319, %c0_320, %c0_321, %c32_322], %191 {strides = array<i32>} : memref<1x7x16x144xbf16, #tpu.memory_space<vmem>>, vector<1x7x16x16xbf16>,
    %c0_323 = arith.constant 0 : index
    %c1_324 = arith.constant 1 : index
    %c0_325 = arith.constant 0 : index
    %c0_326 = arith.constant 0 : index
    %193 = vector.load %arg14[%c0_323, %c1_324, %c0_325, %c0_326] : memref<1x9x18x16xf32, #tpu.memory_space<vmem>>, vector<1x7x16x16xf32>
    %194 = arith.truncf %193 : vector<1x7x16x16xf32> to vector<1x7x16x16xbf16>
    %c0_327 = arith.constant 0 : index
    %c0_328 = arith.constant 0 : index
    %c0_329 = arith.constant 0 : index
    %c48_330 = arith.constant 48 : index
    %195 = vector.load %arg15[%c0_327, %c0_328, %c0_329, %c48_330] : memref<1x7x16x144xbf16, #tpu.memory_space<vmem>>, vector<1x7x16x16xbf16>
    tpu.vector_store %arg15[%c0_327, %c0_328, %c0_329, %c48_330], %194 {strides = array<i32>} : memref<1x7x16x144xbf16, #tpu.memory_space<vmem>>, vector<1x7x16x16xbf16>,
    %c0_331 = arith.constant 0 : index
    %c1_332 = arith.constant 1 : index
    %c1_333 = arith.constant 1 : index
    %c0_334 = arith.constant 0 : index
    %196 = vector.load %arg14[%c0_331, %c1_332, %c1_333, %c0_334] : memref<1x9x18x16xf32, #tpu.memory_space<vmem>>, vector<1x7x16x16xf32>
    %197 = arith.truncf %196 : vector<1x7x16x16xf32> to vector<1x7x16x16xbf16>
    %c0_335 = arith.constant 0 : index
    %c0_336 = arith.constant 0 : index
    %c0_337 = arith.constant 0 : index
    %c64_338 = arith.constant 64 : index
    %198 = vector.load %arg15[%c0_335, %c0_336, %c0_337, %c64_338] : memref<1x7x16x144xbf16, #tpu.memory_space<vmem>>, vector<1x7x16x16xbf16>
    tpu.vector_store %arg15[%c0_335, %c0_336, %c0_337, %c64_338], %197 {strides = array<i32>} : memref<1x7x16x144xbf16, #tpu.memory_space<vmem>>, vector<1x7x16x16xbf16>,
    %c0_339 = arith.constant 0 : index
    %c1_340 = arith.constant 1 : index
    %c2_341 = arith.constant 2 : index
    %c0_342 = arith.constant 0 : index
    %199 = vector.load %arg14[%c0_339, %c1_340, %c2_341, %c0_342] : memref<1x9x18x16xf32, #tpu.memory_space<vmem>>, vector<1x7x16x16xf32>
    %200 = arith.truncf %199 : vector<1x7x16x16xf32> to vector<1x7x16x16xbf16>
    %c0_343 = arith.constant 0 : index
    %c0_344 = arith.constant 0 : index
    %c0_345 = arith.constant 0 : index
    %c80_346 = arith.constant 80 : index
    %201 = vector.load %arg15[%c0_343, %c0_344, %c0_345, %c80_346] : memref<1x7x16x144xbf16, #tpu.memory_space<vmem>>, vector<1x7x16x16xbf16>
    tpu.vector_store %arg15[%c0_343, %c0_344, %c0_345, %c80_346], %200 {strides = array<i32>} : memref<1x7x16x144xbf16, #tpu.memory_space<vmem>>, vector<1x7x16x16xbf16>,
    %c0_347 = arith.constant 0 : index
    %c2_348 = arith.constant 2 : index
    %c0_349 = arith.constant 0 : index
    %c0_350 = arith.constant 0 : index
    %202 = vector.load %arg14[%c0_347, %c2_348, %c0_349, %c0_350] : memref<1x9x18x16xf32, #tpu.memory_space<vmem>>, vector<1x7x16x16xf32>
    %203 = arith.truncf %202 : vector<1x7x16x16xf32> to vector<1x7x16x16xbf16>
    %c0_351 = arith.constant 0 : index
    %c0_352 = arith.constant 0 : index
    %c0_353 = arith.constant 0 : index
    %c96_354 = arith.constant 96 : index
    %204 = vector.load %arg15[%c0_351, %c0_352, %c0_353, %c96_354] : memref<1x7x16x144xbf16, #tpu.memory_space<vmem>>, vector<1x7x16x16xbf16>
    tpu.vector_store %arg15[%c0_351, %c0_352, %c0_353, %c96_354], %203 {strides = array<i32>} : memref<1x7x16x144xbf16, #tpu.memory_space<vmem>>, vector<1x7x16x16xbf16>,
    %c0_355 = arith.constant 0 : index
    %c2_356 = arith.constant 2 : index
    %c1_357 = arith.constant 1 : index
    %c0_358 = arith.constant 0 : index
    %205 = vector.load %arg14[%c0_355, %c2_356, %c1_357, %c0_358] : memref<1x9x18x16xf32, #tpu.memory_space<vmem>>, vector<1x7x16x16xf32>
    %206 = arith.truncf %205 : vector<1x7x16x16xf32> to vector<1x7x16x16xbf16>
    %c0_359 = arith.constant 0 : index
    %c0_360 = arith.constant 0 : index
    %c0_361 = arith.constant 0 : index
    %c112_362 = arith.constant 112 : index
    %207 = vector.load %arg15[%c0_359, %c0_360, %c0_361, %c112_362] : memref<1x7x16x144xbf16, #tpu.memory_space<vmem>>, vector<1x7x16x16xbf16>
    tpu.vector_store %arg15[%c0_359, %c0_360, %c0_361, %c112_362], %206 {strides = array<i32>} : memref<1x7x16x144xbf16, #tpu.memory_space<vmem>>, vector<1x7x16x16xbf16>,
    %c0_363 = arith.constant 0 : index
    %c2_364 = arith.constant 2 : index
    %c2_365 = arith.constant 2 : index
    %c0_366 = arith.constant 0 : index
    %208 = vector.load %arg14[%c0_363, %c2_364, %c2_365, %c0_366] : memref<1x9x18x16xf32, #tpu.memory_space<vmem>>, vector<1x7x16x16xf32>
    %209 = arith.truncf %208 : vector<1x7x16x16xf32> to vector<1x7x16x16xbf16>
    %c0_367 = arith.constant 0 : index
    %c0_368 = arith.constant 0 : index
    %c0_369 = arith.constant 0 : index
    %c128_370 = arith.constant 128 : index
    %210 = vector.load %arg15[%c0_367, %c0_368, %c0_369, %c128_370] : memref<1x7x16x144xbf16, #tpu.memory_space<vmem>>, vector<1x7x16x16xbf16>
    tpu.vector_store %arg15[%c0_367, %c0_368, %c0_369, %c128_370], %209 {strides = array<i32>} : memref<1x7x16x144xbf16, #tpu.memory_space<vmem>>, vector<1x7x16x16xbf16>,
    %c0_371 = arith.constant 0 : index
    %c0_372 = arith.constant 0 : index
    %c0_373 = arith.constant 0 : index
    %c0_374 = arith.constant 0 : index
    %211 = vector.load %arg15[%c0_371, %c0_372, %c0_373, %c0_374] : memref<1x7x16x144xbf16, #tpu.memory_space<vmem>>, vector<1x7x16x144xbf16>
    %212 = vector.shape_cast %211 : vector<1x7x16x144xbf16> to vector<112x144xbf16>
    %c0_375 = arith.constant 0 : index
    %c0_376 = arith.constant 0 : index
    %213 = vector.load %arg6[%c0_375, %c0_376] : memref<144x8xbf16, #tpu.memory_space<vmem>>, vector<144x8xbf16>
    %cst_377 = arith.constant dense<0.000000e+00> : vector<112x8xf32>
    %214 = tpu.matmul %212, %213, %cst_377 {dimension_numbers = #tpu.dot_dimension_numbers<[1], [0], [0], [1], [0, 0, 1, 1], [], []>} : vector<112x144xbf16>, vector<144x8xbf16>, vector<112x8xf32> -> vector<112x8xf32>
    %c0_378 = arith.constant 0 : index
    %c0_379 = arith.constant 0 : index
    %215 = vector.load %arg7[%c0_378, %c0_379] : memref<1x8xf32, #tpu.memory_space<vmem>>, vector<1x8xf32>
    %216 = vector.broadcast %215 : vector<1x8xf32> to vector<112x8xf32>
    %217 = arith.addf %214, %216 : vector<112x8xf32>
    %cst_380 = arith.constant 0.000000e+00 : f32
    %218 = vector.broadcast %cst_380 : f32 to vector<112x8xf32>
    %219 = arith.maximumf %217, %218 : vector<112x8xf32>
    %220 = vector.shape_cast %219 : vector<112x8xf32> to vector<1x7x16x8xf32>
    %221 = vector.extract_strided_slice %220 {offsets = [0, 0, 0, 0], sizes = [1, 1, 16, 8], strides = [1, 1, 1, 1]} : vector<1x7x16x8xf32> to vector<1x1x16x8xf32>
    %222 = vector.shape_cast %221 : vector<1x1x16x8xf32> to vector<1x16x8xf32>
    %c0_381 = arith.constant 0 : index
    %c0_382 = arith.constant 0 : index
    %c0_383 = arith.constant 0 : index
    %c0_384 = arith.constant 0 : index
    %223 = vector.load %arg16[%c0_381, %c0_382, %c0_383, %c0_384] : memref<1x4x16x8xf32, #tpu.memory_space<vmem>>, vector<1x1x16x8xf32>
    %224 = vector.shape_cast %223 : vector<1x1x16x8xf32> to vector<1x16x8xf32>
    %225 = vector.shape_cast %222 : vector<1x16x8xf32> to vector<1x1x16x8xf32>
    tpu.vector_store %arg16[%c0_381, %c0_382, %c0_383, %c0_384], %225 {strides = array<i32>} : memref<1x4x16x8xf32, #tpu.memory_space<vmem>>, vector<1x1x16x8xf32>,
    %226 = vector.extract_strided_slice %220 {offsets = [0, 2, 0, 0], sizes = [1, 1, 16, 8], strides = [1, 1, 1, 1]} : vector<1x7x16x8xf32> to vector<1x1x16x8xf32>
    %227 = vector.shape_cast %226 : vector<1x1x16x8xf32> to vector<1x16x8xf32>
    %c0_385 = arith.constant 0 : index
    %c1_386 = arith.constant 1 : index
    %c0_387 = arith.constant 0 : index
    %c0_388 = arith.constant 0 : index
    %228 = vector.load %arg16[%c0_385, %c1_386, %c0_387, %c0_388] : memref<1x4x16x8xf32, #tpu.memory_space<vmem>>, vector<1x1x16x8xf32>
    %229 = vector.shape_cast %228 : vector<1x1x16x8xf32> to vector<1x16x8xf32>
    %230 = vector.shape_cast %227 : vector<1x16x8xf32> to vector<1x1x16x8xf32>
    tpu.vector_store %arg16[%c0_385, %c1_386, %c0_387, %c0_388], %230 {strides = array<i32>} : memref<1x4x16x8xf32, #tpu.memory_space<vmem>>, vector<1x1x16x8xf32>,
    %231 = vector.extract_strided_slice %220 {offsets = [0, 4, 0, 0], sizes = [1, 1, 16, 8], strides = [1, 1, 1, 1]} : vector<1x7x16x8xf32> to vector<1x1x16x8xf32>
    %232 = vector.shape_cast %231 : vector<1x1x16x8xf32> to vector<1x16x8xf32>
    %c0_389 = arith.constant 0 : index
    %c2_390 = arith.constant 2 : index
    %c0_391 = arith.constant 0 : index
    %c0_392 = arith.constant 0 : index
    %233 = vector.load %arg16[%c0_389, %c2_390, %c0_391, %c0_392] : memref<1x4x16x8xf32, #tpu.memory_space<vmem>>, vector<1x1x16x8xf32>
    %234 = vector.shape_cast %233 : vector<1x1x16x8xf32> to vector<1x16x8xf32>
    %235 = vector.shape_cast %232 : vector<1x16x8xf32> to vector<1x1x16x8xf32>
    tpu.vector_store %arg16[%c0_389, %c2_390, %c0_391, %c0_392], %235 {strides = array<i32>} : memref<1x4x16x8xf32, #tpu.memory_space<vmem>>, vector<1x1x16x8xf32>,
    %236 = vector.extract_strided_slice %220 {offsets = [0, 6, 0, 0], sizes = [1, 1, 16, 8], strides = [1, 1, 1, 1]} : vector<1x7x16x8xf32> to vector<1x1x16x8xf32>
    %237 = vector.shape_cast %236 : vector<1x1x16x8xf32> to vector<1x16x8xf32>
    %c0_393 = arith.constant 0 : index
    %c3_394 = arith.constant 3 : index
    %c0_395 = arith.constant 0 : index
    %c0_396 = arith.constant 0 : index
    %238 = vector.load %arg16[%c0_393, %c3_394, %c0_395, %c0_396] : memref<1x4x16x8xf32, #tpu.memory_space<vmem>>, vector<1x1x16x8xf32>
    %239 = vector.shape_cast %238 : vector<1x1x16x8xf32> to vector<1x16x8xf32>
    %240 = vector.shape_cast %237 : vector<1x16x8xf32> to vector<1x1x16x8xf32>
    tpu.vector_store %arg16[%c0_393, %c3_394, %c0_395, %c0_396], %240 {strides = array<i32>} : memref<1x4x16x8xf32, #tpu.memory_space<vmem>>, vector<1x1x16x8xf32>,
    %c0_397 = arith.constant 0 : index
    %c0_398 = arith.constant 0 : index
    %c0_399 = arith.constant 0 : index
    %c0_400 = arith.constant 0 : index
    %241 = vector.load %arg16[%c0_397, %c0_398, %c0_399, %c0_400] : memref<1x4x16x8xf32, #tpu.memory_space<vmem>>, vector<1x4x1x8xf32>
    %242 = vector.shape_cast %241 : vector<1x4x1x8xf32> to vector<1x4x8xf32>
    %c0_401 = arith.constant 0 : index
    %c0_402 = arith.constant 0 : index
    %c0_403 = arith.constant 0 : index
    %c0_404 = arith.constant 0 : index
    %243 = vector.load %arg8[%c0_401, %c0_402, %c0_403, %c0_404] : memref<1x4x4x8xf32, #tpu.memory_space<vmem>>, vector<1x4x1x8xf32>
    %244 = vector.shape_cast %243 : vector<1x4x1x8xf32> to vector<1x4x8xf32>
    %245 = vector.shape_cast %242 : vector<1x4x8xf32> to vector<1x4x1x8xf32>
    tpu.vector_store %arg8[%c0_401, %c0_402, %c0_403, %c0_404], %245 {strides = array<i32>} : memref<1x4x4x8xf32, #tpu.memory_space<vmem>>, vector<1x4x1x8xf32>,
    %c0_405 = arith.constant 0 : index
    %c0_406 = arith.constant 0 : index
    %c2_407 = arith.constant 2 : index
    %c0_408 = arith.constant 0 : index
    %246 = vector.load %arg16[%c0_405, %c0_406, %c2_407, %c0_408] : memref<1x4x16x8xf32, #tpu.memory_space<vmem>>, vector<1x4x1x8xf32>
    %247 = vector.shape_cast %246 : vector<1x4x1x8xf32> to vector<1x4x8xf32>
    %c0_409 = arith.constant 0 : index
    %c0_410 = arith.constant 0 : index
    %c1_411 = arith.constant 1 : index
    %c0_412 = arith.constant 0 : index
    %248 = vector.load %arg8[%c0_409, %c0_410, %c1_411, %c0_412] : memref<1x4x4x8xf32, #tpu.memory_space<vmem>>, vector<1x4x1x8xf32>
    %249 = vector.shape_cast %248 : vector<1x4x1x8xf32> to vector<1x4x8xf32>
    %250 = vector.shape_cast %247 : vector<1x4x8xf32> to vector<1x4x1x8xf32>
    tpu.vector_store %arg8[%c0_409, %c0_410, %c1_411, %c0_412], %250 {strides = array<i32>} : memref<1x4x4x8xf32, #tpu.memory_space<vmem>>, vector<1x4x1x8xf32>,
    %c0_413 = arith.constant 0 : index
    %c0_414 = arith.constant 0 : index
    %c4_415 = arith.constant 4 : index
    %c0_416 = arith.constant 0 : index
    %251 = vector.load %arg16[%c0_413, %c0_414, %c4_415, %c0_416] : memref<1x4x16x8xf32, #tpu.memory_space<vmem>>, vector<1x4x1x8xf32>
    %252 = vector.shape_cast %251 : vector<1x4x1x8xf32> to vector<1x4x8xf32>
    %c0_417 = arith.constant 0 : index
    %c0_418 = arith.constant 0 : index
    %c2_419 = arith.constant 2 : index
    %c0_420 = arith.constant 0 : index
    %253 = vector.load %arg8[%c0_417, %c0_418, %c2_419, %c0_420] : memref<1x4x4x8xf32, #tpu.memory_space<vmem>>, vector<1x4x1x8xf32>
    %254 = vector.shape_cast %253 : vector<1x4x1x8xf32> to vector<1x4x8xf32>
    %255 = vector.shape_cast %252 : vector<1x4x8xf32> to vector<1x4x1x8xf32>
    tpu.vector_store %arg8[%c0_417, %c0_418, %c2_419, %c0_420], %255 {strides = array<i32>} : memref<1x4x4x8xf32, #tpu.memory_space<vmem>>, vector<1x4x1x8xf32>,
    %c0_421 = arith.constant 0 : index
    %c0_422 = arith.constant 0 : index
    %c6_423 = arith.constant 6 : index
    %c0_424 = arith.constant 0 : index
    %256 = vector.load %arg16[%c0_421, %c0_422, %c6_423, %c0_424] : memref<1x4x16x8xf32, #tpu.memory_space<vmem>>, vector<1x4x1x8xf32>
    %257 = vector.shape_cast %256 : vector<1x4x1x8xf32> to vector<1x4x8xf32>
    %c0_425 = arith.constant 0 : index
    %c0_426 = arith.constant 0 : index
    %c3_427 = arith.constant 3 : index
    %c0_428 = arith.constant 0 : index
    %258 = vector.load %arg8[%c0_425, %c0_426, %c3_427, %c0_428] : memref<1x4x4x8xf32, #tpu.memory_space<vmem>>, vector<1x4x1x8xf32>
    %259 = vector.shape_cast %258 : vector<1x4x1x8xf32> to vector<1x4x8xf32>
    %260 = vector.shape_cast %257 : vector<1x4x8xf32> to vector<1x4x1x8xf32>
    tpu.vector_store %arg8[%c0_425, %c0_426, %c3_427, %c0_428], %260 {strides = array<i32>} : memref<1x4x4x8xf32, #tpu.memory_space<vmem>>, vector<1x4x1x8xf32>,
    return
  }
  func.func @transform_0(%arg0: i32) -> (i32, i32, i32, i32) {
    %c0_i32 = arith.constant 0 : i32
    %c0_i32_0 = arith.constant 0 : i32
    %c0_i32_1 = arith.constant 0 : i32
    %c0_i32_2 = arith.constant 0 : i32
    return %arg0, %c0_i32, %c0_i32_0, %c0_i32_1 : i32, i32, i32, i32
  }
  func.func @transform_1(%arg0: i32) -> (i32, i32) {
    %c0_i32 = arith.constant 0 : i32
    %c0_i32_0 = arith.constant 0 : i32
    %c0_i32_1 = arith.constant 0 : i32
    return %c0_i32, %c0_i32_0 : i32, i32
  }
  func.func @transform_2(%arg0: i32) -> (i32, i32) {
    %c0_i32 = arith.constant 0 : i32
    %c0_i32_0 = arith.constant 0 : i32
    %c0_i32_1 = arith.constant 0 : i32
    return %c0_i32, %c0_i32_0 : i32, i32
  }
  func.func @transform_3(%arg0: i32) -> (i32, i32) {
    %c0_i32 = arith.constant 0 : i32
    %c0_i32_0 = arith.constant 0 : i32
    %c0_i32_1 = arith.constant 0 : i32
    return %c0_i32, %c0_i32_0 : i32, i32
  }
  func.func @transform_4(%arg0: i32) -> (i32, i32) {
    %c0_i32 = arith.constant 0 : i32
    %c0_i32_0 = arith.constant 0 : i32
    %c0_i32_1 = arith.constant 0 : i32
    return %c0_i32, %c0_i32_0 : i32, i32
  }
  func.func @transform_5(%arg0: i32) -> (i32, i32) {
    %c0_i32 = arith.constant 0 : i32
    %c0_i32_0 = arith.constant 0 : i32
    %c0_i32_1 = arith.constant 0 : i32
    return %c0_i32, %c0_i32_0 : i32, i32
  }
  func.func @transform_6(%arg0: i32) -> (i32, i32) {
    %c0_i32 = arith.constant 0 : i32
    %c0_i32_0 = arith.constant 0 : i32
    %c0_i32_1 = arith.constant 0 : i32
    return %c0_i32, %c0_i32_0 : i32, i32
  }
  func.func @transform_7(%arg0: i32) -> (i32, i32, i32, i32) {
    %c0_i32 = arith.constant 0 : i32
    %c0_i32_0 = arith.constant 0 : i32
    %c0_i32_1 = arith.constant 0 : i32
    %c0_i32_2 = arith.constant 0 : i32
    return %arg0, %c0_i32, %c0_i32_0, %c0_i32_1 : i32, i32, i32, i32
  }
}

</mosaic_0001>

<bundles_post_ra>
// kernel: dilated_net_forward.1
= control target key start
LH: loop header
LB: loop body
LE: loop exit
PB: predicated region body
PF: predicated region fallthrough
CT: control target
= control target key end

     0   :  { %12 = vsyncpa [#allocation11], 0  ;;  %s5276_s0 = inlined_call_operand.vmem [shape: f32[2,16,16,4], index: 0, kind: input, shape index: {}]   ;;  %s5277_s1 = inlined_call_operand.vmem [shape: bf16[36,16], index: 1, kind: input, shape index: {}]   ;;  %s5278_s2 = inlined_call_operand.vmem [shape: f32[1,16], index: 2, kind: input, shape index: {}]   ;;  %s5279_s3 = inlined_call_operand.vmem [shape: bf16[144,16], index: 3, kind: input, shape index: {}]   ;;  %s5280_s4 = inlined_call_operand.vmem [shape: f32[1,16], index: 4, kind: input, shape index: {}]   ;;  %s5281_s5 = inlined_call_operand.vmem [shape: bf16[144,8], index: 5, kind: input, shape index: {}]   ;;  %s5282_s6 = inlined_call_operand.vmem [shape: f32[1,8], index: 6, kind: input, shape index: {}]   ;;  %s5283_s7 = inlined_call_operand.hbm [shape: f32[2,4,4,8], index: 7, kind: output, shape index: {}]  }
   0x1   :  { %14 = vsyncpa [#allocation11 + $0x1], 0  ;;  %s3786_s24 = smov 0   ;;  %s3788_s25 = smov 0  }
   0x2   :  { %s3790_s26 = smov 0   ;;  %s3792_s27 = smov 0  }
   0x3 LB: > { %s3807_s28 = sadd.s32 4294967295, %s3728_s27   ;;  %s3458_s29 = sadd.s32 4294967294, %s3728_s27   ;;  %s3728_s27 = sphi %s3792_s27, %s5289_s27   ;;  %s3724_s26 = sphi %s3790_s26, %s5288_s26   ;;  %s3720_s25 = sphi %s3788_s25, %s5287_s25   ;;  %s3716_s24 = sphi %s3786_s24, %s5286_s24  }
   0x4   : > { %s3811_s30 = sadd.s32 1, %s3728_s27   ;;  %s179_s8 = sadd.s32 1, %s3724_s26 }
   0x5   : > { %s176_s9 = ssub.s32 %s3728_s27, %s3811_s30  ;;  %p189_p0 = scmp.ne.s32.totalorder %s3724_s26, %s3720_s25 }
   0x6   : > { %p177_p1 = scmp.eq.s32.totalorder %s176_s9, 0  ;;  %p190_p2 = scmp.eq.s32.totalorder %s3807_s28, 1 }
   0x7   : > { %p195_p3 = scmp.ne.s32.totalorder %s3720_s25, %s3716_s24  ;;  %p196_p4 = scmp.eq.s32.totalorder %s3458_s29, 1 }
   0x8   : > { %s3822_s10 = scalar_select %p177_p1, %s3724_s26, %s179_s8  }
   0x9   : > { %p3824_p5 = por %p190_p2, %p189_p0  ;;  %p3828_p6 = por %p196_p4, %p195_p3 }
   0xa   : > { %p3461_p7 = scmp.ge.s32.totalorder %s3728_s27, 1  ;;  %p240_p8 = scmp.lt.s32.totalorder %s3728_s27, 3 }
   0xc   : > { %p241_p9 = pnand %p3461_p7, %p240_p8 }
   0xd   : > { %vm278_vm0 = vcmask (!%p241_p9), 31744   ;;  %vm282_vm1 = vcmask (!%p241_p9), 25600   ;;  %vm322_vm2 = vcmask (!%p241_p9), 28672   ;;  %v3730_v0 = vmov (!%p241_p9), 0.0   ;;  %p272_p10 = scmp.lt.s32.totalorder (!%p241_p9), %s3807_s28, 1  ;;  %s3731_s18 = smov (!%p241_p9), 4  }
   0xe   : > { %244 = sbr.rel (%p241_p9) target bundleno = 1438 (0x59e), region = 48  ;;  %279 = vst.msk [vmem:[#allocation2] sm:$0xff] (!%p241_p9), %vm278_vm0, %v3730_v0  ;;  %280 = vst.msk [vmem:[#allocation2 + $0x8] sm:$0xff] (!%p241_p9), %vm278_vm0, %v3730_v0  ;;  %s3732_s19 = smov (!%p241_p9), 8   ;;  %vm1608_vm3 = vcmask (!%p241_p9), 1041408   ;;  %vm595_vm4 = vcmask (!%p241_p9), 64544  }
   0xf   : > { %281 = vst.msk [vmem:[#allocation2 + $0x10] sm:$0xff] (!%p241_p9), %vm278_vm0, %v3730_v0  ;;  %284 = vst.msk [vmem:[#allocation2 + $0x20] sm:$0xff] (!%p241_p9), %vm278_vm0, %v3730_v0  ;;  %s3733_s20 = smov (!%p241_p9), 12   ;;  %s3734_s21 = smov (!%p241_p9), 16   ;;  %vm724_vm5 = vcmask (!%p241_p9), 97344   ;;  %vm853_vm6 = vcmask (!%p241_p9), 130144  }
  0x10   : > { %285 = vst.msk [vmem:[#allocation2 + $0x28] sm:$0xff] (!%p241_p9), %vm278_vm0, %v3730_v0  ;;  %286 = vst.msk [vmem:[#allocation2 + $0x30] sm:$0xff] (!%p241_p9), %vm278_vm0, %v3730_v0  ;;  %s3735_s22 = smov (!%p241_p9), 20   ;;  %s3736_s23 = smov (!%p241_p9), 24   ;;  %vm982_vm7 = vcmask (!%p241_p9), 162944   ;;  %vm1111_vm8 = vcmask (!%p241_p9), 195744  }
  0x11   : > { %288 = vst.msk [vmem:[#allocation2 + $0x40] sm:$0xff] (!%p241_p9), %vm278_vm0, %v3730_v0  ;;  %289 = vst.msk [vmem:[#allocation2 + $0x48] sm:$0xff] (!%p241_p9), %vm278_vm0, %v3730_v0  ;;  %s3737_s29 = smov (!%p241_p9), 28   ;;  %s3738_s8 = smov (!%p241_p9), 32   ;;  %vm1241_vm9 = vcmask (!%p241_p9), 228544   ;;  %vm1370_vm10 = vcmask (!%p241_p9), 261344  }
  0x12   : > { %290 = vst.msk [vmem:[#allocation2 + $0x50] sm:$0xff] (!%p241_p9), %vm278_vm0, %v3730_v0  ;;  %292 = vst.msk [vmem:[#allocation2 + $0x60] sm:$0xff] (!%p241_p9), %vm278_vm0, %v3730_v0  ;;  %vm1499_vm11 = vcmask (!%p241_p9), 294144   ;;  %vm1559_vm12 = vcmask (!%p241_p9), 293888   ;;  %vm1773_vm13 = vcmask (!%p241_p9), 130048   ;;  %vm1802_vm14 = vcmask (!%p241_p9), 122880  }
  0x13   : > { %293 = vst.msk [vmem:[#allocation2 + $0x68] sm:$0xff] (!%p241_p9), %vm278_vm0, %v3730_v0  ;;  %294 = vst.msk [vmem:[#allocation2 + $0x70] sm:$0xff] (!%p241_p9), %vm278_vm0, %v3730_v0  ;;  %vm1799_vm15 = vcmask (!%p241_p9), 123904   ;;  %s3745_s9 = smov (!%p241_p9), [#allocation10]  }
  0x14   : > { %296 = vst.msk [vmem:[#allocation2 + $0x80] sm:$0xff] (!%p241_p9), %vm278_vm0, %v3730_v0  ;;  %297 = vst.msk [vmem:[#allocation2 + $0x88] sm:$0xff] (!%p241_p9), %vm278_vm0, %v3730_v0 }
  0x15   : > { %298 = vst.msk [vmem:[#allocation2 + $0x90] sm:$0xff] %vm278_vm0, %v3730_v0  ;;  %301 = vst.msk [vmem:[#allocation2 + $0x2a0] sm:$0xff] %vm278_vm0, %v3730_v0  ;;  %s273_s13 = scalar_select %p272_p10, %s3807_s28, 1  ;;  %v483_v4 = vld [vmem:[#allocation2 + $0x5] sm:$0xff] }
  0x16   : > { %302 = vst.msk [vmem:[#allocation2 + $0x2a8] sm:$0xff] %vm278_vm0, %v3730_v0  ;;  %303 = vst.msk [vmem:[#allocation2 + $0x2b0] sm:$0xff] %vm278_vm0, %v3730_v0  ;;  %v484_v5 = vld [vmem:[#allocation2 + $0xd] sm:$0xff] }
  0x17   : > { %305 = vst.msk [vmem:[#allocation2 + $0x2c0] sm:$0xff] %vm278_vm0, %v3730_v0  ;;  %306 = vst.msk [vmem:[#allocation2 + $0x2c8] sm:$0xff] %vm278_vm0, %v3730_v0  ;;  %s3524_s14 = sshll.u32 %s273_s13, 8  ;;  %v485_v6 = vld [vmem:[#allocation2 + $0x25] sm:$0xff]  ;;  %v515_v7 = vpack.c.bf16 %v484_v5, %v483_v4  ;;  %v486_v8 = vld [vmem:[#allocation2 + $0x2d] sm:$0xff] }
  0x18   : > { %307 = vst.msk [vmem:[#allocation2 + $0x2d0] sm:$0xff] %vm278_vm0, %v3730_v0  ;;  %309 = vst.msk [vmem:[#allocation2 + $0x2e0] sm:$0xff] %vm278_vm0, %v3730_v0  ;;  %s3985_s17 = scalar_lea.vmem %s5276_s0, %s3524_s14  ;;  %v612_v9 = vld [vmem:[#allocation2 + $0xa] sm:$0xff]  ;;  %v516_v15 = vpack.c.bf16 %v486_v8, %v485_v6  ;;  %v419_v4 = vld [vmem:[#allocation2] sm:$0xff] }
  0x19   : > { %310 = vst.msk [vmem:[#allocation2 + $0x2e8] sm:$0xff] %vm278_vm0, %v3730_v0  ;;  %311 = vst.msk [vmem:[#allocation2 + $0x2f0] sm:$0xff] %vm278_vm0, %v3730_v0  ;;  %v355_v1 = vld [vmem:[%s3985_s17] sm:$0xff]  ;;  %v356_v2 = vld [vmem:[%s3985_s17 + $0x8] sm:$0xff]  ;;  %547 = vrot.lane.b32.xlu0 %v515_v7, %s3731_s18 }
  0x1a   : > { %313 = vst.msk [vmem:[#allocation2 + $0x300] sm:$0xff] %vm278_vm0, %v3730_v0  ;;  %314 = vst.msk [vmem:[#allocation2 + $0x308] sm:$0xff] %vm278_vm0, %v3730_v0  ;;  %v357_v3 = vld [vmem:[%s3985_s17 + $0x10] sm:$0xff]  ;;  %v358_v14 = vld [vmem:[%s3985_s17 + $0x18] sm:$0xff] }
  0x1b   : > { %315 = vst.msk [vmem:[#allocation2 + $0x310] sm:$0xff] %vm278_vm0, %v3730_v0  ;;  %317 = vst.msk [vmem:[#allocation2 + $0x320] sm:$0xff] %vm278_vm0, %v3730_v0  ;;  %v614_v12 = vld [vmem:[#allocation2 + $0x2a] sm:$0xff]  ;;  %v366_v17 = vld [vmem:[%s3985_s17 + $0x58] sm:$0xff] }
  0x1c   : > { %318 = vst.msk [vmem:[#allocation2 + $0x328] sm:$0xff] %vm278_vm0, %v3730_v0  ;;  %319 = vst.msk [vmem:[#allocation2 + $0x330] sm:$0xff] %vm278_vm0, %v3730_v0  ;;  %v365_v16 = vld [vmem:[%s3985_s17 + $0x50] sm:$0xff]  ;;  %v367_v18 = vld [vmem:[%s3985_s17 + $0x60] sm:$0xff] }
  0x1d   : > { %283 = vst.msk [vmem:[#allocation2 + $0x18] sm:$0x3] %vm282_vm1, %v3730_v0  ;;  %287 = vst.msk [vmem:[#allocation2 + $0x38] sm:$0x3] %vm282_vm1, %v3730_v0  ;;  %v368_v20 = vld [vmem:[%s3985_s17 + $0x68] sm:$0xff]  ;;  %v359_v21 = vld [vmem:[%s3985_s17 + $0x20] sm:$0xff]  ;;  %549 = vrot.lane.b32.xlu0 %v516_v15, %s3731_s18 }
  0x1e   : > { %291 = vst.msk [vmem:[#allocation2 + $0x58] sm:$0x3] %vm282_vm1, %v3730_v0  ;;  %295 = vst.msk [vmem:[#allocation2 + $0x78] sm:$0x3] %vm282_vm1, %v3730_v0  ;;  %v360_v22 = vld [vmem:[%s3985_s17 + $0x28] sm:$0xff]  ;;  %v361_v44 = vld [vmem:[%s3985_s17 + $0x30] sm:$0xff] }
  0x1f   : > { %299 = vst.msk [vmem:[#allocation2 + $0x98] sm:$0x3] %vm282_vm1, %v3730_v0  ;;  %304 = vst.msk [vmem:[#allocation2 + $0x2b8] sm:$0x3] %vm282_vm1, %v3730_v0  ;;  %v362_v45 = vld [vmem:[%s3985_s17 + $0x38] sm:$0xff]  ;;  %v369_v47 = vld [vmem:[%s3985_s17 + $0x70] sm:$0xff] }
  0x20   : > { %308 = vst.msk [vmem:[#allocation2 + $0x2d8] sm:$0x3] %vm282_vm1, %v3730_v0  ;;  %312 = vst.msk [vmem:[#allocation2 + $0x2f8] sm:$0x3] %vm282_vm1, %v3730_v0  ;;  %v370_v48 = vld [vmem:[%s3985_s17 + $0x78] sm:$0xff]  ;;  %v371_v51 = vld [vmem:[%s3985_s17 + $0x80] sm:$0xff] }
  0x21   : > { %316 = vst.msk [vmem:[#allocation2 + $0x318] sm:$0x3] %vm282_vm1, %v3730_v0  ;;  %320 = vst.msk [vmem:[#allocation2 + $0x338] sm:$0x3] %vm282_vm1, %v3730_v0  ;;  %v372_v52 = vld [vmem:[%s3985_s17 + $0x88] sm:$0xff]  ;;  %v363_v57 = vld [vmem:[%s3985_s17 + $0x40] sm:$0xff] }
  0x22   : > { %323 = vst.msk [vmem:[#allocation2 + $0xa0] sm:$0x1f] %vm322_vm2, %v3730_v0  ;;  %324 = vst.msk [vmem:[#allocation2 + $0xc0] sm:$0x1f] %vm322_vm2, %v3730_v0  ;;  %v364_v58 = vld [vmem:[%s3985_s17 + $0x48] sm:$0xff]  ;;  %v373_v59 = vld [vmem:[%s3985_s17 + $0x90] sm:$0xff] }
  0x23   : > { %325 = vst.msk [vmem:[#allocation2 + $0xe0] sm:$0x1f] %vm322_vm2, %v3730_v0  ;;  %326 = vst.msk [vmem:[#allocation2 + $0x100] sm:$0x1f] %vm322_vm2, %v3730_v0  ;;  %v374_v62 = vld [vmem:[%s3985_s17 + $0x98] sm:$0xff]  ;;  %v375_v63 = vld [vmem:[%s3985_s17 + $0xa0] sm:$0xff] }
  0x24   : > { %327 = vst.msk [vmem:[#allocation2 + $0x120] sm:$0x1f] %vm322_vm2, %v3730_v0  ;;  %328 = vst.msk [vmem:[#allocation2 + $0x140] sm:$0x1f] %vm322_vm2, %v3730_v0  ;;  %v613_v10 = vld [vmem:[#allocation2 + $0x12] sm:$0xff]  ;;  %v421_v8 = vld [vmem:[#allocation2 + $0x20] sm:$0xff] }
  0x25   : > { %329 = vst.msk [vmem:[#allocation2 + $0x160] sm:$0x1f] %vm322_vm2, %v3730_v0  ;;  %330 = vst.msk [vmem:[#allocation2 + $0x180] sm:$0x1f] %vm322_vm2, %v3730_v0  ;;  %v644_v11 = vpack.c.bf16 %v613_v10, %v612_v9  ;;  %v615_v13 = vld [vmem:[#allocation2 + $0x32] sm:$0xff]  ;;  %v422_v9 = vld [vmem:[#allocation2 + $0x28] sm:$0xff] }
  0x26   : > { %331 = vst.msk [vmem:[#allocation2 + $0x1a0] sm:$0x1f] %vm322_vm2, %v3730_v0  ;;  %332 = vst.msk [vmem:[#allocation2 + $0x1c0] sm:$0x1f] %vm322_vm2, %v3730_v0  ;;  %v645_v19 = vpack.c.bf16 %v615_v13, %v614_v12  ;;  %v377_v5 = vld [vmem:[%s3985_s17 + $0xb0] sm:$0xff]  ;;  %v378_v7 = vld [vmem:[%s3985_s17 + $0xb8] sm:$0xff] }
  0x27   : > { %333 = vst.msk [vmem:[#allocation2 + $0x1e0] sm:$0x1f] %vm322_vm2, %v3730_v0  ;;  %334 = vst.msk [vmem:[#allocation2 + $0x200] sm:$0x1f] %vm322_vm2, %v3730_v0  ;;  %676 = vrot.lane.b32.xlu1 %v644_v11, %s3732_s19  ;;  %v452_v11 = vpack.c.bf16 %v422_v9, %v421_v8  ;;  %v487_v12 = vld [vmem:[#allocation2 + $0x45] sm:$0xff]  ;;  %v488_v13 = vld [vmem:[#allocation2 + $0x4d] sm:$0xff] }
  0x28   : > { %335 = vst.msk [vmem:[#allocation2 + $0x220] sm:$0x1f] %vm322_vm2, %v3730_v0  ;;  %336 = vst.msk [vmem:[#allocation2 + $0x240] sm:$0x1f] %vm322_vm2, %v3730_v0  ;;  %vm2089_vm1 = vcmask 392448  }
  0x29   : > { %337 = vst.msk [vmem:[#allocation2 + $0x260] sm:$0x1f] %vm322_vm2, %v3730_v0  ;;  %338 = vst.msk [vmem:[#allocation2 + $0x280] sm:$0x1f] %vm322_vm2, %v3730_v0 }
  0x2a   : > { %339 = vst.msk [vmem:[#allocation2 + $0xb5] sm:$0x1f] %vm322_vm2, %v3730_v0  ;;  %340 = vst.msk [vmem:[#allocation2 + $0xd5] sm:$0x1f] %vm322_vm2, %v3730_v0 }
  0x2b   : > { %341 = vst.msk [vmem:[#allocation2 + $0xf5] sm:$0x1f] %vm322_vm2, %v3730_v0  ;;  %342 = vst.msk [vmem:[#allocation2 + $0x115] sm:$0x1f] %vm322_vm2, %v3730_v0  ;;  %678 = vrot.lane.b32.xlu1 %v645_v19, %s3732_s19  ;;  %v490_v19 = vld [vmem:[#allocation2 + $0x6d] sm:$0xff] }
  0x2c   : > { %343 = vst.msk [vmem:[#allocation2 + $0x135] sm:$0x1f] %vm322_vm2, %v3730_v0  ;;  %344 = vst.msk [vmem:[#allocation2 + $0x155] sm:$0x1f] %vm322_vm2, %v3730_v0 }
  0x2d   : > { %345 = vst.msk [vmem:[#allocation2 + $0x175] sm:$0x1f] %vm322_vm2, %v3730_v0  ;;  %346 = vst.msk [vmem:[#allocation2 + $0x195] sm:$0x1f] %vm322_vm2, %v3730_v0 }
  0x2e   : > { %347 = vst.msk [vmem:[#allocation2 + $0x1b5] sm:$0x1f] %vm322_vm2, %v3730_v0  ;;  %348 = vst.msk [vmem:[#allocation2 + $0x1d5] sm:$0x1f] %vm322_vm2, %v3730_v0 }
  0x2f   : > { %349 = vst.msk [vmem:[#allocation2 + $0x1f5] sm:$0x1f] %vm322_vm2, %v3730_v0  ;;  %350 = vst.msk [vmem:[#allocation2 + $0x215] sm:$0x1f] %vm322_vm2, %v3730_v0 }
  0x30   : > { %351 = vst.msk [vmem:[#allocation2 + $0x235] sm:$0x1f] %vm322_vm2, %v3730_v0  ;;  %352 = vst.msk [vmem:[#allocation2 + $0x255] sm:$0x1f] %vm322_vm2, %v3730_v0 }
  0x31   : > { %353 = vst.msk [vmem:[#allocation2 + $0x275] sm:$0x1f] %vm322_vm2, %v3730_v0  ;;  %354 = vst.msk [vmem:[#allocation2 + $0x295] sm:$0x1f] %vm322_vm2, %v3730_v0  ;;  %vm2146_vm2 = vcmask 523648  }
  0x32   : > { %387 = vst.msk [vmem:[#allocation2 + $0xa5] sm:$0xff] %vm278_vm0, %v355_v1  ;;  %388 = vst.msk [vmem:[#allocation2 + $0xad] sm:$0xff] %vm278_vm0, %v356_v2  ;;  %v376_v1 = vld [vmem:[%s3985_s17 + $0xa8] sm:$0xff] }
  0x33   : > { %389 = vst.msk [vmem:[#allocation2 + $0xc5] sm:$0xff] %vm278_vm0, %v357_v3  ;;  %390 = vst.msk [vmem:[#allocation2 + $0xcd] sm:$0xff] %vm278_vm0, %v358_v14  ;;  %v420_v3 = vld [vmem:[#allocation2 + $0x8] sm:$0xff] }
  0x34   : > { %397 = vst.msk [vmem:[#allocation2 + $0x145] sm:$0xff] %vm278_vm0, %v365_v16  ;;  %398 = vst.msk [vmem:[#allocation2 + $0x14d] sm:$0xff] %vm278_vm0, %v366_v17  ;;  %v451_v6 = vpack.c.bf16 %v420_v3, %v419_v4  ;;  %v517_v17 = vpack.c.bf16 %v488_v13, %v487_v12 }
  0x35   : > { %399 = vst.msk [vmem:[#allocation2 + $0x165] sm:$0xff] %vm278_vm0, %v367_v18  ;;  %400 = vst.msk [vmem:[#allocation2 + $0x16d] sm:$0xff] %vm278_vm0, %v368_v20  ;;  %v489_v18 = vld [vmem:[#allocation2 + $0x65] sm:$0xff] }
  0x36   : > { %391 = vst.msk [vmem:[#allocation2 + $0xe5] sm:$0xff] %vm278_vm0, %v359_v21  ;;  %392 = vst.msk [vmem:[#allocation2 + $0xed] sm:$0xff] %vm278_vm0, %v360_v22  ;;  %v616_v21 = vld [vmem:[#allocation2 + $0x4a] sm:$0xff]  ;;  %v617_v22 = vld [vmem:[#allocation2 + $0x52] sm:$0xff] }
  0x37   : > { %393 = vst.msk [vmem:[#allocation2 + $0x105] sm:$0xff] %vm278_vm0, %v361_v44  ;;  %394 = vst.msk [vmem:[#allocation2 + $0x10d] sm:$0xff] %vm278_vm0, %v362_v45  ;;  %v3646_v44 = vld [vmem:[%s5277_s1 + $0x8] sm:$0xff]   ;;  %v381_v45 = vld [vmem:[%s3985_s17 + $0xd0] sm:$0xff] }
  0x38   : > { %401 = vst.msk [vmem:[#allocation2 + $0x185] sm:$0xff] %vm278_vm0, %v369_v47  ;;  %402 = vst.msk [vmem:[#allocation2 + $0x18d] sm:$0xff] %vm278_vm0, %v370_v48  ;;  %v423_v48 = vld [vmem:[#allocation2 + $0x40] sm:$0xff] }
  0x39   : > { %v741_v23 = vld [vmem:[#allocation2 + $0xa0] sm:$0xff]  ;;  %v742_v24 = vld [vmem:[#allocation2 + $0xa8] sm:$0xff]  ;;  %v1000_v35 = vld [vmem:[#allocation2 + $0xb2] sm:$0xff]  ;;  %403 = vst.msk [vmem:[#allocation2 + $0x1a5] sm:$0xff] %vm278_vm0, %v371_v51 }
  0x3a   : > { %v773_v25 = vpack.c.bf16 %v742_v24, %v741_v23  ;;  %v870_v26 = vld [vmem:[#allocation2 + $0xa5] sm:$0xff]  ;;  %v871_v27 = vld [vmem:[#allocation2 + $0xad] sm:$0xff]  ;;  %404 = vst.msk [vmem:[#allocation2 + $0x1ad] sm:$0xff] %vm278_vm0, %v372_v52  ;;  %395 = vst.msk [vmem:[#allocation2 + $0x125] sm:$0xff] %vm278_vm0, %v363_v57  ;;  %v518_v23 = vpack.c.bf16 %v490_v19, %v489_v18 }
  0x3b   : > { %v743_v28 = vld [vmem:[#allocation2 + $0xc0] sm:$0xff]  ;;  %v744_v29 = vld [vmem:[#allocation2 + $0xc8] sm:$0xff]  ;;  %v4012_v32 = vpack.c.bf16 %v871_v27, %v870_v26  ;;  %v1002_v38 = vld [vmem:[#allocation2 + $0xd2] sm:$0xff]  ;;  %396 = vst.msk [vmem:[#allocation2 + $0x12d] sm:$0xff] %vm278_vm0, %v364_v58  ;;  %v646_v26 = vpack.c.bf16 %v617_v22, %v616_v21 }
  0x3c   : > { %v872_v30 = vld [vmem:[#allocation2 + $0xc5] sm:$0xff]  ;;  %v873_v31 = vld [vmem:[#allocation2 + $0xcd] sm:$0xff]  ;;  %805 = vrot.lane.b32.xlu0 %v773_v25, %s3733_s20  ;;  %v774_v33 = vpack.c.bf16 %v744_v29, %v743_v28  ;;  %405 = vst.msk [vmem:[#allocation2 + $0x1c5] sm:$0xff] %vm278_vm0, %v373_v59  ;;  %406 = vst.msk [vmem:[#allocation2 + $0x1cd] sm:$0xff] %vm278_vm0, %v374_v62 }
  0x3d   : > { %v999_v34 = vld [vmem:[#allocation2 + $0xaa] sm:$0xff]  ;;  %v4015_v36 = vpack.c.bf16 %v873_v31, %v872_v30  ;;  %v1129_v40 = vld [vmem:[#allocation2 + $0x140] sm:$0xff]  ;;  %v1388_v61 = vld [vmem:[#allocation2 + $0x152] sm:$0xff]  ;;  %407 = vst.msk [vmem:[#allocation2 + $0x1e5] sm:$0xff] %vm278_vm0, %v375_v63 }
  0x3e   : > { %807 = vrot.lane.b32.xlu1 %v774_v33, %s3733_s20  ;;  %v1001_v37 = vld [vmem:[#allocation2 + $0xca] sm:$0xff]  ;;  %v4019_v39 = vpack.c.bf16 %v1000_v35, %v999_v34  ;;  %v1131_v43 = vld [vmem:[#allocation2 + $0x160] sm:$0xff]  ;;  %408 = vst.msk [vmem:[#allocation2 + $0x1ed] sm:$0xff] %vm278_vm0, %v376_v1  ;;  %409 = vst.msk [vmem:[#allocation2 + $0x205] sm:$0xff] %vm278_vm0, %v377_v5 }
  0x3f   : > { %v1130_v41 = vld [vmem:[#allocation2 + $0x148] sm:$0xff]  ;;  %v4023_v42 = vpack.c.bf16 %v1002_v38, %v1001_v37  ;;  %410 = vst.msk [vmem:[#allocation2 + $0x20d] sm:$0xff] %vm278_vm0, %v378_v7  ;;  %467 = vst.msk [vmem:[#allocation3] sm:$0xff] %vm278_vm0, %v451_v6  ;;  %v1390_v16 = vld [vmem:[#allocation2 + $0x172] sm:$0xff] }
  0x40   : > { %934 = vrot.lane.b32.xlu0 %v4012_v32, %s3734_s21  ;;  %v1132_v46 = vld [vmem:[#allocation2 + $0x168] sm:$0xff]  ;;  %v4033_v49 = vpack.c.bf16 %v1130_v41, %v1129_v40  ;;  %468 = vst.msk [vmem:[#allocation3 + $0x8] sm:$0xff] %vm278_vm0, %v452_v11  ;;  %v619_v25 = vld [vmem:[#allocation2 + $0x72] sm:$0xff]  ;;  %v745_v27 = vld [vmem:[#allocation2 + $0xe0] sm:$0xff] }
  0x41   : > { %v1258_v50 = vld [vmem:[#allocation2 + $0x145] sm:$0xff]  ;;  %v1259_v53 = vld [vmem:[#allocation2 + $0x14d] sm:$0xff]  ;;  %v4043_v56 = vpack.c.bf16 %v1132_v46, %v1131_v43  ;;  %v382_v46 = vld [vmem:[%s3985_s17 + $0xd8] sm:$0xff]  ;;  %413 = vst.msk [vmem:[#allocation2 + $0x245] sm:$0xff] %vm278_vm0, %v381_v45 }
  0x42   : > { %936 = vrot.lane.b32.xlu1 %v4015_v36, %s3734_s21  ;;  %v1260_v54 = vld [vmem:[#allocation2 + $0x165] sm:$0xff]  ;;  %v1261_v55 = vld [vmem:[#allocation2 + $0x16d] sm:$0xff]  ;;  %v4056_v2 = vpack.c.bf16 %v1259_v53, %v1258_v50  ;;  %414 = vst.msk [vmem:[#allocation2 + $0x24d] sm:$0xff] %vm278_vm0, %v382_v46  ;;  %v386_v63 = vld [vmem:[%s3985_s17 + $0xf8] sm:$0xff] }
  0x43   : > { %v1387_v60 = vld [vmem:[#allocation2 + $0x14a] sm:$0xff]  ;;  %v4066_v10 = vpack.c.bf16 %v1261_v55, %v1260_v54  ;;  %v747_v30 = vld [vmem:[#allocation2 + $0x100] sm:$0xff]  ;;  %v1004_v53 = vld [vmem:[#allocation2 + $0xf2] sm:$0xff]  ;;  %418 = vst.msk [vmem:[#allocation2 + $0x28d] sm:$0xff] %vm278_vm0, %v386_v63 }
  0x44   : > { %1063 = vrot.lane.b32.xlu0 %v4019_v39, %s3735_s22  ;;  %v4072_v14 = vpack.c.bf16 %v1388_v61, %v1387_v60  ;;  %v1389_v15 = vld [vmem:[#allocation2 + $0x16a] sm:$0xff]  ;;  %v379_v33 = vld [vmem:[%s3985_s17 + $0xc0] sm:$0xff]  ;;  %v1006_v4 = vld [vmem:[#allocation2 + $0x112] sm:$0xff]  ;;  %1797 = vst.msk [vmem:[#allocation5] sm:$0xff] %vm1773_vm13, %v3730_v0 }
  0x45   : > { %v4079_v20 = vpack.c.bf16 %v1390_v16, %v1389_v15  ;;  %v618_v24 = vld [vmem:[#allocation2 + $0x6a] sm:$0xff]  ;;  %411 = vst.msk [vmem:[#allocation2 + $0x225] sm:$0xff] %vm278_vm0, %v379_v33  ;;  %v3645_v40 = vld [vmem:[%s5277_s1] sm:$0xff]  }
  0x46   : > { %1065 = vrot.lane.b32.xlu1 %v4023_v42, %s3735_s22  ;;  %v746_v28 = vld [vmem:[#allocation2 + $0xe8] sm:$0xff]  ;;  %v647_v29 = vpack.c.bf16 %v619_v25, %v618_v24  ;;  %3545 = vmatprep.subr.bf16.mxu0 %v3645_v40  ;;  %v3647_v51 = vld [vmem:[%s5277_s1 + $0x10] ss:$0 sps:$4 sm:$0x33]   ;;  %v425_v55 = vld [vmem:[#allocation2 + $0x60] sm:$0xff]  ;;  %1798 = vst.msk [vmem:[#allocation5 + $0x8] sm:$0xff] %vm1773_vm13, %v3730_v0 }
  0x47   : > { %v748_v31 = vld [vmem:[#allocation2 + $0x108] sm:$0xff]  ;;  %v775_v35 = vpack.c.bf16 %v746_v28, %v745_v27  ;;  %3546 = vmatpush3.bf16.msra.mxu0 %v3645_v40  ;;  %v383_v58 = vld [vmem:[%s3985_s17 + $0xe0] sm:$0xff]  ;;  %3583 = vmatprep.subr.bf16.mxu1 %v3645_v40  ;;  %v385_v62 = vld [vmem:[%s3985_s17 + $0xf0] sm:$0xff]  ;;  %v1610_v6 = vsel %vm1608_vm3, %v3647_v51, 0  ;;  %1811 = vst.msk [vmem:[#allocation5 + $0x21] sm:$0xff] %vm1773_vm13, %v3730_v0 }
  0x48   : > { %1193 = vrot.lane.b32.xlu0 %v4033_v49, %s3736_s23  ;;  %v380_v34 = vld [vmem:[%s3985_s17 + $0xc8] sm:$0xff]  ;;  %v776_v47 = vpack.c.bf16 %v748_v31, %v747_v30  ;;  %3547 = vmatprep.subr.bf16.mxu0 %v3646_v44  ;;  %415 = vst.msk [vmem:[#allocation2 + $0x265] sm:$0xff] %vm278_vm0, %v383_v58  ;;  %417 = vst.msk [vmem:[#allocation2 + $0x285] sm:$0xff] %vm278_vm0, %v385_v62  ;;  %v1133_v7 = vld [vmem:[#allocation2 + $0x180] sm:$0xff] }
  0x49   : > { %v874_v37 = vld [vmem:[#allocation2 + $0xe5] sm:$0xff]  ;;  %v875_v38 = vld [vmem:[#allocation2 + $0xed] sm:$0xff]  ;;  %412 = vst.msk [vmem:[#allocation2 + $0x22d] sm:$0xff] %vm278_vm0, %v380_v34  ;;  %3586 = vmatpush3.bf16.msra.mxu1 %v3645_v40 }
  0x4a   : > { %1195 = vrot.lane.b32.xlu1 %v4043_v56, %s3736_s23  ;;  %v876_v41 = vld [vmem:[#allocation2 + $0x105] sm:$0xff]  ;;  %v877_v43 = vld [vmem:[#allocation2 + $0x10d] sm:$0xff]  ;;  %v4106_v59 = vpack.c.bf16 %v875_v38, %v874_v37  ;;  %3584 = vmatprep.subr.bf16.mxu1 %v3646_v44  ;;  %1813 = vst.msk [vmem:[#allocation5 + $0x39] sm:$0xff] %vm1773_vm13, %v3730_v0  ;;  %1815 = vst.msk [vmem:[#allocation5 + $0x51] sm:$0xff] %vm1773_vm13, %v3730_v0 }
  0x4b   : > { %v424_v50 = vld [vmem:[#allocation2 + $0x48] sm:$0xff]  ;;  %v4115_v1 = vpack.c.bf16 %v877_v43, %v876_v41  ;;  %3548 = vmatpush3.bf16.msra.mxu0 %v3646_v44  ;;  %v1135_v11 = vld [vmem:[#allocation2 + $0x1a0] sm:$0xff]  ;;  %v1394_v37 = vld [vmem:[#allocation2 + $0x1b2] sm:$0xff]  ;;  %1817 = vst.msk [vmem:[#allocation5 + $0x69] sm:$0xff] %vm1773_vm13, %v3730_v0 }
  0x4c   : > { %1322 = vrot.lane.b32.xlu0 %v4056_v2, %s3737_s29  ;;  %v1003_v52 = vld [vmem:[#allocation2 + $0xea] sm:$0xff]  ;;  %v453_v54 = vpack.c.bf16 %v424_v50, %v423_v48  ;;  %3589 = vmatprep.subr.msk.bf16.mxu0 %vm1608_vm3, %v3647_v51  ;;  %v427_v21 = vld [vmem:[#allocation2 + $0x80] sm:$0xff]  ;;  %v621_v43 = vld [vmem:[#allocation2 + $0x92] sm:$0xff]  ;;  %1819 = vst.msk [vmem:[#allocation5 + $0x81] sm:$0xff] %vm1773_vm13, %v3730_v0 }
  0x4d   : > { %v426_v57 = vld [vmem:[#allocation2 + $0x68] sm:$0xff]  ;;  %v4122_v5 = vpack.c.bf16 %v1004_v53, %v1003_v52  ;;  %3587 = vmatpush3.bf16.msra.mxu1 %v3646_v44  ;;  %v429_v30 = vld [vmem:[#allocation2 + $0xa0] sm:$0xff]  ;;  %v1008_v53 = vld [vmem:[#allocation2 + $0x132] sm:$0xff]  ;;  %1821 = vst.msk [vmem:[#allocation5 + $0x99] sm:$0xff] %vm1773_vm13, %v3730_v0 }
  0x4e   : > { %1324 = vrot.lane.b32.xlu1 %v4066_v10, %s3737_s29  ;;  %v454_v60 = vpack.c.bf16 %v426_v57, %v425_v55  ;;  %v384_v61 = vld [vmem:[%s3985_s17 + $0xe8] sm:$0xff]  ;;  %469 = vst.msk [vmem:[#allocation3 + $0x10] sm:$0xff] %vm278_vm0, %v453_v54  ;;  %3590 = vmatprep.subr.msk.bf16.mxu1 %vm1608_vm3, %v3647_v51  ;;  %v749_v45 = vld [vmem:[#allocation2 + $0x120] sm:$0xff]  ;;  %vm2203_vm3 = vcmask 654848   ;;  %s3743_s17 = smov 112  }
  0x4f   : > { %416 = vst.msk [vmem:[#allocation2 + $0x26d] sm:$0xff] %vm278_vm0, %v384_v61  ;;  %v1005_v3 = vld [vmem:[#allocation2 + $0x10a] sm:$0xff]  ;;  %3550 = vmatpush3.bf16.msra.mxu0 %v1610_v6  ;;  %v1137_v54 = vld [vmem:[#allocation2 + $0x1c0] sm:$0xff] }
  0x50   : > { %1451 = vrot.lane.b32.xlu0 %v4072_v14, %s3738_s8  ;;  %470 = vst.msk [vmem:[#allocation3 + $0x18] sm:$0xff] %vm278_vm0, %v454_v60  ;;  %v1134_v8 = vld [vmem:[#allocation2 + $0x188] sm:$0xff]  ;;  %v4128_v9 = vpack.c.bf16 %v1006_v4, %v1005_v3  ;;  %v431_v62 = vld [vmem:[#allocation2 + $0xc0] sm:$0xff] }
  0x51   : > { %v1136_v12 = vld [vmem:[#allocation2 + $0x1a8] sm:$0xff]  ;;  %v4133_v13 = vpack.c.bf16 %v1134_v8, %v1133_v7  ;;  %3588 = vmatpush3.bf16.msra.mxu1 %v1610_v6  ;;  %1823 = vst.msk [vmem:[#allocation5 + $0xb1] sm:$0xff] %vm1773_vm13, %v3730_v0  ;;  %1825 = vst.msk [vmem:[#allocation5 + $0xc9] sm:$0xff] %vm1773_vm13, %v3730_v0 }
  0x52   : > { %551 = vrot.lane.b32.xlu1 %v517_v17, %s3731_s18  ;;  %v1262_v15 = vld [vmem:[#allocation2 + $0x185] sm:$0xff]  ;;  %v1263_v16 = vld [vmem:[#allocation2 + $0x18d] sm:$0xff]  ;;  %v4137_v19 = vpack.c.bf16 %v1136_v12, %v1135_v11  ;;  %2647 = vst.msk [vmem:[#allocation7] sm:$0xff] %vm1773_vm13, %v3730_v0  ;;  %2648 = vst.msk [vmem:[#allocation7 + $0x8] sm:$0xff] %vm1773_vm13, %v3730_v0 }
  0x53   : > { %v1264_v17 = vld [vmem:[#allocation2 + $0x1a5] sm:$0xff]  ;;  %v1265_v18 = vld [vmem:[#allocation2 + $0x1ad] sm:$0xff]  ;;  %v4141_v24 = vpack.c.bf16 %v1263_v16, %v1262_v15  ;;  %2651 = vst.msk [vmem:[#allocation7 + $0xc0] sm:$0xff] %vm1773_vm13, %v3730_v0  ;;  %2652 = vst.msk [vmem:[#allocation7 + $0xc8] sm:$0xff] %vm1773_vm13, %v3730_v0 }
  0x54   : > { %1453 = vrot.lane.b32.xlu0 %v4079_v20, %s3738_s8  ;;  %v428_v22 = vld [vmem:[#allocation2 + $0x88] sm:$0xff]  ;;  %v1396_v11 = vld [vmem:[#allocation2 + $0x1d2] sm:$0xff]  ;;  %v433_v15 = vld [vmem:[#allocation2 + $0xe0] sm:$0xff]  ;;  %2670 = vst.msk [vmem:[#allocation7 + $0x21] sm:$0xff] %vm1773_vm13, %v3730_v0 }
  0x55   : > { %v1391_v25 = vld [vmem:[#allocation2 + $0x18a] sm:$0xff]  ;;  %2672 = vst.msk [vmem:[#allocation7 + $0x39] sm:$0xff] %vm1773_vm13, %v3730_v0  ;;  %2674 = vst.msk [vmem:[#allocation7 + $0x51] sm:$0xff] %vm1773_vm13, %v3730_v0 }
  0x56   : > { %553 = vrot.lane.b32.xlu1 %v518_v23, %s3731_s18  ;;  %v455_v23 = vpack.c.bf16 %v428_v22, %v427_v21  ;;  %v491_v27 = vld [vmem:[#allocation2 + $0x85] sm:$0xff]  ;;  %v492_v28 = vld [vmem:[#allocation2 + $0x8d] sm:$0xff]  ;;  %2676 = vst.msk [vmem:[#allocation7 + $0x69] sm:$0xff] %vm1773_vm13, %v3730_v0  ;;  %2678 = vst.msk [vmem:[#allocation7 + $0x81] sm:$0xff] %vm1773_vm13, %v3730_v0 }
  0x57   : > { %v430_v31 = vld [vmem:[#allocation2 + $0xa8] sm:$0xff]  ;;  %v519_v38 = vpack.c.bf16 %v492_v28, %v491_v27  ;;  %v1398_v22 = vld [vmem:[#allocation2 + $0x1f2] sm:$0xff]  ;;  %v435_v28 = vld [vmem:[#allocation2 + $0x100] sm:$0xff]  ;;  %2680 = vst.msk [vmem:[#allocation7 + $0x99] sm:$0xff] %vm1773_vm13, %v3730_v0 }
  0x58   : > { %680 = vrot.lane.b32.xlu0 %v646_v26, %s3732_s19  ;;  %v1392_v26 = vld [vmem:[#allocation2 + $0x192] sm:$0xff]  ;;  %471 = vst.msk [vmem:[#allocation3 + $0x20] sm:$0xff] %vm278_vm0, %v455_v23  ;;  %v456_v33 = vpack.c.bf16 %v430_v31, %v429_v30  ;;  %v620_v41 = vld [vmem:[#allocation2 + $0x8a] sm:$0xff] }
  0x59   : > { %v4150_v34 = vpack.c.bf16 %v1392_v26, %v1391_v25  ;;  %v648_v44 = vpack.c.bf16 %v621_v43, %v620_v41  ;;  %v750_v46 = vld [vmem:[#allocation2 + $0x128] sm:$0xff]  ;;  %v1400_v43 = vld [vmem:[#allocation2 + $0x212] sm:$0xff]  ;;  %2682 = vst.msk [vmem:[#allocation7 + $0xb1] sm:$0xff] %vm1773_vm13, %v3730_v0 }
  0x5a   : > { %682 = vrot.lane.b32.xlu1 %v647_v29, %s3732_s19  ;;  %v4146_v29 = vpack.c.bf16 %v1265_v18, %v1264_v17  ;;  %472 = vst.msk [vmem:[#allocation3 + $0x28] sm:$0xff] %vm278_vm0, %v456_v33  ;;  %v878_v48 = vld [vmem:[#allocation2 + $0x125] sm:$0xff]  ;;  %v879_v50 = vld [vmem:[#allocation2 + $0x12d] sm:$0xff] }
  0x5b   : > { %v4168_v51 = vpack.c.bf16 %v879_v50, %v878_v48  ;;  %v1007_v52 = vld [vmem:[#allocation2 + $0x12a] sm:$0xff]  ;;  %1803 = vst.msk [vmem:[#allocation5 + $0x18] sm:$0x1] %vm1802_vm14, %v3730_v0  ;;  %1804 = vst.msk [vmem:[#allocation5 + $0x30] sm:$0x1] %vm1802_vm14, %v3730_v0 }
  0x5c   : > { %809 = vrot.lane.b32.xlu0 %v775_v35, %s3733_s20  ;;  %v1393_v35 = vld [vmem:[#allocation2 + $0x1aa] sm:$0xff]  ;;  %1805 = vst.msk [vmem:[#allocation5 + $0x48] sm:$0x1] %vm1802_vm14, %v3730_v0  ;;  %1806 = vst.msk [vmem:[#allocation5 + $0x60] sm:$0x1] %vm1802_vm14, %v3730_v0 }
  0x5d   : > { %v4157_v40 = vpack.c.bf16 %v1394_v37, %v1393_v35  ;;  %v1138_v55 = vld [vmem:[#allocation2 + $0x1c8] sm:$0xff]  ;;  %1807 = vst.msk [vmem:[#allocation5 + $0x78] sm:$0x1] %vm1802_vm14, %v3730_v0  ;;  %1808 = vst.msk [vmem:[#allocation5 + $0x90] sm:$0x1] %vm1802_vm14, %v3730_v0 }
  0x5e   : > { %811 = vrot.lane.b32.xlu1 %v776_v47, %s3733_s20  ;;  %v777_v47 = vpack.c.bf16 %v750_v46, %v749_v45  ;;  %v1140_v57 = vld [vmem:[#allocation2 + $0x1e8] sm:$0xff]  ;;  %v4180_v58 = vpack.c.bf16 %v1138_v55, %v1137_v54  ;;  %v437_v46 = vld [vmem:[#allocation2 + $0x120] sm:$0xff]  ;;  %v1402_v54 = vld [vmem:[#allocation2 + $0x232] sm:$0xff]  ;;  %1809 = vst.msk [vmem:[#allocation5 + $0xa8] sm:$0x1] %vm1802_vm14, %v3730_v0 }
  0x5f   : > { %v1266_v60 = vld [vmem:[#allocation2 + $0x1c5] sm:$0xff]  ;;  %v1267_v61 = vld [vmem:[#allocation2 + $0x1cd] sm:$0xff]  ;;  %1810 = vst.msk [vmem:[#allocation5 + $0xc0] sm:$0x1] %vm1802_vm14, %v3730_v0  ;;  %1812 = vst.msk [vmem:[#allocation5 + $0x29] sm:$0x1] %vm1802_vm14, %v3730_v0 }
  0x60   : > { %938 = vrot.lane.b32.xlu0 %v4106_v59, %s3734_s21  ;;  %v432_v63 = vld [vmem:[#allocation2 + $0xc8] sm:$0xff]  ;;  %v4188_v7 = vpack.c.bf16 %v1267_v61, %v1266_v60  ;;  %1814 = vst.msk [vmem:[#allocation5 + $0x41] sm:$0x1] %vm1802_vm14, %v3730_v0  ;;  %1816 = vst.msk [vmem:[#allocation5 + $0x59] sm:$0x1] %vm1802_vm14, %v3730_v0 }
  0x61   : > { %v1268_v3 = vld [vmem:[#allocation2 + $0x1e5] sm:$0xff]  ;;  %v1269_v4 = vld [vmem:[#allocation2 + $0x1ed] sm:$0xff]  ;;  %v457_v6 = vpack.c.bf16 %v432_v63, %v431_v62  ;;  %1818 = vst.msk [vmem:[#allocation5 + $0x71] sm:$0x1] %vm1802_vm14, %v3730_v0  ;;  %1820 = vst.msk [vmem:[#allocation5 + $0x89] sm:$0x1] %vm1802_vm14, %v3730_v0 }
  0x62   : > { %940 = vrot.lane.b32.xlu1 %v4115_v1, %s3734_s21  ;;  %v1395_v8 = vld [vmem:[#allocation2 + $0x1ca] sm:$0xff]  ;;  %v4193_v12 = vpack.c.bf16 %v1269_v4, %v1268_v3  ;;  %1822 = vst.msk [vmem:[#allocation5 + $0xa1] sm:$0x1] %vm1802_vm14, %v3730_v0  ;;  %1824 = vst.msk [vmem:[#allocation5 + $0xb9] sm:$0x1] %vm1802_vm14, %v3730_v0 }
  0x63   : > { %473 = vst.msk [vmem:[#allocation3 + $0x30] sm:$0xff] %vm278_vm0, %v457_v6  ;;  %v434_v16 = vld [vmem:[#allocation2 + $0xe8] sm:$0xff]  ;;  %v4197_v18 = vpack.c.bf16 %v1396_v11, %v1395_v8  ;;  %v1147_v6 = vld [vmem:[#allocation2 + $0x260] sm:$0xff] }
  0x64   : > { %1067 = vrot.lane.b32.xlu0 %v4122_v5, %s3735_s22  ;;  %v458_v17 = vpack.c.bf16 %v434_v16, %v433_v15  ;;  %v1397_v21 = vld [vmem:[#allocation2 + $0x1ea] sm:$0xff]  ;;  %1826 = vst.msk [vmem:[#allocation5 + $0xd1] sm:$0x1] %vm1802_vm14, %v3730_v0  ;;  %2655 = vst.msk [vmem:[#allocation7 + $0x18] sm:$0x1] %vm1802_vm14, %v3730_v0 }
  0x65   : > { %v4204_v23 = vpack.c.bf16 %v1398_v22, %v1397_v21  ;;  %v1142_v25 = vld [vmem:[#allocation2 + $0x208] sm:$0xff]  ;;  %2656 = vst.msk [vmem:[#allocation7 + $0x30] sm:$0x1] %vm1802_vm14, %v3730_v0  ;;  %2657 = vst.msk [vmem:[#allocation7 + $0x48] sm:$0x1] %vm1802_vm14, %v3730_v0 }
  0x66   : > { %1069 = vrot.lane.b32.xlu1 %v4128_v9, %s3735_s22  ;;  %474 = vst.msk [vmem:[#allocation3 + $0x38] sm:$0xff] %vm278_vm0, %v458_v17  ;;  %v1144_v26 = vld [vmem:[#allocation2 + $0x228] sm:$0xff] }
  0x67   : > { %v436_v30 = vld [vmem:[#allocation2 + $0x108] sm:$0xff]  ;;  %2658 = vst.msk [vmem:[#allocation7 + $0x60] sm:$0x1] %vm1802_vm14, %v3730_v0  ;;  %2659 = vst.msk [vmem:[#allocation7 + $0x78] sm:$0x1] %vm1802_vm14, %v3730_v0 }
  0x68   : > { %1197 = vrot.lane.b32.xlu0 %v4133_v13, %s3736_s23  ;;  %v1272_v33 = vld [vmem:[#allocation2 + $0x225] sm:$0xff]  ;;  %v1273_v35 = vld [vmem:[#allocation2 + $0x22d] sm:$0xff]  ;;  %v459_v37 = vpack.c.bf16 %v436_v30, %v435_v28  ;;  %2660 = vst.msk [vmem:[#allocation7 + $0x90] sm:$0x1] %vm1802_vm14, %v3730_v0  ;;  %2661 = vst.msk [vmem:[#allocation7 + $0xa8] sm:$0x1] %vm1802_vm14, %v3730_v0 }
  0x69   : > { %v1399_v41 = vld [vmem:[#allocation2 + $0x20a] sm:$0xff]  ;;  %v4241_v45 = vpack.c.bf16 %v1273_v35, %v1272_v33  ;;  %2662 = vst.msk [vmem:[#allocation7 + $0x29] sm:$0x1] %vm1802_vm14, %v3730_v0  ;;  %2663 = vst.msk [vmem:[#allocation7 + $0x41] sm:$0x1] %vm1802_vm14, %v3730_v0 }
  0x6a   : > { %1199 = vrot.lane.b32.xlu1 %v4137_v19, %s3736_s23  ;;  %475 = vst.msk [vmem:[#allocation3 + $0x40] sm:$0xff] %vm278_vm0, %v459_v37  ;;  %v1146_v4 = vld [vmem:[#allocation2 + $0x248] sm:$0xff] }
  0x6b   : > { %v1148_v8 = vld [vmem:[#allocation2 + $0x268] sm:$0xff]  ;;  %2664 = vst.msk [vmem:[#allocation7 + $0x59] sm:$0x1] %vm1802_vm14, %v3730_v0  ;;  %2665 = vst.msk [vmem:[#allocation7 + $0x71] sm:$0x1] %vm1802_vm14, %v3730_v0 }
  0x6c   : > { %1326 = vrot.lane.b32.xlu0 %v4141_v24, %s3737_s29  ;;  %v1274_v15 = vld [vmem:[#allocation2 + $0x245] sm:$0xff]  ;;  %v1275_v16 = vld [vmem:[#allocation2 + $0x24d] sm:$0xff]  ;;  %v4292_v21 = vpack.c.bf16 %v1148_v8, %v1147_v6  ;;  %2666 = vst.msk [vmem:[#allocation7 + $0x89] sm:$0x1] %vm1802_vm14, %v3730_v0  ;;  %2667 = vst.msk [vmem:[#allocation7 + $0xa1] sm:$0x1] %vm1802_vm14, %v3730_v0 }
  0x6d   : > { %v440_v22 = vld [vmem:[#allocation2 + $0x148] sm:$0xff]  ;;  %2668 = vst.msk [vmem:[#allocation7 + $0xb9] sm:$0x1] %vm1802_vm14, %v3730_v0 }
  0x6e   : > { %1328 = vrot.lane.b32.xlu1 %v4146_v29, %s3737_s29  ;;  %v442_v33 = vld [vmem:[#allocation2 + $0x168] sm:$0xff]  ;;  %1800 = vst.msk [vmem:[#allocation5 + $0x10] sm:$0x3] %vm1799_vm15, %v3730_v0  ;;  %2649 = vst.msk [vmem:[#allocation7 + $0x10] sm:$0x3] %vm1799_vm15, %v3730_v0 }
  0x6f   : > { %2653 = vst.msk [vmem:[#allocation7 + $0xd0] sm:$0x3] %vm1799_vm15, %v3730_v0 }
  0x70   : > { %1455 = vrot.lane.b32.xlu0 %v4150_v34, %s3738_s8 }
  0x72   : > { %555 = vrot.lane.b32.xlu1 %v519_v38, %s3731_s18 }
  0x74   : > { %1457 = vrot.lane.b32.xlu0 %v4157_v40, %s3738_s8 }
  0x76   : > { %557 = vrot.lane.b32.xlu1 %v4012_v32, %s3731_s18  ;;  %v4174_v32 = vpack.c.bf16 %v1008_v53, %v1007_v52  ;;  %v4246_v52 = vpack.c.bf16 %v1400_v43, %v1399_v41  ;;  %v1401_v53 = vld [vmem:[#allocation2 + $0x22a] sm:$0xff] }
  0x77   : > { %v1405_v43 = vld [vmem:[#allocation2 + $0x26a] sm:$0xff] }
  0x78   : > { %684 = vrot.lane.b32.xlu0 %v648_v44, %s3732_s19 }
  0x7a   : > { %686 = vrot.lane.b32.xlu1 %v4019_v39, %s3732_s19  ;;  %v1139_v39 = vld [vmem:[#allocation2 + $0x1e0] sm:$0xff] }
  0x7c   : > { %813 = vrot.lane.b32.xlu0 %v777_v47, %s3733_s20  ;;  %v438_v47 = vld [vmem:[#allocation2 + $0x128] sm:$0xff] }
  0x7d   : > { %v460_v50 = vpack.c.bf16 %v438_v47, %v437_v46 }
  0x7e   : > { %815 = vrot.lane.b32.xlu1 %v4033_v49, %s3733_s20  ;;  %v4184_v49 = vpack.c.bf16 %v1140_v57, %v1139_v39  ;;  %v4255_v39 = vpack.c.bf16 %v1402_v54, %v1401_v53 }
  0x7f   : > { %476 = vst.msk [vmem:[#allocation3 + $0x48] sm:$0xff] %vm278_vm0, %v460_v50 }
  0x80   : > { %942 = vrot.lane.b32.xlu0 %v4168_v51, %s3734_s21 }
  0x82   : > { %944 = vrot.lane.b32.xlu1 %v4056_v2, %s3734_s21 }
  0x84   : > { %1071 = vrot.lane.b32.xlu0 %v4174_v32, %s3735_s22 }
  0x86   : > { %1073 = vrot.lane.b32.xlu1 %v4072_v14, %s3735_s22 }
  0x88   : > { %1201 = vrot.lane.b32.xlu0 %v4180_v58, %s3736_s23 }
  0x8a   : > { %1203 = vrot.lane.b32.xlu1 %v4184_v49, %s3736_s23 }
  0x8c   : > { %1330 = vrot.lane.b32.xlu0 %v4188_v7, %s3737_s29 }
  0x8e   : > { %1332 = vrot.lane.b32.xlu1 %v4193_v12, %s3737_s29 }
  0x90   : > { %1459 = vrot.lane.b32.xlu0 %v4197_v18, %s3738_s8 }
  0x92   : > { %559 = vrot.lane.b32.xlu1 %v4015_v36, %s3731_s18  ;;  %v1141_v36 = vld [vmem:[#allocation2 + $0x200] sm:$0xff] }
  0x94   : > { %1461 = vrot.lane.b32.xlu0 %v4204_v23, %s3738_s8 }
  0x96   : > { %561 = vrot.lane.b32.xlu1 %v4106_v59, %s3731_s18  ;;  %v1143_v59 = vld [vmem:[#allocation2 + $0x220] sm:$0xff] }
  0x97   : > { %v4230_v27 = vpack.c.bf16 %v1144_v26, %v1143_v59  ;;  %v4297_v26 = vpack.c.bf16 %v1275_v16, %v1274_v15  ;;  %v1408_v15 = vld [vmem:[#allocation2 + $0x292] sm:$0xff] }
  0x98   : > { %688 = vrot.lane.b32.xlu0 %v4023_v42, %s3732_s19  ;;  %v4226_v42 = vpack.c.bf16 %v1142_v25, %v1141_v36  ;;  %v1276_v36 = vld [vmem:[#allocation2 + $0x265] sm:$0xff]  ;;  %v1277_v25 = vld [vmem:[#allocation2 + $0x26d] sm:$0xff] }
  0x99   : > { %v677_v31 = vpop.permute.xlu1 %676  ;;  %v4303_v30 = vpack.c.bf16 %v1277_v25, %v1276_v36 }
  0x9a   : > { %690 = vrot.lane.b32.xlu1 %v4122_v5, %s3732_s19  ;;  %v1271_v5 = vld [vmem:[#allocation2 + $0x20d] sm:$0xff] }
  0x9c   : > { %817 = vrot.lane.b32.xlu0 %v4043_v56, %s3733_s20  ;;  %v1270_v56 = vld [vmem:[#allocation2 + $0x205] sm:$0xff] }
  0x9d   : > { %v4235_v38 = vpack.c.bf16 %v1271_v5, %v1270_v56  ;;  %v679_v48 = vpop.permute.xlu1 %678  ;;  %v1403_v5 = vld [vmem:[#allocation2 + $0x24a] sm:$0xff] }
  0x9e   : > { %819 = vrot.lane.b32.xlu1 %v4133_v13, %s3733_s20  ;;  %v548_v13 = vpop.permute.xlu0 %547 }
  0x9f   : > { %596 = vst.msk [vmem:[#allocation3] sm:$0xff] %vm595_vm4, %v548_v13 }
  0xa0   : > { %946 = vrot.lane.b32.xlu0 %v4066_v10, %s3734_s21  ;;  %725 = vst.msk [vmem:[#allocation3] sm:$0xff] %vm724_vm5, %v677_v31  ;;  %v441_v31 = vld [vmem:[#allocation2 + $0x160] sm:$0xff] }
  0xa1   : > { %v462_v35 = vpack.c.bf16 %v442_v33, %v441_v31 }
  0xa2   : > { %948 = vrot.lane.b32.xlu1 %v4141_v24, %s3734_s21  ;;  %v550_v44 = vpop.permute.xlu0 %549 }
  0xa3   : > { %597 = vst.msk [vmem:[#allocation3 + $0x8] sm:$0xff] %vm595_vm4, %v550_v44  ;;  %v1406_v44 = vld [vmem:[#allocation2 + $0x272] sm:$0xff] }
  0xa4   : > { %1075 = vrot.lane.b32.xlu0 %v4079_v20, %s3735_s22  ;;  %726 = vst.msk [vmem:[#allocation3 + $0x8] sm:$0xff] %vm724_vm5, %v679_v48  ;;  %v4319_v48 = vpack.c.bf16 %v1406_v44, %v1405_v43 }
  0xa5   : > { %478 = vst.msk [vmem:[#allocation3 + $0x58] sm:$0xff] %vm278_vm0, %v462_v35 }
  0xa6   : > { %1077 = vrot.lane.b32.xlu1 %v4150_v34, %s3735_s22 }
  0xa8   : > { %1205 = vrot.lane.b32.xlu0 %v4226_v42, %s3736_s23 }
  0xaa   : > { %1207 = vrot.lane.b32.xlu1 %v4230_v27, %s3736_s23 }
  0xac   : > { %1334 = vrot.lane.b32.xlu0 %v4235_v38, %s3737_s29 }
  0xae   : > { %v806_v55 = vpop.permute.xlu0 %805  ;;  %1336 = vrot.lane.b32.xlu1 %v4241_v45, %s3737_s29 }
  0xaf   : > { %854 = vst.msk [vmem:[#allocation3] sm:$0xff] %vm853_vm6, %v806_v55 }
  0xb0   : > { %1463 = vrot.lane.b32.xlu0 %v4246_v52, %s3738_s8  ;;  %v808_v57 = vpop.permute.xlu1 %807 }
  0xb1   : > { %855 = vst.msk [vmem:[#allocation3 + $0x8] sm:$0xff] %vm853_vm6, %v808_v57 }
  0xb2   : > { %v935_v60 = vpop.permute.xlu0 %934  ;;  %563 = vrot.lane.b32.xlu1 %v4115_v1, %s3731_s18 }
  0xb3   : > { %983 = vst.msk [vmem:[#allocation3] sm:$0xff] %vm982_vm7, %v935_v60 }
  0xb4   : > { %1465 = vrot.lane.b32.xlu0 %v4255_v39, %s3738_s8  ;;  %v937_v61 = vpop.permute.xlu1 %936 }
  0xb5   : > { %984 = vst.msk [vmem:[#allocation3 + $0x8] sm:$0xff] %vm982_vm7, %v937_v61  ;;  %v1150_v61 = vld [vmem:[#allocation2 + $0x288] sm:$0xff] }
  0xb6   : > { %v1064_v62 = vpop.permute.xlu0 %1063  ;;  %565 = vrot.lane.b32.xlu1 %v4168_v51, %s3731_s18 }
  0xb7   : > { %1112 = vst.msk [vmem:[#allocation3] sm:$0xff] %vm1111_vm8, %v1064_v62 }
  0xb8   : > { %692 = vrot.lane.b32.xlu0 %v4128_v9, %s3732_s19  ;;  %v1066_v1 = vpop.permute.xlu1 %1065 }
  0xb9   : > { %1113 = vst.msk [vmem:[#allocation3 + $0x8] sm:$0xff] %vm1111_vm8, %v1066_v1  ;;  %v1152_v1 = vld [vmem:[#allocation2 + $0x2a8] sm:$0xff] }
  0xba   : > { %v1194_v63 = vpop.permute.xlu0 %1193  ;;  %694 = vrot.lane.b32.xlu1 %v4174_v32, %s3732_s19  ;;  %v1145_v32 = vld [vmem:[#allocation2 + $0x240] sm:$0xff] }
  0xbb   : > { %1242 = vst.msk [vmem:[#allocation3] sm:$0xff] %vm1241_vm9, %v1194_v63 }
  0xbc   : > { %821 = vrot.lane.b32.xlu0 %v4137_v19, %s3733_s20  ;;  %v1196_v51 = vpop.permute.xlu1 %1195 }
  0xbd   : > { %1243 = vst.msk [vmem:[#allocation3 + $0x8] sm:$0xff] %vm1241_vm9, %v1196_v51  ;;  %v1279_v51 = vld [vmem:[#allocation2 + $0x28d] sm:$0xff] }
  0xbe   : > { %v1323_v3 = vpop.permute.xlu0 %1322  ;;  %823 = vrot.lane.b32.xlu1 %v4180_v58, %s3733_s20  ;;  %v4287_v58 = vpack.c.bf16 %v1146_v4, %v1145_v32  ;;  %v444_v32 = vld [vmem:[#allocation2 + $0x188] sm:$0xff] }
  0xbf   : > { %1371 = vst.msk [vmem:[#allocation3] sm:$0xff] %vm1370_vm10, %v1323_v3  ;;  %v1280_v4 = vld [vmem:[#allocation2 + $0x2a5] sm:$0xff] }
  0xc0   : > { %950 = vrot.lane.b32.xlu0 %v4146_v29, %s3734_s21  ;;  %v1325_v9 = vpop.permute.xlu1 %1324 }
  0xc1   : > { %1372 = vst.msk [vmem:[#allocation3 + $0x8] sm:$0xff] %vm1370_vm10, %v1325_v9 }
  0xc2   : > { %v1452_v19 = vpop.permute.xlu0 %1451  ;;  %952 = vrot.lane.b32.xlu1 %v4188_v7, %s3734_s21  ;;  %v439_v7 = vld [vmem:[#allocation2 + $0x140] sm:$0xff] }
  0xc3   : > { %1500 = vst.msk [vmem:[#allocation3] sm:$0xff] %vm1499_vm11, %v1452_v19  ;;  %v461_v59 = vpack.c.bf16 %v440_v22, %v439_v7  ;;  %v1281_v19 = vld [vmem:[#allocation2 + $0x2ad] sm:$0xff]  ;;  %v445_v7 = vld [vmem:[#allocation2 + $0x1a0] sm:$0xff] }
  0xc4   : > { %1079 = vrot.lane.b32.xlu0 %v4157_v40, %s3735_s22  ;;  %v552_v11 = vpop.permute.xlu1 %551  ;;  %v446_v22 = vld [vmem:[#allocation2 + $0x1a8] sm:$0xff] }
  0xc5   : > { %598 = vst.msk [vmem:[#allocation3 + $0x10] sm:$0xff] %vm595_vm4, %v552_v11  ;;  %v1407_v11 = vld [vmem:[#allocation2 + $0x28a] sm:$0xff]  ;;  %v464_v36 = vpack.c.bf16 %v446_v22, %v445_v7 }
  0xc6   : > { %v1454_v17 = vpop.permute.xlu0 %1453  ;;  %1081 = vrot.lane.b32.xlu1 %v4197_v18, %s3735_s22  ;;  %v1404_v18 = vld [vmem:[#allocation2 + $0x252] sm:$0xff]  ;;  %477 = vst.msk [vmem:[#allocation3 + $0x50] sm:$0xff] %vm278_vm0, %v461_v59  ;;  %v4368_v25 = vpack.c.bf16 %v1408_v15, %v1407_v11 }
  0xc7   : > { %1501 = vst.msk [vmem:[#allocation3 + $0x8] sm:$0xff] %vm1499_vm11, %v1454_v17  ;;  %v4309_v37 = vpack.c.bf16 %v1404_v18, %v1403_v5  ;;  %v1301_v17 = vpack.c.bf16 %v1281_v19, %v1280_v4  ;;  %v1410_v5 = vld [vmem:[#allocation2 + $0x2b2] sm:$0xff] }
  0xc8   : > { %1209 = vrot.lane.b32.xlu0 %v4287_v58, %s3736_s23  ;;  %v554_v56 = vpop.permute.xlu1 %553  ;;  %480 = vst.msk [vmem:[#allocation3 + $0x68] sm:$0xff] %vm278_vm0, %v464_v36  ;;  %v514_v4 = vld [vmem:[#allocation2 + $0x1ed] sm:$0xff] }
  0xc9   : > { %599 = vst.msk [vmem:[#allocation3 + $0x18] sm:$0xff] %vm595_vm4, %v554_v56  ;;  %v1409_v56 = vld [vmem:[#allocation2 + $0x2aa] sm:$0xff]  ;;  %v641_v11 = vld [vmem:[#allocation2 + $0x1d2] sm:$0xff] }
  0xca   : > { %v681_v13 = vpop.permute.xlu0 %680  ;;  %v1516_v28 = vld [vmem:[#allocation3] sm:$0xff]  ;;  %1211 = vrot.lane.b32.xlu1 %v4292_v21, %s3736_s23 }
  0xcb   : > { %727 = vst.msk [vmem:[#allocation3 + $0x10] sm:$0xff] %vm724_vm5, %v681_v13  ;;  %3551 = vmatprep.mubr.msk.bf16.mxu0 %vm1559_vm12, %v1516_v28  ;;  %v1430_v28 = vpack.c.bf16 %v1410_v5, %v1409_v56 }
  0xcc   : > { %1338 = vrot.lane.b32.xlu0 %v4297_v26, %s3737_s29  ;;  %v683_v41 = vpop.permute.xlu1 %682 }
  0xcd   : > { %728 = vst.msk [vmem:[#allocation3 + $0x18] sm:$0xff] %vm724_vm5, %v683_v41 }
  0xce   : > { %v810_v46 = vpop.permute.xlu0 %809  ;;  %v1517_v47 = vld [vmem:[#allocation3 + $0x8] sm:$0xff]  ;;  %1340 = vrot.lane.b32.xlu1 %v4303_v30, %s3737_s29 }
  0xcf   : > { %856 = vst.msk [vmem:[#allocation3 + $0x10] sm:$0xff] %vm853_vm6, %v810_v46  ;;  %3552 = vmatmul.mubr.msk.bf16.vlgmr.msra.gmra.mrb[0].mxu0 %vm1559_vm12, %v1517_v47  ;;  %v1154_v46 = vld [vmem:[#allocation2 + $0x2c8] sm:$0xff] }
  0xd0   : > { %1467 = vrot.lane.b32.xlu0 %v4309_v37, %s3738_s8  ;;  %v812_v50 = vpop.permute.xlu1 %811 }
  0xd1   : > { %857 = vst.msk [vmem:[#allocation3 + $0x18] sm:$0xff] %vm853_vm6, %v812_v50  ;;  %v1156_v50 = vld [vmem:[#allocation2 + $0x2e8] sm:$0xff] }
  0xd2   : > { %v939_v53 = vpop.permute.xlu0 %938  ;;  %567 = vrot.lane.b32.xlu1 %v4056_v2, %s3731_s18 }
  0xd3   : > { %985 = vst.msk [vmem:[#allocation3 + $0x10] sm:$0xff] %vm982_vm7, %v939_v53 }
  0xd4   : > { %1469 = vrot.lane.b32.xlu0 %v4319_v48, %s3738_s8  ;;  %v941_v54 = vpop.permute.xlu1 %940 }
  0xd5   : > { %986 = vst.msk [vmem:[#allocation3 + $0x18] sm:$0xff] %vm982_vm7, %v941_v54  ;;  %v1283_v54 = vld [vmem:[#allocation2 + $0x2cd] sm:$0xff] }
  0xd6   : > { %v1068_v55 = vpop.permute.xlu0 %1067  ;;  %569 = vrot.lane.b32.xlu1 %v4066_v10, %s3731_s18 }
  0xd7   : > { %1114 = vst.msk [vmem:[#allocation3 + $0x10] sm:$0xff] %vm1111_vm8, %v1068_v55 }
  0xd8   : > { %696 = vrot.lane.b32.xlu0 %v4072_v14, %s3732_s19  ;;  %v1070_v57 = vpop.permute.xlu1 %1069 }
  0xd9   : > { %1115 = vst.msk [vmem:[#allocation3 + $0x18] sm:$0xff] %vm1111_vm8, %v1070_v57 }
  0xda   : > { %v1198_v2 = vpop.permute.xlu0 %1197  ;;  %698 = vrot.lane.b32.xlu1 %v4079_v20, %s3732_s19  ;;  %v1149_v20 = vld [vmem:[#allocation2 + $0x280] sm:$0xff] }
  0xdb   : > { %1244 = vst.msk [vmem:[#allocation3 + $0x10] sm:$0xff] %vm1241_vm9, %v1198_v2  ;;  %v1285_v2 = vld [vmem:[#allocation2 + $0x2ed] sm:$0xff] }
  0xdc   : > { %825 = vrot.lane.b32.xlu0 %v4184_v49, %s3733_s20  ;;  %v1200_v60 = vpop.permute.xlu1 %1199  ;;  %v1151_v49 = vld [vmem:[#allocation2 + $0x2a0] sm:$0xff] }
  0xdd   : > { %1245 = vst.msk [vmem:[#allocation3 + $0x18] sm:$0xff] %vm1241_vm9, %v1200_v60  ;;  %v1172_v9 = vpack.c.bf16 %v1152_v1, %v1151_v49  ;;  %v512_v49 = vld [vmem:[#allocation2 + $0x1cd] sm:$0xff] }
  0xde   : > { %v1327_v10 = vpop.permute.xlu0 %1326  ;;  %827 = vrot.lane.b32.xlu1 %v4226_v42, %s3733_s20  ;;  %v4351_v42 = vpack.c.bf16 %v1150_v61, %v1149_v20 }
  0xdf   : > { %1373 = vst.msk [vmem:[#allocation3 + $0x10] sm:$0xff] %vm1370_vm10, %v1327_v10 }
  0xe0   : > { %954 = vrot.lane.b32.xlu0 %v4193_v12, %s3734_s21  ;;  %v1329_v14 = vpop.permute.xlu1 %1328  ;;  %v1278_v12 = vld [vmem:[#allocation2 + $0x285] sm:$0xff] }
  0xe1   : > { %1374 = vst.msk [vmem:[#allocation3 + $0x18] sm:$0xff] %vm1370_vm10, %v1329_v14  ;;  %v1412_v14 = vld [vmem:[#allocation2 + $0x2d2] sm:$0xff] }
  0xe2   : > { %v1456_v62 = vpop.permute.xlu0 %1455  ;;  %956 = vrot.lane.b32.xlu1 %v4235_v38, %s3734_s21  ;;  %v443_v38 = vld [vmem:[#allocation2 + $0x180] sm:$0xff] }
  0xe3   : > { %1502 = vst.msk [vmem:[#allocation3 + $0x10] sm:$0xff] %vm1499_vm11, %v1456_v62  ;;  %v463_v6 = vpack.c.bf16 %v444_v32, %v443_v38  ;;  %v513_v32 = vld [vmem:[#allocation2 + $0x1e5] sm:$0xff] }
  0xe4   : > { %1083 = vrot.lane.b32.xlu0 %v4204_v23, %s3735_s22  ;;  %v556_v63 = vpop.permute.xlu1 %555  ;;  %v4359_v23 = vpack.c.bf16 %v1279_v51, %v1278_v12  ;;  %v1413_v12 = vld [vmem:[#allocation2 + $0x2ea] sm:$0xff]  ;;  %v1414_v51 = vld [vmem:[#allocation2 + $0x2f2] sm:$0xff] }
  0xe5   : > { %600 = vst.msk [vmem:[#allocation3 + $0x20] sm:$0xff] %vm595_vm4, %v556_v63  ;;  %v1432_v19 = vpack.c.bf16 %v1414_v51, %v1413_v12 }
  0xe6   : > { %v1458_v3 = vpop.permute.xlu0 %1457  ;;  %1085 = vrot.lane.b32.xlu1 %v4246_v52, %s3735_s22  ;;  %479 = vst.msk [vmem:[#allocation3 + $0x60] sm:$0xff] %vm278_vm0, %v463_v6 }
  0xe7   : > { %1503 = vst.msk [vmem:[#allocation3 + $0x18] sm:$0xff] %vm1499_vm11, %v1458_v3 }
  0xe8   : > { %1213 = vrot.lane.b32.xlu0 %v4351_v42, %s3736_s23  ;;  %v558_v8 = vpop.permute.xlu1 %557 }
  0xe9   : > { %601 = vst.msk [vmem:[#allocation3 + $0x28] sm:$0xff] %vm595_vm4, %v558_v8  ;;  %v640_v8 = vld [vmem:[#allocation2 + $0x1ca] sm:$0xff] }
  0xea   : > { %v685_v52 = vpop.permute.xlu0 %684  ;;  %v1518_v16 = vld [vmem:[#allocation3 + $0x10] sm:$0xff]  ;;  %1215 = vrot.lane.b32.xlu1 %v1172_v9, %s3736_s23  ;;  %v658_v22 = vpack.c.bf16 %v641_v11, %v640_v8 }
  0xeb   : > { %729 = vst.msk [vmem:[#allocation3 + $0x20] sm:$0xff] %vm724_vm5, %v685_v52  ;;  %3555 = vmatprep.mubr.msk.bf16.mxu0 %vm1559_vm12, %v1518_v16  ;;  %v530_v52 = vpack.c.bf16 %v514_v4, %v513_v32  ;;  %v642_v16 = vld [vmem:[#allocation2 + $0x1ea] sm:$0xff] }
  0xec   : > { %1342 = vrot.lane.b32.xlu0 %v4359_v23, %s3737_s29  ;;  %v687_v59 = vpop.permute.xlu1 %686 }
  0xed   : > { %730 = vst.msk [vmem:[#allocation3 + $0x28] sm:$0xff] %vm724_vm5, %v687_v59 }
  0xee   : > { %v814_v18 = vpop.permute.xlu0 %813  ;;  %v1519_v13 = vld [vmem:[#allocation3 + $0x18] sm:$0xff]  ;;  %1344 = vrot.lane.b32.xlu1 %v1301_v17, %s3737_s29 }
  0xef   : > { %858 = vst.msk [vmem:[#allocation3 + $0x20] sm:$0xff] %vm853_vm6, %v814_v18  ;;  %3556 = vmatmul.mubr.msk.bf16.gmra.mrb[4].mxu0 %vm1559_vm12, %v1519_v13  ;;  %v643_v17 = vld [vmem:[#allocation2 + $0x1f2] sm:$0xff] }
  0xf0   : > { %1471 = vrot.lane.b32.xlu0 %v4368_v25, %s3738_s8  ;;  %v816_v31 = vpop.permute.xlu1 %815  ;;  %v659_v59 = vpack.c.bf16 %v643_v17, %v642_v16 }
  0xf1   : > { %859 = vst.msk [vmem:[#allocation3 + $0x28] sm:$0xff] %vm853_vm6, %v816_v31  ;;  %v1157_v31 = vld [vmem:[#allocation2 + $0x300] sm:$0xff] }
  0xf2   : > { %v943_v33 = vpop.permute.xlu0 %942  ;;  %571 = vrot.lane.b32.xlu1 %v4141_v24, %s3731_s18 }
  0xf3   : > { %987 = vst.msk [vmem:[#allocation3 + $0x20] sm:$0xff] %vm982_vm7, %v943_v33  ;;  %v1158_v33 = vld [vmem:[#allocation2 + $0x308] sm:$0xff] }
  0xf4   : > { %1473 = vrot.lane.b32.xlu0 %v1430_v28, %s3738_s8  ;;  %v945_v35 = vpop.permute.xlu1 %944 }
  0xf5   : > { %988 = vst.msk [vmem:[#allocation3 + $0x28] sm:$0xff] %vm982_vm7, %v945_v35 }
  0xf6   : > { %v1072_v41 = vpop.permute.xlu0 %1071  ;;  %573 = vrot.lane.b32.xlu1 %v4146_v29, %s3731_s18 }
  0xf7   : > { %1116 = vst.msk [vmem:[#allocation3 + $0x20] sm:$0xff] %vm1111_vm8, %v1072_v41  ;;  %v4446_v41 = vld [vmem:[#allocation2 + $0x328] sm:$0xff] }
  0xf8   : > { %700 = vrot.lane.b32.xlu0 %v4150_v34, %s3732_s19  ;;  %v1074_v43 = vpop.permute.xlu1 %1073 }
  0xf9   : > { %1117 = vst.msk [vmem:[#allocation3 + $0x28] sm:$0xff] %vm1111_vm8, %v1074_v43  ;;  %v1175_v43 = vpack.c.bf16 %v1158_v33, %v1157_v31 }
  0xfa   : > { %v1202_v24 = vpop.permute.xlu0 %1201  ;;  %702 = vrot.lane.b32.xlu1 %v4157_v40, %s3732_s19  ;;  %v1153_v40 = vld [vmem:[#allocation2 + $0x2c0] sm:$0xff] }
  0xfb   : > { %1246 = vst.msk [vmem:[#allocation3 + $0x20] sm:$0xff] %vm1241_vm9, %v1202_v24  ;;  %v4453_v24 = vld [vmem:[#allocation2 + $0x30d] sm:$0xff] }
  0xfc   : > { %829 = vrot.lane.b32.xlu0 %v4230_v27, %s3733_s20  ;;  %v1204_v44 = vpop.permute.xlu1 %1203  ;;  %v1155_v27 = vld [vmem:[#allocation2 + $0x2e0] sm:$0xff] }
  0xfd   : > { %1247 = vst.msk [vmem:[#allocation3 + $0x28] sm:$0xff] %vm1241_vm9, %v1204_v44  ;;  %v1174_v57 = vpack.c.bf16 %v1156_v50, %v1155_v27 }
  0xfe   : > { %v1331_v29 = vpop.permute.xlu0 %1330  ;;  %831 = vrot.lane.b32.xlu1 %v4287_v58, %s3733_s20  ;;  %v1173_v58 = vpack.c.bf16 %v1154_v46, %v1153_v40  ;;  %v1415_v40 = vld [vmem:[#allocation2 + $0x30a] sm:$0xff]  ;;  %v1416_v46 = vld [vmem:[#allocation2 + $0x312] sm:$0xff] }
  0xff   : > { %1375 = vst.msk [vmem:[#allocation3 + $0x20] sm:$0xff] %vm1370_vm10, %v1331_v29 }
 0x100   : > { %958 = vrot.lane.b32.xlu0 %v4241_v45, %s3734_s21  ;;  %v1333_v34 = vpop.permute.xlu1 %1332  ;;  %v1282_v45 = vld [vmem:[#allocation2 + $0x2c5] sm:$0xff] }
 0x101   : > { %1376 = vst.msk [vmem:[#allocation3 + $0x28] sm:$0xff] %vm1370_vm10, %v1333_v34  ;;  %v1302_v60 = vpack.c.bf16 %v1283_v54, %v1282_v45  ;;  %v1433_v54 = vpack.c.bf16 %v1416_v46, %v1415_v40 }
 0x102   : > { %v1460_v47 = vpop.permute.xlu0 %1459  ;;  %960 = vrot.lane.b32.xlu1 %v4297_v26, %s3734_s21  ;;  %v1284_v26 = vld [vmem:[#allocation2 + $0x2e5] sm:$0xff] }
 0x103   : > { %1504 = vst.msk [vmem:[#allocation3 + $0x20] sm:$0xff] %vm1499_vm11, %v1460_v47  ;;  %v1303_v62 = vpack.c.bf16 %v1285_v2, %v1284_v26  ;;  %v447_v2 = vld [vmem:[#allocation2 + $0x1c0] sm:$0xff] }
 0x104   : > { %1087 = vrot.lane.b32.xlu0 %v4255_v39, %s3735_s22  ;;  %v560_v53 = vpop.permute.xlu1 %559  ;;  %v1411_v39 = vld [vmem:[#allocation2 + $0x2ca] sm:$0xff] }
 0x105   : > { %602 = vst.msk [vmem:[#allocation3 + $0x30] sm:$0xff] %vm595_vm4, %v560_v53  ;;  %v1431_v1 = vpack.c.bf16 %v1412_v14, %v1411_v39  ;;  %v1418_v53 = vld [vmem:[#allocation2 + $0x332] sm:$0xff] }
 0x106   : > { %v1462_v55 = vpop.permute.xlu0 %1461  ;;  %1089 = vrot.lane.b32.xlu1 %v4309_v37, %s3735_s22  ;;  %v511_v37 = vld [vmem:[#allocation2 + $0x1c5] sm:$0xff] }
 0x107   : > { %1505 = vst.msk [vmem:[#allocation3 + $0x28] sm:$0xff] %vm1499_vm11, %v1462_v55  ;;  %v529_v38 = vpack.c.bf16 %v512_v49, %v511_v37  ;;  %v2040_v37 = vld [vmem:[#allocation5 + $0x2] sm:$0xff] }
 0x108   : > { %1217 = vrot.lane.b32.xlu0 %v1173_v58, %s3736_s23  ;;  %v562_v10 = vpop.permute.xlu1 %561  ;;  %v1417_v58 = vld [vmem:[#allocation2 + $0x32a] sm:$0xff] }
 0x109   : > { %603 = vst.msk [vmem:[#allocation3 + $0x38] sm:$0xff] %vm595_vm4, %v562_v10  ;;  %v1434_v26 = vpack.c.bf16 %v1418_v53, %v1417_v58 }
 0x10a   : > { %v689_v20 = vpop.permute.xlu0 %688  ;;  %v1520_v61 = vld [vmem:[#allocation3 + $0x20] sm:$0xff]  ;;  %1219 = vrot.lane.b32.xlu1 %v1174_v57, %s3736_s23 }
 0x10b   : > { %731 = vst.msk [vmem:[#allocation3 + $0x30] sm:$0xff] %vm724_vm5, %v689_v20  ;;  %3559 = vmatprep.mubr.msk.bf16.mxu0 %vm1559_vm12, %v1520_v61  ;;  %v449_v20 = vld [vmem:[#allocation2 + $0x1e0] sm:$0xff]  ;;  %v450_v61 = vld [vmem:[#allocation2 + $0x1e8] sm:$0xff] }
 0x10c   : > { %1346 = vrot.lane.b32.xlu0 %v1302_v60, %s3737_s29  ;;  %v691_v63 = vpop.permute.xlu1 %690  ;;  %v448_v60 = vld [vmem:[#allocation2 + $0x1c8] sm:$0xff]  ;;  %v466_v0 = vpack.c.bf16 %v450_v61, %v449_v20 }
 0x10d   : > { %732 = vst.msk [vmem:[#allocation3 + $0x38] sm:$0xff] %vm724_vm5, %v691_v63  ;;  %v465_v39 = vpack.c.bf16 %v448_v60, %v447_v2  ;;  %v2041_v63 = vld [vmem:[#allocation5 + $0xa] sm:$0xff] }
 0x10e   : > { %v818_v3 = vpop.permute.xlu0 %817  ;;  %v1521_v9 = vld [vmem:[#allocation3 + $0x28] sm:$0xff]  ;;  %1348 = vrot.lane.b32.xlu1 %v1303_v62, %s3737_s29  ;;  %482 = vst.msk [vmem:[#allocation3 + $0x78] sm:$0xff] %vm278_vm0, %v466_v0 }
 0x10f   : > { %860 = vst.msk [vmem:[#allocation3 + $0x30] sm:$0xff] %vm853_vm6, %v818_v3  ;;  %3560 = vmatmul.mubr.msk.bf16.gmra.mrb[8].mxu0 %vm1559_vm12, %v1521_v9  ;;  %v1983_v62 = vld [vmem:[#allocation5 + $0x1] sm:$0xff]  ;;  %v2054_v3 = vpack.c.bf16 %v2041_v63, %v2040_v37 }
 0x110   : > { %1475 = vrot.lane.b32.xlu0 %v1431_v1, %s3738_s8  ;;  %v820_v6 = vpop.permute.xlu1 %819  ;;  %481 = vst.msk [vmem:[#allocation3 + $0x70] sm:$0xff] %vm278_vm0, %v465_v39  ;;  %v1984_v1 = vld [vmem:[#allocation5 + $0x9] sm:$0xff]  ;;  %vm2032_vm0 = vcmask 261248  }
 0x111   : > { %861 = vst.msk [vmem:[#allocation3 + $0x38] sm:$0xff] %vm853_vm6, %v820_v6  ;;  %v1997_v51 = vpack.c.bf16 %v1984_v1, %v1983_v62 }
 0x112   : > { %v947_v15 = vpop.permute.xlu0 %946  ;;  %575 = vrot.lane.b32.xlu1 %v529_v38, %s3731_s18 }
 0x113   : > { %989 = vst.msk [vmem:[#allocation3 + $0x30] sm:$0xff] %vm982_vm7, %v947_v15 }
 0x114   : > { %1477 = vrot.lane.b32.xlu0 %v1432_v19, %s3738_s8  ;;  %v949_v7 = vpop.permute.xlu1 %948 }
 0x115   : > { %990 = vst.msk [vmem:[#allocation3 + $0x38] sm:$0xff] %vm982_vm7, %v949_v7 }
 0x116   : > { %v1076_v36 = vpop.permute.xlu0 %1075  ;;  %577 = vrot.lane.b32.xlu1 %v530_v52, %s3731_s18 }
 0x117   : > { %1118 = vst.msk [vmem:[#allocation3 + $0x30] sm:$0xff] %vm1111_vm8, %v1076_v36 }
 0x118   : > { %v1078_v56 = vpop.permute.xlu1 %1077  ;;  %704 = vrot.lane.b32.xlu0 %v658_v22, %s3732_s19 }
 0x119   : > { %1119 = vst.msk [vmem:[#allocation3 + $0x38] sm:$0xff] %vm1111_vm8, %v1078_v56 }
 0x11a   : > { %v1206_v5 = vpop.permute.xlu0 %1205  ;;  %706 = vrot.lane.b32.xlu1 %v659_v59, %s3732_s19  ;;  %s3744_s19 = smov 96  }
 0x11b   : > { %1248 = vst.msk [vmem:[#allocation3 + $0x30] sm:$0xff] %vm1241_vm9, %v1206_v5 }
 0x11c   : > { %v1208_v18 = vpop.permute.xlu1 %1207  ;;  %833 = vrot.lane.b32.xlu0 %v4292_v21, %s3733_s20  ;;  %v4444_v21 = vld [vmem:[#allocation2 + $0x320] sm:$0xff] }
 0x11d   : > { %1249 = vst.msk [vmem:[#allocation3 + $0x38] sm:$0xff] %vm1241_vm9, %v1208_v18 }
 0x11e   : > { %v1335_v13 = vpop.permute.xlu0 %1334  ;;  %835 = vrot.lane.b32.xlu1 %v4351_v42, %s3733_s20  ;;  %s3739_s20 = smov 48  }
 0x11f   : > { %1377 = vst.msk [vmem:[#allocation3 + $0x30] sm:$0xff] %vm1370_vm10, %v1335_v13 }
 0x120   : > { %v1337_v28 = vpop.permute.xlu1 %1336  ;;  %962 = vrot.lane.b32.xlu0 %v4303_v30, %s3734_s21  ;;  %v4451_v30 = vld [vmem:[#allocation2 + $0x305] sm:$0xff] }
 0x121   : > { %1378 = vst.msk [vmem:[#allocation3 + $0x38] sm:$0xff] %vm1370_vm10, %v1337_v28  ;;  %v1304_v34 = vpack.c.bf16 %v4453_v24, %v4451_v30 }
 0x122   : > { %v1464_v35 = vpop.permute.xlu0 %1463  ;;  %964 = vrot.lane.b32.xlu1 %v4359_v23, %s3734_s21  ;;  %v1176_v23 = vpack.c.bf16 %v4446_v41, %v4444_v21 }
 0x123   : > { %1506 = vst.msk [vmem:[#allocation3 + $0x30] sm:$0xff] %vm1499_vm11, %v1464_v35 }
 0x124   : > { %v564_v42 = vpop.permute.xlu1 %563  ;;  %1091 = vrot.lane.b32.xlu0 %v4319_v48, %s3735_s22  ;;  %v1288_v48 = vld [vmem:[#allocation2 + $0x325] sm:$0xff] }
 0x125   : > { %604 = vst.msk [vmem:[#allocation3 + $0x40] sm:$0xff] %vm595_vm4, %v564_v42 }
 0x126   : > { %v1466_v44 = vpop.permute.xlu0 %1465  ;;  %1093 = vrot.lane.b32.xlu1 %v4368_v25, %s3735_s22  ;;  %v1289_v25 = vld [vmem:[#allocation2 + $0x32d] sm:$0xff]  ;;  %s3740_s22 = smov 64  }
 0x127   : > { %1507 = vst.msk [vmem:[#allocation3 + $0x38] sm:$0xff] %vm1499_vm11, %v1466_v44  ;;  %v1305_v50 = vpack.c.bf16 %v1289_v25, %v1288_v48 }
 0x128   : > { %v566_v29 = vpop.permute.xlu1 %565  ;;  %1221 = vrot.lane.b32.xlu0 %v1175_v43, %s3736_s23 }
 0x129   : > { %605 = vst.msk [vmem:[#allocation3 + $0x48] sm:$0xff] %vm595_vm4, %v566_v29 }
 0x12a   : > { %v693_v47 = vpop.permute.xlu0 %692  ;;  %v1522_v27 = vld [vmem:[#allocation3 + $0x30] sm:$0xff]  ;;  %1223 = vrot.lane.b32.xlu1 %v1176_v23, %s3736_s23  ;;  %s3741_s23 = smov 80  }
 0x12b   : > { %733 = vst.msk [vmem:[#allocation3 + $0x40] sm:$0xff] %vm724_vm5, %v693_v47  ;;  %3563 = vmatprep.mubr.msk.bf16.mxu0 %vm1559_vm12, %v1522_v27 }
 0x12c   : > { %v695_v45 = vpop.permute.xlu1 %694  ;;  %1350 = vrot.lane.b32.xlu0 %v1304_v34, %s3737_s29 }
 0x12d   : > { %734 = vst.msk [vmem:[#allocation3 + $0x48] sm:$0xff] %vm724_vm5, %v695_v45 }
 0x12e   : > { %v822_v55 = vpop.permute.xlu0 %821  ;;  %v1523_v57 = vld [vmem:[#allocation3 + $0x38] sm:$0xff]  ;;  %1352 = vrot.lane.b32.xlu1 %v1305_v50, %s3737_s29 }
 0x12f   : > { %862 = vst.msk [vmem:[#allocation3 + $0x40] sm:$0xff] %vm853_vm6, %v822_v55  ;;  %3564 = vmatmul.mubr.msk.bf16.gmra.mrb[12].mxu0 %vm1559_vm12, %v1523_v57 }
 0x130   : > { %v824_v10 = vpop.permute.xlu1 %823  ;;  %1479 = vrot.lane.b32.xlu0 %v1433_v54, %s3738_s8 }
 0x131   : > { %863 = vst.msk [vmem:[#allocation3 + $0x48] sm:$0xff] %vm853_vm6, %v824_v10 }
 0x132   : > { %v951_v14 = vpop.permute.xlu0 %950  ;;  %1481 = vrot.lane.b32.xlu1 %v1434_v26, %s3738_s8 }
 0x133   : > { %991 = vst.msk [vmem:[#allocation3 + $0x40] sm:$0xff] %vm982_vm7, %v951_v14 }
 0x134   : > { %v953_v49 = vpop.permute.xlu1 %952  ;;  %2011 = vrot.lane.b32.xlu0 %v1997_v51, %s3734_s21 }
 0x135   : > { %992 = vst.msk [vmem:[#allocation3 + $0x48] sm:$0xff] %vm982_vm7, %v953_v49  ;;  %v4651_v49 = vld [vmem:[%s5278_s2] ss:$0 sm:$0xff] }
 0x136   : > { %v1080_v12 = vpop.permute.xlu0 %1079  ;;  %2068 = vrot.lane.b32.xlu1 %v2054_v3, %s3738_s8 }
 0x137   : > { %1120 = vst.msk [vmem:[#allocation3 + $0x40] sm:$0xff] %vm1111_vm8, %v1080_v12 }
 0x138   : > { %v1082_v9 = vpop.permute.xlu1 %1081 }
 0x139   : > { %1121 = vst.msk [vmem:[#allocation3 + $0x48] sm:$0xff] %vm1111_vm8, %v1082_v9 }
 0x13a   : > { %v1210_v38 = vpop.permute.xlu0 %1209 }
 0x13b   : > { %1250 = vst.msk [vmem:[#allocation3 + $0x40] sm:$0xff] %vm1241_vm9, %v1210_v38 }
 0x13c   : > { %v1212_v32 = vpop.permute.xlu1 %1211 }
 0x13d   : > { %1251 = vst.msk [vmem:[#allocation3 + $0x48] sm:$0xff] %vm1241_vm9, %v1212_v32 }
 0x13e   : > { %v1339_v4 = vpop.permute.xlu0 %1338 }
 0x13f   : > { %1379 = vst.msk [vmem:[#allocation3 + $0x40] sm:$0xff] %vm1370_vm10, %v1339_v4 }
 0x140   : > { %v1341_v19 = vpop.permute.xlu1 %1340 }
 0x141   : > { %1380 = vst.msk [vmem:[#allocation3 + $0x48] sm:$0xff] %vm1370_vm10, %v1341_v19 }
 0x142   : > { %v1468_v6 = vpop.permute.xlu0 %1467 }
 0x143   : > { %1508 = vst.msk [vmem:[#allocation3 + $0x40] sm:$0xff] %vm1499_vm11, %v1468_v6 }
 0x144   : > { %v568_v8 = vpop.permute.xlu1 %567 }
 0x145   : > { %606 = vst.msk [vmem:[#allocation3 + $0x50] sm:$0xff] %vm595_vm4, %v568_v8  ;;  %v1955_v8 = vld [vmem:[#allocation5] sm:$0xff] }
 0x146   : > { %v1470_v11 = vpop.permute.xlu0 %1469 }
 0x147   : > { %1509 = vst.msk [vmem:[#allocation3 + $0x48] sm:$0xff] %vm1499_vm11, %v1470_v11  ;;  %v1956_v11 = vld [vmem:[#allocation5 + $0x8] sm:$0xff] }
 0x148   : > { %v570_v15 = vpop.permute.xlu1 %569 }
 0x149   : > { %607 = vst.msk [vmem:[#allocation3 + $0x58] sm:$0xff] %vm595_vm4, %v570_v15 }
 0x14a   : > { %v697_v52 = vpop.permute.xlu0 %696  ;;  %v1524_v16 = vld [vmem:[#allocation3 + $0x40] sm:$0xff] }
 0x14b   : > { %735 = vst.msk [vmem:[#allocation3 + $0x50] sm:$0xff] %vm724_vm5, %v697_v52  ;;  %3567 = vmatprep.mubr.msk.bf16.mxu0 %vm1559_vm12, %v1524_v16  ;;  %v1969_v52 = vpack.c.bf16 %v1956_v11, %v1955_v8  ;;  %v2216_v8 = vld [vmem:[#allocation5 + $0x52] sm:$0xff] }
 0x14c   : > { %v699_v17 = vpop.permute.xlu1 %698 }
 0x14d   : > { %736 = vst.msk [vmem:[#allocation3 + $0x58] sm:$0xff] %vm724_vm5, %v699_v17 }
 0x14e   : > { %v826_v7 = vpop.permute.xlu0 %825  ;;  %v1525_v22 = vld [vmem:[#allocation3 + $0x48] sm:$0xff]  ;;  %1976 = vst.msk [vmem:[#allocation6] sm:$0xff] %vm1773_vm13, %v1969_v52 }
 0x14f   : > { %864 = vst.msk [vmem:[#allocation3 + $0x50] sm:$0xff] %vm853_vm6, %v826_v7  ;;  %3568 = vmatmul.mubr.msk.bf16.gmra.mrb[16].mxu0 %vm1559_vm12, %v1525_v22 }
 0x150   : > { %v828_v36 = vpop.permute.xlu1 %827 }
 0x151   : > { %865 = vst.msk [vmem:[#allocation3 + $0x58] sm:$0xff] %vm853_vm6, %v828_v36 }
 0x152   : > { %v955_v59 = vpop.permute.xlu0 %954 }
 0x153   : > { %993 = vst.msk [vmem:[#allocation3 + $0x50] sm:$0xff] %vm982_vm7, %v955_v59 }
 0x154   : > { %v957_v56 = vpop.permute.xlu1 %956 }
 0x155   : > { %994 = vst.msk [vmem:[#allocation3 + $0x58] sm:$0xff] %vm982_vm7, %v957_v56 }
 0x156   : > { %v1084_v5 = vpop.permute.xlu0 %1083 }
 0x157   : > { %1122 = vst.msk [vmem:[#allocation3 + $0x50] sm:$0xff] %vm1111_vm8, %v1084_v5 }
 0x158   : > { %v1086_v18 = vpop.permute.xlu1 %1085 }
 0x159   : > { %1123 = vst.msk [vmem:[#allocation3 + $0x58] sm:$0xff] %vm1111_vm8, %v1086_v18 }
 0x15a   : > { %v1214_v13 = vpop.permute.xlu0 %1213 }
 0x15b   : > { %1252 = vst.msk [vmem:[#allocation3 + $0x50] sm:$0xff] %vm1241_vm9, %v1214_v13 }
 0x15c   : > { %v1216_v28 = vpop.permute.xlu1 %1215 }
 0x15d   : > { %1253 = vst.msk [vmem:[#allocation3 + $0x58] sm:$0xff] %vm1241_vm9, %v1216_v28 }
 0x15e   : > { %v1343_v31 = vpop.permute.xlu0 %1342 }
 0x15f   : > { %1381 = vst.msk [vmem:[#allocation3 + $0x50] sm:$0xff] %vm1370_vm10, %v1343_v31  ;;  %v2155_v31 = vld [vmem:[#allocation5 + $0x21] sm:$0xff] }
 0x160   : > { %v1345_v33 = vpop.permute.xlu1 %1344 }
 0x161   : > { %1382 = vst.msk [vmem:[#allocation3 + $0x58] sm:$0xff] %vm1370_vm10, %v1345_v33 }
 0x162   : > { %v1472_v35 = vpop.permute.xlu0 %1471 }
 0x163   : > { %1510 = vst.msk [vmem:[#allocation3 + $0x50] sm:$0xff] %vm1499_vm11, %v1472_v35 }
 0x164   : > { %v572_v21 = vpop.permute.xlu1 %571 }
 0x165   : > { %608 = vst.msk [vmem:[#allocation3 + $0x60] sm:$0xff] %vm595_vm4, %v572_v21 }
 0x166   : > { %v1474_v41 = vpop.permute.xlu0 %1473 }
 0x167   : > { %1511 = vst.msk [vmem:[#allocation3 + $0x58] sm:$0xff] %vm1499_vm11, %v1474_v41 }
 0x168   : > { %v574_v42 = vpop.permute.xlu1 %573 }
 0x169   : > { %609 = vst.msk [vmem:[#allocation3 + $0x68] sm:$0xff] %vm595_vm4, %v574_v42 }
 0x16a   : > { %v701_v43 = vpop.permute.xlu0 %700  ;;  %v1526_v30 = vld [vmem:[#allocation3 + $0x50] sm:$0xff] }
 0x16b   : > { %737 = vst.msk [vmem:[#allocation3 + $0x60] sm:$0xff] %vm724_vm5, %v701_v43  ;;  %3571 = vmatprep.mubr.msk.bf16.mxu1 %vm1559_vm12, %v1526_v30  ;;  %v2212_v30 = vld [vmem:[#allocation5 + $0x22] sm:$0xff] }
 0x16c   : > { %v703_v24 = vpop.permute.xlu1 %702 }
 0x16d   : > { %738 = vst.msk [vmem:[#allocation3 + $0x68] sm:$0xff] %vm724_vm5, %v703_v24 }
 0x16e   : > { %v830_v44 = vpop.permute.xlu0 %829  ;;  %v1527_v23 = vld [vmem:[#allocation3 + $0x58] sm:$0xff] }
 0x16f   : > { %866 = vst.msk [vmem:[#allocation3 + $0x60] sm:$0xff] %vm853_vm6, %v830_v44  ;;  %3572 = vmatmul.mubr.msk.bf16.vlgmr.msra.gmra.mrb[0].mxu1 %vm1559_vm12, %v1527_v23 }
 0x170   : > { %v832_v48 = vpop.permute.xlu1 %831 }
 0x171   : > { %867 = vst.msk [vmem:[#allocation3 + $0x68] sm:$0xff] %vm853_vm6, %v832_v48 }
 0x172   : > { %v959_v25 = vpop.permute.xlu0 %958 }
 0x173   : > { %995 = vst.msk [vmem:[#allocation3 + $0x60] sm:$0xff] %vm982_vm7, %v959_v25 }
 0x174   : > { %v961_v29 = vpop.permute.xlu1 %960 }
 0x175   : > { %996 = vst.msk [vmem:[#allocation3 + $0x68] sm:$0xff] %vm982_vm7, %v961_v29 }
 0x176   : > { %v1088_v34 = vpop.permute.xlu0 %1087 }
 0x177   : > { %1124 = vst.msk [vmem:[#allocation3 + $0x60] sm:$0xff] %vm1111_vm8, %v1088_v34 }
 0x178   : > { %v1090_v40 = vpop.permute.xlu1 %1089 }
 0x179   : > { %1125 = vst.msk [vmem:[#allocation3 + $0x68] sm:$0xff] %vm1111_vm8, %v1090_v40 }
 0x17a   : > { %v1218_v46 = vpop.permute.xlu0 %1217 }
 0x17b   : > { %1254 = vst.msk [vmem:[#allocation3 + $0x60] sm:$0xff] %vm1241_vm9, %v1218_v46 }
 0x17c   : > { %v1220_v47 = vpop.permute.xlu1 %1219 }
 0x17d   : > { %1255 = vst.msk [vmem:[#allocation3 + $0x68] sm:$0xff] %vm1241_vm9, %v1220_v47 }
 0x17e   : > { %v1347_v27 = vpop.permute.xlu0 %1346 }
 0x17f   : > { %1383 = vst.msk [vmem:[#allocation3 + $0x60] sm:$0xff] %vm1370_vm10, %v1347_v27 }
 0x180   : > { %v1349_v50 = vpop.permute.xlu1 %1348 }
 0x181   : > { %1384 = vst.msk [vmem:[#allocation3 + $0x68] sm:$0xff] %vm1370_vm10, %v1349_v50 }
 0x182   : > { %v1476_v58 = vpop.permute.xlu0 %1475 }
 0x183   : > { %1512 = vst.msk [vmem:[#allocation3 + $0x60] sm:$0xff] %vm1499_vm11, %v1476_v58 }
 0x184   : > { %v576_v53 = vpop.permute.xlu1 %575 }
 0x185   : > { %610 = vst.msk [vmem:[#allocation3 + $0x70] sm:$0xff] %vm595_vm4, %v576_v53 }
 0x186   : > { %v1478_v45 = vpop.permute.xlu0 %1477 }
 0x187   : > { %1513 = vst.msk [vmem:[#allocation3 + $0x68] sm:$0xff] %vm1499_vm11, %v1478_v45 }
 0x188   : > { %v578_v54 = vpop.permute.xlu1 %577 }
 0x189   : > { %611 = vst.msk [vmem:[#allocation3 + $0x78] sm:$0xff] %vm595_vm4, %v578_v54  ;;  %vm2260_vm4 = vcmask 786048  }
 0x18a   : > { %v1528_v55 = vld [vmem:[#allocation3 + $0x60] sm:$0xff]  ;;  %v705_v57 = vpop.permute.xlu0 %704 }
 0x18b   : > { %3575 = vmatprep.mubr.msk.bf16.mxu1 %vm1559_vm12, %v1528_v55  ;;  %739 = vst.msk [vmem:[#allocation3 + $0x70] sm:$0xff] %vm724_vm5, %v705_v57  ;;  %v2384_v57 = vld [vmem:[#allocation5 + $0x3a] sm:$0xff] }
 0x18c   : > { %v707_v26 = vpop.permute.xlu1 %706 }
 0x18d   : > { %740 = vst.msk [vmem:[#allocation3 + $0x78] sm:$0xff] %vm724_vm5, %v707_v26  ;;  %vm2318_vm5 = vcmask 917248  }
 0x18e   : > { %v1529_v2 = vld [vmem:[#allocation3 + $0x68] sm:$0xff]  ;;  %v834_v60 = vpop.permute.xlu0 %833 }
 0x18f   : > { %3576 = vmatmul.mubr.msk.bf16.gmra.mrb[4].mxu1 %vm1559_vm12, %v1529_v2  ;;  %868 = vst.msk [vmem:[#allocation3 + $0x70] sm:$0xff] %vm853_vm6, %v834_v60 }
 0x190   : > { %v836_v10 = vpop.permute.xlu1 %835 }
 0x191   : > { %869 = vst.msk [vmem:[#allocation3 + $0x78] sm:$0xff] %vm853_vm6, %v836_v10  ;;  %vm2375_vm6 = vcmask 1048448  }
 0x192   : > { %v963_v39 = vpop.permute.xlu0 %962 }
 0x193   : > { %997 = vst.msk [vmem:[#allocation3 + $0x70] sm:$0xff] %vm982_vm7, %v963_v39 }
 0x194   : > { %v965_v14 = vpop.permute.xlu1 %964 }
 0x195   : > { %998 = vst.msk [vmem:[#allocation3 + $0x78] sm:$0xff] %vm982_vm7, %v965_v14 }
 0x196   : > { %v1092_v20 = vpop.permute.xlu0 %1091 }
 0x197   : > { %1126 = vst.msk [vmem:[#allocation3 + $0x70] sm:$0xff] %vm1111_vm8, %v1092_v20 }
 0x198   : > { %v1094_v61 = vpop.permute.xlu1 %1093 }
 0x199   : > { %1127 = vst.msk [vmem:[#allocation3 + $0x78] sm:$0xff] %vm1111_vm8, %v1094_v61  ;;  %vm3337_vm8 = vcmask 64512  }
 0x19a   : > { %v1222_v0 = vpop.permute.xlu0 %1221 }
 0x19b   : > { %1256 = vst.msk [vmem:[#allocation3 + $0x70] sm:$0xff] %vm1241_vm9, %v1222_v0 }
 0x19c   : > { %v1224_v62 = vpop.permute.xlu1 %1223 }
 0x19d   : > { %1257 = vst.msk [vmem:[#allocation3 + $0x78] sm:$0xff] %vm1241_vm9, %v1224_v62  ;;  %vm3353_vm9 = vcmask 57344  }
 0x19e   : > { %v1351_v37 = vpop.permute.xlu0 %1350 }
 0x19f   : > { %1385 = vst.msk [vmem:[#allocation3 + $0x70] sm:$0xff] %vm1370_vm10, %v1351_v37 }
 0x1a0   : > { %v1353_v1 = vpop.permute.xlu1 %1352 }
 0x1a1   : > { %1386 = vst.msk [vmem:[#allocation3 + $0x78] sm:$0xff] %vm1370_vm10, %v1353_v1 }
 0x1a2   : > { %v3553_v63 = vpop.f32.mrb[0].mxu0  ;;  %v1480_v12 = vpop.permute.xlu0 %1479 }
 0x1a3   : > { %v1653_v51 = vadd.f32 %v3553_v63, %v4651_v49  ;;  %v1646_v3 = vpop.f32.mrb[1].mxu0  ;;  %1514 = vst.msk [vmem:[#allocation3 + $0x70] sm:$0xff] %vm1499_vm11, %v1480_v12 }
 0x1a4   : > { %v3554_v9 = vpop.f32.mrb[2].mxu0  ;;  %v1482_v38 = vpop.permute.xlu1 %1481 }
 0x1a5   : > { %v1757_v32 = vmax.f32 %v1653_v51, 0.0  ;;  %v1656_v4 = vadd.f32 %v3554_v9, %v4651_v49  ;;  %v1648_v19 = vpop.f32.mrb[3].mxu0  ;;  %1515 = vst.msk [vmem:[#allocation3 + $0x78] sm:$0xff] %vm1499_vm11, %v1482_v38 }
 0x1a6   : > { %v2012_v17 = vpop.permute.xlu0 %2011 }
 0x1a7   : > { %1774 = vst.msk [vmem:[#allocation4] sm:$0xff] %vm1773_vm13, %v1757_v32  ;;  %v1758_v6 = vmax.f32 %v1656_v4, 0.0 }
 0x1a8   : > { %2033 = vst.msk [vmem:[#allocation6] sm:$0xff] %vm2032_vm0, %v2012_v17  ;;  %v2069_v7 = vpop.permute.xlu1 %2068 }
 0x1a9   : > { %1775 = vst.msk [vmem:[#allocation4 + $0x8] sm:$0xff] %vm1773_vm13, %v1758_v6 }
 0x1aa   : > { %v1530_v15 = vld [vmem:[#allocation3 + $0x70] sm:$0xff]  ;;  %2090 = vst.msk [vmem:[#allocation6] sm:$0xff] %vm2089_vm1, %v2069_v7 }
 0x1ab   : > { %3579 = vmatprep.mubr.msk.bf16.mxu1 %vm1559_vm12, %v1530_v15 }
 0x1ac   : > { %v1531_v16 = vld [vmem:[#allocation3 + $0x78] sm:$0xff] }
 0x1ad   : > { %3580 = vmatmul.mubr.msk.bf16.gmra.mrb[8].mxu1 %vm1559_vm12, %v1531_v16 }
 0x1ae   : > { %v1827_v22 = vld [vmem:[#allocation4 + $0x1] sm:$0x1]  ;;  %v1843_v36 = vld [vmem:[#allocation4 + $0x3] sm:$0x1]  ;;  %v1859_v59 = vld [vmem:[#allocation4 + $0x5] sm:$0x1] }
 0x1af   : > { %1835 = vst.msk [vmem:[#allocation5 + $0x19] sm:$0x1] %vm1802_vm14, %v1827_v22  ;;  %1851 = vst.msk [vmem:[#allocation5 + $0x1a] sm:$0x1] %vm1802_vm14, %v1843_v36  ;;  %v1875_v56 = vld [vmem:[#allocation4 + $0x7] sm:$0x1] }
 0x1b0   : > { %1867 = vst.msk [vmem:[#allocation5 + $0x1b] sm:$0x1] %vm1802_vm14, %v1859_v59  ;;  %1883 = vst.msk [vmem:[#allocation5 + $0x1c] sm:$0x1] %vm1802_vm14, %v1875_v56  ;;  %v1891_v5 = vld [vmem:[#allocation4 + $0x9] sm:$0x1] }
 0x1b1   : > { %v1907_v18 = vld [vmem:[#allocation4 + $0xb] sm:$0x1]  ;;  %v1923_v13 = vld [vmem:[#allocation4 + $0xd] sm:$0x1]  ;;  %1899 = vst.msk [vmem:[#allocation5 + $0x1d] sm:$0x1] %vm1802_vm14, %v1891_v5 }
 0x1b2   : > { %1915 = vst.msk [vmem:[#allocation5 + $0x1e] sm:$0x1] %vm1802_vm14, %v1907_v18  ;;  %1931 = vst.msk [vmem:[#allocation5 + $0x1f] sm:$0x1] %vm1802_vm14, %v1923_v13  ;;  %v1939_v28 = vld [vmem:[#allocation4 + $0xf] sm:$0x1] }
 0x1b3   : > { %1947 = vst.msk [vmem:[#allocation5 + $0x20] sm:$0x1] %vm1802_vm14, %v1939_v28 }
 0x1b9   : > { %v2097_v33 = vld [vmem:[#allocation5 + $0x18] sm:$0xff] }
 0x1ba   : > { %v2098_v35 = vld [vmem:[#allocation5 + $0x20] sm:$0xff] }
 0x1bb   : > { %v2154_v21 = vld [vmem:[#allocation5 + $0x19] sm:$0xff]  ;;  %v2111_v41 = vpack.c.bf16 %v2098_v35, %v2097_v33 }
 0x1bc   : > { %v2168_v42 = vpack.c.bf16 %v2155_v31, %v2154_v21  ;;  %v2211_v43 = vld [vmem:[#allocation5 + $0x1a] sm:$0xff] }
 0x1bd   : > { %2125 = vrot.lane.b32.xlu0 %v2111_v41, %s3739_s20  ;;  %1977 = vst.msk [vmem:[#allocation6 + $0x10] sm:$0xff] %vm1773_vm13, %v2111_v41  ;;  %v2225_v24 = vpack.c.bf16 %v2212_v30, %v2211_v43  ;;  %v2218_v30 = vld [vmem:[#allocation5 + $0x6a] sm:$0xff] }
 0x1be   : > { %2182 = vrot.lane.b32.xlu1 %v2168_v42, %s3740_s22 }
 0x1c1   : > { %2239 = vrot.lane.b32.xlu0 %v2225_v24, %s3741_s23 }
 0x1c2   : > { %2013 = vrot.lane.b32.xlu1 %v2168_v42, %s3734_s21  ;;  %v3557_v44 = vpop.f32.mrb[4].mxu0 }
 0x1c3   : > { %v1667_v23 = vadd.f32 %v3557_v44, %v4651_v49  ;;  %v1660_v48 = vpop.f32.mrb[5].mxu0 }
 0x1c4   : > { %v3558_v25 = vpop.f32.mrb[6].mxu0 }
 0x1c5   : > { %2070 = vrot.lane.b32.xlu0 %v2225_v24, %s3738_s8  ;;  %v1759_v29 = vmax.f32 %v1667_v23, 0.0  ;;  %v1670_v34 = vadd.f32 %v3558_v25, %v4651_v49  ;;  %v1662_v40 = vpop.f32.mrb[7].mxu0 }
 0x1c7   : > { %1777 = vst.msk [vmem:[#allocation4 + $0x10] sm:$0xff] %vm1773_vm13, %v1759_v29  ;;  %v1760_v46 = vmax.f32 %v1670_v34, 0.0 }
 0x1c9   : > { %1778 = vst.msk [vmem:[#allocation4 + $0x18] sm:$0xff] %vm1773_vm13, %v1760_v46 }
 0x1ce   : > { %v1828_v47 = vld [vmem:[#allocation4 + $0x11] sm:$0x1]  ;;  %v1844_v27 = vld [vmem:[#allocation4 + $0x13] sm:$0x1]  ;;  %v1860_v50 = vld [vmem:[#allocation4 + $0x15] sm:$0x1] }
 0x1cf   : > { %1836 = vst.msk [vmem:[#allocation5 + $0x31] sm:$0x1] %vm1802_vm14, %v1828_v47  ;;  %1852 = vst.msk [vmem:[#allocation5 + $0x32] sm:$0x1] %vm1802_vm14, %v1844_v27  ;;  %v1876_v58 = vld [vmem:[#allocation4 + $0x17] sm:$0x1] }
 0x1d0   : > { %1868 = vst.msk [vmem:[#allocation5 + $0x33] sm:$0x1] %vm1802_vm14, %v1860_v50  ;;  %1884 = vst.msk [vmem:[#allocation5 + $0x34] sm:$0x1] %vm1802_vm14, %v1876_v58  ;;  %v1892_v53 = vld [vmem:[#allocation4 + $0x19] sm:$0x1] }
 0x1d1   : > { %v1908_v45 = vld [vmem:[#allocation4 + $0x1b] sm:$0x1]  ;;  %v1924_v54 = vld [vmem:[#allocation4 + $0x1d] sm:$0x1]  ;;  %1900 = vst.msk [vmem:[#allocation5 + $0x35] sm:$0x1] %vm1802_vm14, %v1892_v53 }
 0x1d2   : > { %1916 = vst.msk [vmem:[#allocation5 + $0x36] sm:$0x1] %vm1802_vm14, %v1908_v45  ;;  %1932 = vst.msk [vmem:[#allocation5 + $0x37] sm:$0x1] %vm1802_vm14, %v1924_v54  ;;  %v1940_v55 = vld [vmem:[#allocation4 + $0x1f] sm:$0x1] }
 0x1d3   : > { %1948 = vst.msk [vmem:[#allocation5 + $0x38] sm:$0x1] %vm1802_vm14, %v1940_v55 }
 0x1d9   : > { %v2269_v26 = vld [vmem:[#allocation5 + $0x30] sm:$0xff] }
 0x1da   : > { %v2383_v2 = vld [vmem:[#allocation5 + $0x32] sm:$0xff] }
 0x1db   : > { %v4691_v60 = vpack.c.bf16 %v2384_v57, %v2383_v2  ;;  %v2270_v10 = vld [vmem:[#allocation5 + $0x38] sm:$0xff] }
 0x1dc   : > { %v4693_v39 = vpack.c.bf16 %v2270_v10, %v2269_v26 }
 0x1dd   : > { %2404 = vst.msk [vmem:[#allocation6 + $0x8] sm:$0xff] %vm1773_vm13, %v4691_v60 }
 0x1de   : > { %1978 = vst.msk [vmem:[#allocation6 + $0x20] sm:$0xff] %vm1773_vm13, %v4693_v39 }
 0x1e2   : > { %v3561_v14 = vpop.f32.mrb[8].mxu0 }
 0x1e3   : > { %v1681_v20 = vadd.f32 %v3561_v14, %v4651_v49  ;;  %v1674_v61 = vpop.f32.mrb[9].mxu0 }
 0x1e4   : > { %v2412_v0 = vld [vmem:[#allocation6 + $0x8] sm:$0xff]  ;;  %v3562_v62 = vpop.f32.mrb[10].mxu0 }
 0x1e5   : > { %3495 = vmatprep.mubr.msk.bf16.mxu1 %vm1773_vm13, %v2412_v0  ;;  %v1761_v37 = vmax.f32 %v1681_v20, 0.0  ;;  %v1684_v1 = vadd.f32 %v3562_v62, %v4651_v49  ;;  %v1676_v63 = vpop.f32.mrb[11].mxu0  ;;  %v3648_v62 = vld [vmem:[%s5279_s3] sm:$0xff]  }
 0x1e6   : > { %v2220_v63 = vld [vmem:[#allocation5 + $0x82] sm:$0xff] }
 0x1e7   : > { %1780 = vst.msk [vmem:[#allocation4 + $0x20] sm:$0xff] %vm1773_vm13, %v1761_v37  ;;  %v1762_v12 = vmax.f32 %v1684_v1, 0.0  ;;  %v3742_v37 = vmov 0  }
 0x1e8   : > { %2525 = vmatprep.subr.bf16.mxu1 %v3742_v37  ;;  %3246 = vmatprep.subr.bf16.mxu0 %v3742_v37 }
 0x1e9   : > { %1781 = vst.msk [vmem:[#allocation4 + $0x28] sm:$0xff] %vm1773_vm13, %v1762_v12  ;;  %2526 = vmatpush1.bf16.msra.mxu1 %v3648_v62 }
 0x1ea   : > { %2527 = vmatprep.subr.bf16.mxu1 %v3742_v37 }
 0x1ee   : > { %v1829_v51 = vld [vmem:[#allocation4 + $0x21] sm:$0x1]  ;;  %v1845_v3 = vld [vmem:[#allocation4 + $0x23] sm:$0x1]  ;;  %v1861_v9 = vld [vmem:[#allocation4 + $0x25] sm:$0x1] }
 0x1ef   : > { %1837 = vst.msk [vmem:[#allocation5 + $0x49] sm:$0x1] %vm1802_vm14, %v1829_v51  ;;  %1853 = vst.msk [vmem:[#allocation5 + $0x4a] sm:$0x1] %vm1802_vm14, %v1845_v3  ;;  %v1877_v38 = vld [vmem:[#allocation4 + $0x27] sm:$0x1] }
 0x1f0   : > { %1869 = vst.msk [vmem:[#allocation5 + $0x4b] sm:$0x1] %vm1802_vm14, %v1861_v9  ;;  %1885 = vst.msk [vmem:[#allocation5 + $0x4c] sm:$0x1] %vm1802_vm14, %v1877_v38  ;;  %v1893_v32 = vld [vmem:[#allocation4 + $0x29] sm:$0x1] }
 0x1f1   : > { %v1909_v4 = vld [vmem:[#allocation4 + $0x2b] sm:$0x1]  ;;  %v1925_v19 = vld [vmem:[#allocation4 + $0x2d] sm:$0x1]  ;;  %1901 = vst.msk [vmem:[#allocation5 + $0x4d] sm:$0x1] %vm1802_vm14, %v1893_v32 }
 0x1f2   : > { %1917 = vst.msk [vmem:[#allocation5 + $0x4e] sm:$0x1] %vm1802_vm14, %v1909_v4  ;;  %1933 = vst.msk [vmem:[#allocation5 + $0x4f] sm:$0x1] %vm1802_vm14, %v1925_v19  ;;  %v1941_v6 = vld [vmem:[#allocation4 + $0x2f] sm:$0x1] }
 0x1f3   : > { %1949 = vst.msk [vmem:[#allocation5 + $0x50] sm:$0x1] %vm1802_vm14, %v1941_v6  ;;  %v3649_v51 = vld [vmem:[%s5279_s3 + $0x8] sm:$0xff]   ;;  %v3650_v4 = vld [vmem:[%s5279_s3 + $0x10] sm:$0xff]   ;;  %v3651_v19 = vld [vmem:[%s5279_s3 + $0x18] sm:$0xff]  }
 0x1f4   : > { %2528 = vmatpush1.bf16.msra.mxu1 %v3649_v51  ;;  %v2329_v51 = vld [vmem:[#allocation5 + $0x51] sm:$0xff] }
 0x1f5   : > { %2529 = vmatprep.subr.bf16.mxu1 %v3742_v37 }
 0x1f8   : > { %2530 = vmatpush1.bf16.msra.mxu1 %v3650_v4 }
 0x1f9   : > { %v2271_v11 = vld [vmem:[#allocation5 + $0x48] sm:$0xff]  ;;  %2531 = vmatprep.subr.bf16.mxu1 %v3742_v37 }
 0x1fa   : > { %v2272_v15 = vld [vmem:[#allocation5 + $0x50] sm:$0xff] }
 0x1fb   : > { %v2215_v52 = vld [vmem:[#allocation5 + $0x4a] sm:$0xff]  ;;  %v4712_v16 = vpack.c.bf16 %v2272_v15, %v2271_v11 }
 0x1fc   : > { %v4714_v17 = vpack.c.bf16 %v2216_v8, %v2215_v52  ;;  %2532 = vmatpush1.bf16.msra.mxu1 %v3651_v19 }
 0x1fd   : > { %1979 = vst.msk [vmem:[#allocation6 + $0x30] sm:$0xff] %vm1773_vm13, %v4712_v16  ;;  %2533 = vmatprep.subr.bf16.mxu1 %v3742_v37 }
 0x1fe   : > { %2405 = vst.msk [vmem:[#allocation6 + $0x18] sm:$0xff] %vm1773_vm13, %v4714_v17 }
 0x202   : > { %v3565_v7 = vpop.f32.mrb[12].mxu0 }
 0x203   : > { %v1695_v22 = vadd.f32 %v3565_v7, %v4651_v49  ;;  %v1688_v36 = vpop.f32.mrb[13].mxu0 }
 0x204   : > { %v3566_v59 = vpop.f32.mrb[14].mxu0 }
 0x205   : > { %v1763_v56 = vmax.f32 %v1695_v22, 0.0  ;;  %v1698_v5 = vadd.f32 %v3566_v59, %v4651_v49  ;;  %v1690_v18 = vpop.f32.mrb[15].mxu0 }
 0x207   : > { %1783 = vst.msk [vmem:[#allocation4 + $0x30] sm:$0xff] %vm1773_vm13, %v1763_v56  ;;  %v1764_v13 = vmax.f32 %v1698_v5, 0.0 }
 0x209   : > { %1784 = vst.msk [vmem:[#allocation4 + $0x38] sm:$0xff] %vm1773_vm13, %v1764_v13  ;;  %v3652_v13 = vld [vmem:[%s5279_s3 + $0x20] sm:$0xff]  }
 0x20a   : > { %2534 = vmatpush1.bf16.msra.mxu1 %v3652_v13 }
 0x20b   : > { %2535 = vmatprep.subr.bf16.mxu1 %v3742_v37 }
 0x20e   : > { %v1830_v28 = vld [vmem:[#allocation4 + $0x31] sm:$0x1]  ;;  %v1846_v31 = vld [vmem:[#allocation4 + $0x33] sm:$0x1]  ;;  %v1862_v33 = vld [vmem:[#allocation4 + $0x35] sm:$0x1] }
 0x20f   : > { %1838 = vst.msk [vmem:[#allocation5 + $0x61] sm:$0x1] %vm1802_vm14, %v1830_v28  ;;  %1854 = vst.msk [vmem:[#allocation5 + $0x62] sm:$0x1] %vm1802_vm14, %v1846_v31  ;;  %v1878_v35 = vld [vmem:[#allocation4 + $0x37] sm:$0x1] }
 0x210   : > { %1870 = vst.msk [vmem:[#allocation5 + $0x63] sm:$0x1] %vm1802_vm14, %v1862_v33  ;;  %1886 = vst.msk [vmem:[#allocation5 + $0x64] sm:$0x1] %vm1802_vm14, %v1878_v35  ;;  %v1894_v21 = vld [vmem:[#allocation4 + $0x39] sm:$0x1] }
 0x211   : > { %v1910_v41 = vld [vmem:[#allocation4 + $0x3b] sm:$0x1]  ;;  %v1926_v42 = vld [vmem:[#allocation4 + $0x3d] sm:$0x1]  ;;  %1902 = vst.msk [vmem:[#allocation5 + $0x65] sm:$0x1] %vm1802_vm14, %v1894_v21 }
 0x212   : > { %1918 = vst.msk [vmem:[#allocation5 + $0x66] sm:$0x1] %vm1802_vm14, %v1910_v41  ;;  %1934 = vst.msk [vmem:[#allocation5 + $0x67] sm:$0x1] %vm1802_vm14, %v1926_v42  ;;  %v1942_v43 = vld [vmem:[#allocation4 + $0x3f] sm:$0x1] }
 0x213   : > { %1950 = vst.msk [vmem:[#allocation5 + $0x68] sm:$0x1] %vm1802_vm14, %v1942_v43  ;;  %v3653_v21 = vld [vmem:[%s5279_s3 + $0x28] sm:$0xff]   ;;  %v3654_v41 = vld [vmem:[%s5279_s3 + $0x30] sm:$0xff]   ;;  %v2335_v42 = vld [vmem:[#allocation5 + $0x99] sm:$0xff] }
 0x214   : > { %2536 = vmatpush1.bf16.msra.mxu1 %v3653_v21  ;;  %v2222_v43 = vld [vmem:[#allocation5 + $0x9a] sm:$0xff] }
 0x215   : > { %2537 = vmatprep.subr.bf16.mxu1 %v3742_v37  ;;  %v2333_v21 = vld [vmem:[#allocation5 + $0x81] sm:$0xff] }
 0x218   : > { %2538 = vmatpush1.bf16.msra.mxu1 %v3654_v41 }
 0x219   : > { %v2273_v24 = vld [vmem:[#allocation5 + $0x60] sm:$0xff]  ;;  %2539 = vmatprep.subr.bf16.mxu1 %v3742_v37 }
 0x21a   : > { %v2274_v44 = vld [vmem:[#allocation5 + $0x68] sm:$0xff] }
 0x21b   : > { %v2217_v23 = vld [vmem:[#allocation5 + $0x62] sm:$0xff]  ;;  %v4732_v48 = vpack.c.bf16 %v2274_v44, %v2273_v24 }
 0x21c   : > { %v4734_v25 = vpack.c.bf16 %v2218_v30, %v2217_v23 }
 0x21d   : > { %1980 = vst.msk [vmem:[#allocation6 + $0x40] sm:$0xff] %vm1773_vm13, %v4732_v48 }
 0x21e   : > { %2406 = vst.msk [vmem:[#allocation6 + $0x28] sm:$0xff] %vm1773_vm13, %v4734_v25 }
 0x222   : > { %v3569_v29 = vpop.f32.mrb[16].mxu0 }
 0x223   : > { %v1709_v34 = vadd.f32 %v3569_v29, %v4651_v49  ;;  %v1702_v40 = vpop.f32.mrb[17].mxu0 }
 0x224   : > { %v3570_v46 = vpop.f32.mrb[18].mxu0 }
 0x225   : > { %v1765_v47 = vmax.f32 %v1709_v34, 0.0  ;;  %v1712_v27 = vadd.f32 %v3570_v46, %v4651_v49  ;;  %v1704_v50 = vpop.f32.mrb[19].mxu0  ;;  %v3655_v46 = vld [vmem:[%s5279_s3 + $0x38] sm:$0xff]  }
 0x226   : > { %2540 = vmatpush1.bf16.msra.mxu1 %v3655_v46  ;;  %v3656_v50 = vld [vmem:[%s5279_s3 + $0x40] sm:$0xff]  }
 0x227   : > { %1786 = vst.msk [vmem:[#allocation4 + $0x40] sm:$0xff] %vm1773_vm13, %v1765_v47  ;;  %v1766_v58 = vmax.f32 %v1712_v27, 0.0  ;;  %v2326_v47 = vld [vmem:[#allocation5 + $0x31] sm:$0xff]  ;;  %v2327_v27 = vld [vmem:[#allocation5 + $0x39] sm:$0xff]  ;;  %2541 = vmatprep.subr.bf16.mxu1 %v3742_v37 }
 0x229   : > { %1787 = vst.msk [vmem:[#allocation4 + $0x48] sm:$0xff] %vm1773_vm13, %v1766_v58 }
 0x22a   : > { %2542 = vmatpush1.bf16.msra.mxu1 %v3656_v50 }
 0x22e   : > { %v1831_v53 = vld [vmem:[#allocation4 + $0x41] sm:$0x1]  ;;  %v1847_v45 = vld [vmem:[#allocation4 + $0x43] sm:$0x1]  ;;  %v1863_v54 = vld [vmem:[#allocation4 + $0x45] sm:$0x1] }
 0x22f   : > { %v2126_v55 = vpop.permute.xlu0 %2125  ;;  %1839 = vst.msk [vmem:[#allocation5 + $0x79] sm:$0x1] %vm1802_vm14, %v1831_v53  ;;  %1855 = vst.msk [vmem:[#allocation5 + $0x7a] sm:$0x1] %vm1802_vm14, %v1847_v45  ;;  %v1879_v26 = vld [vmem:[#allocation4 + $0x47] sm:$0x1]  ;;  %v2340_v53 = vpack.c.bf16 %v2327_v27, %v2326_v47 }
 0x230   : > { %v2183_v57 = vpop.permute.xlu1 %2182  ;;  %1871 = vst.msk [vmem:[#allocation5 + $0x7b] sm:$0x1] %vm1802_vm14, %v1863_v54  ;;  %1887 = vst.msk [vmem:[#allocation5 + $0x7c] sm:$0x1] %vm1802_vm14, %v1879_v26  ;;  %v1895_v2 = vld [vmem:[#allocation4 + $0x49] sm:$0x1] }
 0x231   : > { %2147 = vst.msk [vmem:[#allocation6] sm:$0xff] %vm2146_vm2, %v2126_v55  ;;  %v1911_v10 = vld [vmem:[#allocation4 + $0x4b] sm:$0x1]  ;;  %v1927_v14 = vld [vmem:[#allocation4 + $0x4d] sm:$0x1] }
 0x232   : > { %2204 = vst.msk [vmem:[#allocation6] sm:$0xff] %vm2203_vm3, %v2183_v57  ;;  %v1943_v20 = vld [vmem:[#allocation4 + $0x4f] sm:$0x1] }
 0x233   : > { %1903 = vst.msk [vmem:[#allocation5 + $0x7d] sm:$0x1] %vm1802_vm14, %v1895_v2  ;;  %1919 = vst.msk [vmem:[#allocation5 + $0x7e] sm:$0x1] %vm1802_vm14, %v1911_v10  ;;  %v2240_v61 = vpop.permute.xlu0 %2239  ;;  %v2339_v27 = vld [vmem:[#allocation5 + $0xc9] sm:$0xff] }
 0x234   : > { %1935 = vst.msk [vmem:[#allocation5 + $0x7f] sm:$0x1] %vm1802_vm14, %v1927_v14  ;;  %1951 = vst.msk [vmem:[#allocation5 + $0x80] sm:$0x1] %vm1802_vm14, %v1943_v20  ;;  %v2014_v0 = vpop.permute.xlu1 %2013 }
 0x235   : > { %2261 = vst.msk [vmem:[#allocation6] sm:$0xff] %vm2260_vm4, %v2240_v61 }
 0x236   : > { %2034 = vst.msk [vmem:[#allocation6 + $0x10] sm:$0xff] %vm2032_vm0, %v2014_v0 }
 0x237   : > { %v2071_v1 = vpop.permute.xlu0 %2070 }
 0x238   : > { %2091 = vst.msk [vmem:[#allocation6 + $0x10] sm:$0xff] %vm2089_vm1, %v2071_v1 }
 0x23b   : > { %v2275_v12 = vld [vmem:[#allocation5 + $0x78] sm:$0xff]  ;;  %v2276_v3 = vld [vmem:[#allocation5 + $0x80] sm:$0xff] }
 0x23c   : > { %v2219_v9 = vld [vmem:[#allocation5 + $0x7a] sm:$0xff]  ;;  %v4766_v38 = vpack.c.bf16 %v2276_v3, %v2275_v12  ;;  %v2328_v12 = vld [vmem:[#allocation5 + $0x49] sm:$0xff] }
 0x23d   : > { %v4768_v32 = vpack.c.bf16 %v2220_v63, %v2219_v9  ;;  %v2341_v3 = vpack.c.bf16 %v2329_v51, %v2328_v12  ;;  %v2224_v9 = vld [vmem:[#allocation5 + $0xb2] sm:$0xff] }
 0x23e   : > { %1981 = vst.msk [vmem:[#allocation6 + $0x50] sm:$0xff] %vm1773_vm13, %v4766_v38 }
 0x23f   : > { %2407 = vst.msk [vmem:[#allocation6 + $0x38] sm:$0xff] %vm1773_vm13, %v4768_v32 }
 0x242   : > { %v3573_v6 = vpop.f32.mrb[0].mxu1 }
 0x243   : > { %v1723_v8 = vadd.f32 %v3573_v6, %v4651_v49  ;;  %v1716_v11 = vpop.f32.mrb[1].mxu1 }
 0x244   : > { %v3574_v15 = vpop.f32.mrb[2].mxu1 }
 0x245   : > { %v1767_v52 = vmax.f32 %v1723_v8, 0.0  ;;  %v1726_v7 = vadd.f32 %v3574_v15, %v4651_v49  ;;  %v1718_v22 = vpop.f32.mrb[3].mxu1 }
 0x247   : > { %1789 = vst.msk [vmem:[#allocation4 + $0x50] sm:$0xff] %vm1773_vm13, %v1767_v52  ;;  %v1768_v36 = vmax.f32 %v1726_v7, 0.0 }
 0x249   : > { %1790 = vst.msk [vmem:[#allocation4 + $0x58] sm:$0xff] %vm1773_vm13, %v1768_v36 }
 0x24e   : > { %v1832_v59 = vld [vmem:[#allocation4 + $0x51] sm:$0x1]  ;;  %v1848_v56 = vld [vmem:[#allocation4 + $0x53] sm:$0x1]  ;;  %v1864_v5 = vld [vmem:[#allocation4 + $0x55] sm:$0x1] }
 0x24f   : > { %1840 = vst.msk [vmem:[#allocation5 + $0x91] sm:$0x1] %vm1802_vm14, %v1832_v59  ;;  %1856 = vst.msk [vmem:[#allocation5 + $0x92] sm:$0x1] %vm1802_vm14, %v1848_v56  ;;  %v1880_v18 = vld [vmem:[#allocation4 + $0x57] sm:$0x1] }
 0x250   : > { %1872 = vst.msk [vmem:[#allocation5 + $0x93] sm:$0x1] %vm1802_vm14, %v1864_v5  ;;  %1888 = vst.msk [vmem:[#allocation5 + $0x94] sm:$0x1] %vm1802_vm14, %v1880_v18  ;;  %v1896_v28 = vld [vmem:[#allocation4 + $0x59] sm:$0x1] }
 0x251   : > { %v1912_v31 = vld [vmem:[#allocation4 + $0x5b] sm:$0x1]  ;;  %v1928_v33 = vld [vmem:[#allocation4 + $0x5d] sm:$0x1]  ;;  %1904 = vst.msk [vmem:[#allocation5 + $0x95] sm:$0x1] %vm1802_vm14, %v1896_v28 }
 0x252   : > { %1920 = vst.msk [vmem:[#allocation5 + $0x96] sm:$0x1] %vm1802_vm14, %v1912_v31  ;;  %1936 = vst.msk [vmem:[#allocation5 + $0x97] sm:$0x1] %vm1802_vm14, %v1928_v33  ;;  %v1944_v35 = vld [vmem:[#allocation4 + $0x5f] sm:$0x1] }
 0x253   : > { %1952 = vst.msk [vmem:[#allocation5 + $0x98] sm:$0x1] %vm1802_vm14, %v1944_v35  ;;  %v2330_v5 = vld [vmem:[#allocation5 + $0x61] sm:$0xff] }
 0x259   : > { %v2277_v30 = vld [vmem:[#allocation5 + $0x90] sm:$0xff] }
 0x25a   : > { %v2334_v24 = vld [vmem:[#allocation5 + $0x91] sm:$0xff] }
 0x25b   : > { %v2278_v44 = vld [vmem:[#allocation5 + $0x98] sm:$0xff]  ;;  %v4806_v29 = vpack.c.bf16 %v2335_v42, %v2334_v24 }
 0x25c   : > { %v2221_v23 = vld [vmem:[#allocation5 + $0x92] sm:$0xff]  ;;  %v2287_v34 = vpack.c.bf16 %v2278_v44, %v2277_v30 }
 0x25d   : > { %v4808_v40 = vpack.c.bf16 %v2222_v43, %v2221_v23  ;;  %2362 = vrot.lane.b32.xlu0 %v4806_v29, %s3743_s17  ;;  %v2396_v43 = vld [vmem:[#allocation5 + $0xca] sm:$0xff] }
 0x25e   : > { %2305 = vrot.lane.b32.xlu1 %v2287_v34, %s3744_s19  ;;  %1982 = vst.msk [vmem:[#allocation6 + $0x60] sm:$0xff] %vm1773_vm13, %v2287_v34  ;;  %v2337_v23 = vld [vmem:[#allocation5 + $0xb1] sm:$0xff] }
 0x25f   : > { %2408 = vst.msk [vmem:[#allocation6 + $0x48] sm:$0xff] %vm1773_vm13, %v4808_v40 }
 0x261   : > { %2192 = vrot.lane.b32.xlu0 %v4806_v29, %s3740_s22 }
 0x262   : > { %2135 = vrot.lane.b32.xlu1 %v2287_v34, %s3739_s20  ;;  %v3577_v58 = vpop.f32.mrb[4].mxu1 }
 0x263   : > { %v1737_v45 = vadd.f32 %v3577_v58, %v4651_v49  ;;  %v1730_v54 = vpop.f32.mrb[5].mxu1 }
 0x264   : > { %v3578_v55 = vpop.f32.mrb[6].mxu1 }
 0x265   : > { %2354 = vrot.lane.b32.xlu0 %v2340_v53, %s3743_s17  ;;  %v1769_v57 = vmax.f32 %v1737_v45, 0.0  ;;  %v1740_v26 = vadd.f32 %v3578_v55, %v4651_v49  ;;  %v1732_v2 = vpop.f32.mrb[7].mxu1 }
 0x266   : > { %2249 = vrot.lane.b32.xlu1 %v4808_v40, %s3741_s23 }
 0x267   : > { %1792 = vst.msk [vmem:[#allocation4 + $0x60] sm:$0xff] %vm1773_vm13, %v1769_v57  ;;  %v1770_v10 = vmax.f32 %v1740_v26, 0.0 }
 0x269   : > { %2184 = vrot.lane.b32.xlu0 %v2340_v53, %s3740_s22  ;;  %1793 = vst.msk [vmem:[#allocation4 + $0x68] sm:$0xff] %vm1773_vm13, %v1770_v10 }
 0x26a   : > { %2297 = vrot.lane.b32.xlu1 %v4693_v39, %s3744_s19 }
 0x26d   : > { %2015 = vrot.lane.b32.xlu0 %v2340_v53, %s3734_s21 }
 0x26e   : > { %2127 = vrot.lane.b32.xlu1 %v4693_v39, %s3739_s20  ;;  %v1833_v14 = vld [vmem:[#allocation4 + $0x61] sm:$0x1]  ;;  %v1849_v20 = vld [vmem:[#allocation4 + $0x63] sm:$0x1]  ;;  %v1865_v61 = vld [vmem:[#allocation4 + $0x65] sm:$0x1] }
 0x26f   : > { %1841 = vst.msk [vmem:[#allocation5 + $0xa9] sm:$0x1] %vm1802_vm14, %v1833_v14  ;;  %1857 = vst.msk [vmem:[#allocation5 + $0xaa] sm:$0x1] %vm1802_vm14, %v1849_v20  ;;  %v1881_v0 = vld [vmem:[#allocation4 + $0x67] sm:$0x1] }
 0x270   : > { %1873 = vst.msk [vmem:[#allocation5 + $0xab] sm:$0x1] %vm1802_vm14, %v1865_v61  ;;  %1889 = vst.msk [vmem:[#allocation5 + $0xac] sm:$0x1] %vm1802_vm14, %v1881_v0  ;;  %v1897_v62 = vld [vmem:[#allocation4 + $0x69] sm:$0x1] }
 0x271   : > { %v1913_v1 = vld [vmem:[#allocation4 + $0x6b] sm:$0x1]  ;;  %v1929_v63 = vld [vmem:[#allocation4 + $0x6d] sm:$0x1]  ;;  %1905 = vst.msk [vmem:[#allocation5 + $0xad] sm:$0x1] %vm1802_vm14, %v1897_v62 }
 0x272   : > { %2241 = vrot.lane.b32.xlu1 %v4691_v60, %s3741_s23  ;;  %1921 = vst.msk [vmem:[#allocation5 + $0xae] sm:$0x1] %vm1802_vm14, %v1913_v1  ;;  %1937 = vst.msk [vmem:[#allocation5 + $0xaf] sm:$0x1] %vm1802_vm14, %v1929_v63  ;;  %v1945_v39 = vld [vmem:[#allocation4 + $0x6f] sm:$0x1] }
 0x273   : > { %1953 = vst.msk [vmem:[#allocation5 + $0xb0] sm:$0x1] %vm1802_vm14, %v1945_v39  ;;  %v2414_v14 = vld [vmem:[#allocation6 + $0x18] sm:$0xff] }
 0x276   : > { %2072 = vrot.lane.b32.xlu1 %v4691_v60, %s3738_s8 }
 0x279   : > { %v2279_v4 = vld [vmem:[#allocation5 + $0xa8] sm:$0xff] }
 0x27a   : > { %2356 = vrot.lane.b32.xlu1 %v2341_v3, %s3743_s17  ;;  %v2280_v19 = vld [vmem:[#allocation5 + $0xb0] sm:$0xff] }
 0x27b   : > { %v2223_v6 = vld [vmem:[#allocation5 + $0xaa] sm:$0xff]  ;;  %v4853_v8 = vpack.c.bf16 %v2280_v19, %v2279_v4  ;;  %v2416_v4 = vld [vmem:[#allocation6 + $0x28] sm:$0xff] }
 0x27c   : > { %v4855_v11 = vpack.c.bf16 %v2224_v9, %v2223_v6  ;;  %v2336_v44 = vld [vmem:[#allocation5 + $0xa9] sm:$0xff] }
 0x27d   : > { %2307 = vrot.lane.b32.xlu0 %v4853_v8, %s3744_s19 }
 0x27e   : > { %2186 = vrot.lane.b32.xlu1 %v2341_v3, %s3740_s22  ;;  %2409 = vst.msk [vmem:[#allocation6 + $0x58] sm:$0xff] %vm1773_vm13, %v4855_v11 }
 0x280   : > { %v3581_v60 = vpop.f32.mrb[8].mxu1 }
 0x281   : > { %2299 = vrot.lane.b32.xlu0 %v4712_v16, %s3744_s19  ;;  %v1751_v15 = vadd.f32 %v3581_v60, %v4651_v49  ;;  %v1744_v52 = vpop.f32.mrb[9].mxu1 }
 0x282   : > { %2017 = vrot.lane.b32.xlu1 %v2341_v3, %s3734_s21  ;;  %v3582_v7 = vpop.f32.mrb[10].mxu1 }
 0x283   : > { %v1771_v22 = vmax.f32 %v1751_v15, 0.0  ;;  %v1754_v36 = vadd.f32 %v3582_v7, %v4651_v49  ;;  %v1746_v59 = vpop.f32.mrb[11].mxu1  ;;  %v2331_v49 = vld [vmem:[#allocation5 + $0x69] sm:$0xff] }
 0x284   : > { %v2342_v31 = vpack.c.bf16 %v2331_v49, %v2330_v5 }
 0x285   : > { %2129 = vrot.lane.b32.xlu0 %v4712_v16, %s3739_s20  ;;  %1795 = vst.msk [vmem:[#allocation4 + $0x70] sm:$0xff] %vm1773_vm13, %v1771_v22  ;;  %v1772_v56 = vmax.f32 %v1754_v36, 0.0  ;;  %v2418_v36 = vld [vmem:[#allocation6 + $0x38] sm:$0xff] }
 0x286   : > { %2301 = vrot.lane.b32.xlu1 %v4732_v48, %s3744_s19 }
 0x287   : > { %1796 = vst.msk [vmem:[#allocation4 + $0x78] sm:$0xff] %vm1773_vm13, %v1772_v56 }
 0x289   : > { %2243 = vrot.lane.b32.xlu0 %v4714_v17, %s3741_s23 }
 0x28a   : > { %2131 = vrot.lane.b32.xlu1 %v4732_v48, %s3739_s20 }
 0x28c   : > { %v1834_v16 = vld [vmem:[#allocation4 + $0x71] sm:$0x1]  ;;  %v1850_v18 = vld [vmem:[#allocation4 + $0x73] sm:$0x1]  ;;  %v1866_v13 = vld [vmem:[#allocation4 + $0x75] sm:$0x1] }
 0x28d   : > { %2074 = vrot.lane.b32.xlu0 %v4714_v17, %s3738_s8  ;;  %1842 = vst.msk [vmem:[#allocation5 + $0xc1] sm:$0x1] %vm1802_vm14, %v1834_v16  ;;  %1858 = vst.msk [vmem:[#allocation5 + $0xc2] sm:$0x1] %vm1802_vm14, %v1850_v18  ;;  %v1882_v28 = vld [vmem:[#allocation4 + $0x77] sm:$0x1] }
 0x28e   : > { %2245 = vrot.lane.b32.xlu1 %v4734_v25, %s3741_s23  ;;  %1874 = vst.msk [vmem:[#allocation5 + $0xc3] sm:$0x1] %vm1802_vm14, %v1866_v13  ;;  %1890 = vst.msk [vmem:[#allocation5 + $0xc4] sm:$0x1] %vm1802_vm14, %v1882_v28  ;;  %v1898_v48 = vld [vmem:[#allocation4 + $0x79] sm:$0x1] }
 0x28f   : > { %v1914_v33 = vld [vmem:[#allocation4 + $0x7b] sm:$0x1]  ;;  %v1930_v35 = vld [vmem:[#allocation4 + $0x7d] sm:$0x1]  ;;  %1906 = vst.msk [vmem:[#allocation5 + $0xc5] sm:$0x1] %vm1802_vm14, %v1898_v48 }
 0x290   : > { %v2332_v17 = vld [vmem:[#allocation5 + $0x79] sm:$0xff]  ;;  %1922 = vst.msk [vmem:[#allocation5 + $0xc6] sm:$0x1] %vm1802_vm14, %v1914_v33  ;;  %1938 = vst.msk [vmem:[#allocation5 + $0xc7] sm:$0x1] %vm1802_vm14, %v1930_v35 }
 0x291   : > { %v1946_v41 = vld [vmem:[#allocation4 + $0x7f] sm:$0x1]  ;;  %2358 = vrot.lane.b32.xlu0 %v2342_v31, %s3743_s17  ;;  %v2343_v42 = vpack.c.bf16 %v2333_v21, %v2332_v17  ;;  %v2420_v13 = vld [vmem:[#allocation6 + $0x48] sm:$0xff]  ;;  %v2422_v17 = vld [vmem:[#allocation6 + $0x58] sm:$0xff] }
 0x292   : > { %2076 = vrot.lane.b32.xlu1 %v4734_v25, %s3738_s8  ;;  %1954 = vst.msk [vmem:[#allocation5 + $0xc8] sm:$0x1] %vm1802_vm14, %v1946_v41  ;;  %v2345_v25 = vpack.c.bf16 %v2337_v23, %v2336_v44  ;;  %v2767_v23 = vld [vmem:[#allocation7 + $0x2] sm:$0xff] }
 0x295   : > { %2188 = vrot.lane.b32.xlu0 %v2342_v31, %s3740_s22 }
 0x296   : > { %2360 = vrot.lane.b32.xlu1 %v2343_v42, %s3743_s17 }
 0x297   : > { %v2281_v34 = vld [vmem:[#allocation5 + $0xc0] sm:$0xff] }
 0x299   : > { %v2395_v30 = vld [vmem:[#allocation5 + $0xc2] sm:$0xff]  ;;  %2019 = vrot.lane.b32.xlu0 %v2342_v31, %s3734_s21 }
 0x29a   : > { %2190 = vrot.lane.b32.xlu1 %v2343_v42, %s3740_s22  ;;  %v2403_v24 = vpack.c.bf16 %v2396_v43, %v2395_v30  ;;  %v2282_v46 = vld [vmem:[#allocation5 + $0xc8] sm:$0xff] }
 0x29b   : > { %v2289_v47 = vpack.c.bf16 %v2282_v46, %v2281_v34  ;;  %v2711_v34 = vld [vmem:[#allocation7 + $0x1] sm:$0xff] }
 0x29c   : > { %2410 = vst.msk [vmem:[#allocation6 + $0x68] sm:$0xff] %vm1773_vm13, %v2403_v24 }
 0x29d   : > { %2303 = vrot.lane.b32.xlu0 %v4766_v38, %s3744_s19 }
 0x29e   : > { %2021 = vrot.lane.b32.xlu1 %v2343_v42, %s3734_s21 }
 0x2a1   : > { %2133 = vrot.lane.b32.xlu0 %v4766_v38, %s3739_s20  ;;  %v2338_v38 = vld [vmem:[#allocation5 + $0xc1] sm:$0xff] }
 0x2a2   : > { %2364 = vrot.lane.b32.xlu1 %v2345_v25, %s3743_s17 }
 0x2a3   : > { %v2424_v30 = vld [vmem:[#allocation6 + $0x68] sm:$0xff] }
 0x2a5   : > { %2247 = vrot.lane.b32.xlu0 %v4768_v32, %s3741_s23 }
 0x2a6   : > { %2080 = vrot.lane.b32.xlu1 %v4808_v40, %s3738_s8  ;;  %v2346_v40 = vpack.c.bf16 %v2339_v27, %v2338_v38  ;;  %v2628_v27 = vlaneseq }
 0x2a9   : > { %2078 = vrot.lane.b32.xlu0 %v4768_v32, %s3738_s8 }
 0x2aa   : > { %2194 = vrot.lane.b32.xlu1 %v2345_v25, %s3740_s22  ;;  %v2768_v25 = vld [vmem:[#allocation7 + $0xa] sm:$0xff] }
 0x2ab   : > { %v2781_v46 = vpack.c.bf16 %v2768_v25, %v2767_v23  ;;  %v3051_v23 = vld [vmem:[#allocation7 + $0x51] sm:$0xff] }
 0x2ad   : > { %2023 = vrot.lane.b32.xlu0 %v4806_v29, %s3734_s21 }
 0x2ae   : > { %2309 = vrot.lane.b32.xlu1 %v2289_v47, %s3744_s19  ;;  %v2712_v47 = vld [vmem:[#allocation7 + $0x9] sm:$0xff] }
 0x2af   : > { %v2725_v38 = vpack.c.bf16 %v2712_v47, %v2711_v34 }
 0x2b1   : > { %2137 = vrot.lane.b32.xlu0 %v4853_v8, %s3739_s20 }
 0x2b2   : > { %2739 = vrot.lane.b32.xlu1 %v2725_v38, %s3734_s21 }
 0x2b5   : > { %2251 = vrot.lane.b32.xlu0 %v4855_v11, %s3741_s23 }
 0x2b9   : > { %2366 = vrot.lane.b32.xlu0 %v2346_v40, %s3743_s17  ;;  %v2683_v40 = vld [vmem:[#allocation7] sm:$0xff] }
 0x2bd   : > { %2795 = vrot.lane.b32.xlu0 %v2781_v46, %s3738_s8 }
 0x2cf   : > { %v4918_v32 = vpop.permute.xlu0 %2362 }
 0x2d0   : > { %v4920_v50 = vpop.permute.xlu1 %2305 }
 0x2d3   : > { %v4922_v58 = vpop.permute.xlu0 %2192 }
 0x2d4   : > { %v4924_v29 = vpop.permute.xlu1 %2135 }
 0x2d7   : > { %v2355_v53 = vpop.permute.xlu0 %2354 }
 0x2d8   : > { %v4926_v45 = vpop.permute.xlu1 %2249 }
 0x2db   : > { %v2185_v54 = vpop.permute.xlu0 %2184 }
 0x2dc   : > { %v2298_v55 = vpop.permute.xlu1 %2297 }
 0x2dd   : > { %2319 = vst.msk [vmem:[#allocation6] sm:$0xff] %vm2318_vm5, %v2298_v55 }
 0x2de   : > { %2376 = vst.msk [vmem:[#allocation6] sm:$0xff] %vm2375_vm6, %v2355_v53  ;;  %v4991_v53 = vshrl.u32 %v2628_v27, 7 }
 0x2df   : > { %v2016_v57 = vpop.permute.xlu0 %2015 }
 0x2e0   : > { %v2128_v26 = vpop.permute.xlu1 %2127  ;;  %2035 = vst.msk [vmem:[#allocation6 + $0x20] sm:$0xff] %vm2032_vm0, %v2016_v57  ;;  %vm2631_vm7 = vcmp.lt.s32.totalorder %v4991_v53, 7  ;;  %v3057_v53 = vld [vmem:[#allocation7 + $0x99] sm:$0xff] }
 0x2e1   : > { %2148 = vst.msk [vmem:[#allocation6 + $0x10] sm:$0xff] %vm2146_vm2, %v2128_v26 }
 0x2e2   : > { %2205 = vst.msk [vmem:[#allocation6 + $0x10] sm:$0xff] %vm2203_vm3, %v2185_v54 }
 0x2e4   : > { %v2242_v2 = vpop.permute.xlu1 %2241 }
 0x2e5   : > { %2262 = vst.msk [vmem:[#allocation6 + $0x10] sm:$0xff] %vm2260_vm4, %v2242_v2  ;;  %v2411_v10 = vld [vmem:[#allocation6] sm:$0xff] }
 0x2e6   : > { %2558 = vmatmul.mubr.bf16.vlgmr.msra.gmra.mrb[12].mxu1 %v2411_v10 }
 0x2e7   : > { %3496 = vmatprep.mubr.msk.bf16.mxu1 %vm1773_vm13, %v2414_v14 }
 0x2e8   : > { %v2073_v20 = vpop.permute.xlu1 %2072 }
 0x2e9   : > { %2092 = vst.msk [vmem:[#allocation6 + $0x20] sm:$0xff] %vm2089_vm1, %v2073_v20  ;;  %v3658_v20 = vld [vmem:[%s5281_s5 + $0x8] sm:$0xff]  }
 0x2ec   : > { %v2357_v61 = vpop.permute.xlu1 %2356 }
 0x2ef   : > { %v2308_v0 = vpop.permute.xlu0 %2307 }
 0x2f0   : > { %v2187_v62 = vpop.permute.xlu1 %2186 }
 0x2f3   : > { %v2300_v1 = vpop.permute.xlu0 %2299 }
 0x2f4   : > { %v2018_v63 = vpop.permute.xlu1 %2017  ;;  %2320 = vst.msk [vmem:[#allocation6 + $0x10] sm:$0xff] %vm2318_vm5, %v2300_v1  ;;  %v3660_v1 = vld [vmem:[%s5281_s5 + $0x18] sm:$0xff]  }
 0x2f5   : > { %2036 = vst.msk [vmem:[#allocation6 + $0x30] sm:$0xff] %vm2032_vm0, %v2018_v63 }
 0x2f6   : > { %2377 = vst.msk [vmem:[#allocation6 + $0x10] sm:$0xff] %vm2375_vm6, %v2357_v61 }
 0x2f7   : > { %v2130_v39 = vpop.permute.xlu0 %2129 }
 0x2f8   : > { %v2302_v12 = vpop.permute.xlu1 %2301  ;;  %2149 = vst.msk [vmem:[#allocation6 + $0x20] sm:$0xff] %vm2146_vm2, %v2130_v39 }
 0x2f9   : > { %2206 = vst.msk [vmem:[#allocation6 + $0x20] sm:$0xff] %vm2203_vm3, %v2187_v62  ;;  %v2880_v62 = vld [vmem:[#allocation7 + $0x21] sm:$0xff] }
 0x2fb   : > { %v2244_v51 = vpop.permute.xlu0 %2243 }
 0x2fc   : > { %v2132_v3 = vpop.permute.xlu1 %2131  ;;  %2263 = vst.msk [vmem:[#allocation6 + $0x20] sm:$0xff] %vm2260_vm4, %v2244_v51 }
 0x2fd   : > { %v2413_v9 = vld [vmem:[#allocation6 + $0x10] sm:$0xff]  ;;  %2321 = vst.msk [vmem:[#allocation6 + $0x20] sm:$0xff] %vm2318_vm5, %v2302_v12 }
 0x2fe   : > { %2566 = vmatmul.mubr.bf16.gmra.mrb[16].mxu1 %v2413_v9  ;;  %v3661_v9 = vld [vmem:[%s5281_s5 + $0x20] sm:$0xff]  }
 0x2ff   : > { %3497 = vmatprep.mubr.msk.bf16.mxu1 %vm1773_vm13, %v2416_v4  ;;  %v2075_v19 = vpop.permute.xlu0 %2074 }
 0x300   : > { %v2246_v6 = vpop.permute.xlu1 %2245  ;;  %2093 = vst.msk [vmem:[#allocation6 + $0x30] sm:$0xff] %vm2089_vm1, %v2075_v19  ;;  %v2936_v19 = vld [vmem:[#allocation7 + $0x22] sm:$0xff] }
 0x301   : > { %2150 = vst.msk [vmem:[#allocation6 + $0x30] sm:$0xff] %vm2146_vm2, %v2132_v3 }
 0x303   : > { %v2359_v8 = vpop.permute.xlu0 %2358 }
 0x304   : > { %v2077_v11 = vpop.permute.xlu1 %2076  ;;  %2378 = vst.msk [vmem:[#allocation6 + $0x20] sm:$0xff] %vm2375_vm6, %v2359_v8  ;;  %v3662_v8 = vld [vmem:[%s5281_s5 + $0x28] sm:$0xff]  }
 0x307   : > { %v2189_v60 = vpop.permute.xlu0 %2188 }
 0x308   : > { %v2361_v15 = vpop.permute.xlu1 %2360  ;;  %2207 = vst.msk [vmem:[#allocation6 + $0x30] sm:$0xff] %vm2203_vm3, %v2189_v60 }
 0x309   : > { %2264 = vst.msk [vmem:[#allocation6 + $0x30] sm:$0xff] %vm2260_vm4, %v2246_v6 }
 0x30b   : > { %v2020_v52 = vpop.permute.xlu0 %2019  ;;  %v2415_v22 = vld [vmem:[#allocation6 + $0x20] sm:$0xff] }
 0x30c   : > { %v2191_v7 = vpop.permute.xlu1 %2190  ;;  %2037 = vst.msk [vmem:[#allocation6 + $0x40] sm:$0xff] %vm2032_vm0, %v2020_v52  ;;  %2574 = vmatmul.mubr.bf16.gmra.mrb[20].mxu1 %v2415_v22 }
 0x30d   : > { %2094 = vst.msk [vmem:[#allocation6 + $0x40] sm:$0xff] %vm2089_vm1, %v2077_v11  ;;  %3498 = vmatprep.mubr.msk.bf16.mxu1 %vm1773_vm13, %v2418_v36  ;;  %v3663_v11 = vld [vmem:[%s5281_s5 + $0x30] sm:$0xff]  }
 0x30f   : > { %v2304_v59 = vpop.permute.xlu0 %2303 }
 0x310   : > { %v2022_v56 = vpop.permute.xlu1 %2021  ;;  %2322 = vst.msk [vmem:[#allocation6 + $0x30] sm:$0xff] %vm2318_vm5, %v2304_v59  ;;  %v3664_v59 = vld [vmem:[%s5281_s5 + $0x38] sm:$0xff]  }
 0x311   : > { %2038 = vst.msk [vmem:[#allocation6 + $0x50] sm:$0xff] %vm2032_vm0, %v2022_v56 }
 0x312   : > { %2379 = vst.msk [vmem:[#allocation6 + $0x30] sm:$0xff] %vm2375_vm6, %v2361_v15 }
 0x313   : > { %v2134_v5 = vpop.permute.xlu0 %2133 }
 0x314   : > { %2151 = vst.msk [vmem:[#allocation6 + $0x40] sm:$0xff] %vm2146_vm2, %v2134_v5  ;;  %v2365_v49 = vpop.permute.xlu1 %2364  ;;  %v3665_v5 = vld [vmem:[%s5281_s5 + $0x40] sm:$0xff]  }
 0x315   : > { %2208 = vst.msk [vmem:[#allocation6 + $0x40] sm:$0xff] %vm2203_vm3, %v2191_v7 }
 0x317   : > { %v2248_v16 = vpop.permute.xlu0 %2247 }
 0x318   : > { %2265 = vst.msk [vmem:[#allocation6 + $0x40] sm:$0xff] %vm2260_vm4, %v2248_v16  ;;  %v2081_v31 = vpop.permute.xlu1 %2080  ;;  %v3049_v16 = vld [vmem:[#allocation7 + $0x39] sm:$0xff] }
 0x319   : > { %v2417_v18 = vld [vmem:[#allocation6 + $0x30] sm:$0xff]  ;;  %2323 = vst.msk [vmem:[#allocation6 + $0x40] sm:$0xff] %vm2318_vm5, %v4920_v50  ;;  %v3657_v50 = vld [vmem:[%s5281_s5] sm:$0xff]  }
 0x31a   : > { %2582 = vmatmul.mubr.bf16.gmra.mrb[24].mxu1 %v2417_v18  ;;  %2380 = vst.msk [vmem:[#allocation6 + $0x40] sm:$0xff] %vm2375_vm6, %v4918_v32  ;;  %v2684_v32 = vld [vmem:[#allocation7 + $0x8] sm:$0xff]  ;;  %3247 = vmatpush1.bf16.msra.mxu0 %v3657_v50 }
 0x31b   : > { %3499 = vmatprep.mubr.msk.bf16.mxu1 %vm1773_vm13, %v2420_v13  ;;  %v2079_v28 = vpop.permute.xlu0 %2078  ;;  %3248 = vmatprep.subr.bf16.mxu0 %v3742_v37 }
 0x31c   : > { %2095 = vst.msk [vmem:[#allocation6 + $0x50] sm:$0xff] %vm2089_vm1, %v2079_v28  ;;  %v2195_v35 = vpop.permute.xlu1 %2194 }
 0x31d   : > { %2152 = vst.msk [vmem:[#allocation6 + $0x50] sm:$0xff] %vm2146_vm2, %v4924_v29  ;;  %v4989_v29 = vld [vmem:[%s5280_s4] ss:$0 sm:$0xff] }
 0x31e   : > { %2209 = vst.msk [vmem:[#allocation6 + $0x50] sm:$0xff] %vm2203_vm3, %v4922_v58  ;;  %v2697_v58 = vpack.c.bf16 %v2684_v32, %v2683_v40  ;;  %3249 = vmatpush1.bf16.msra.mxu0 %v3658_v20 }
 0x31f   : > { %2266 = vst.msk [vmem:[#allocation6 + $0x50] sm:$0xff] %vm2260_vm4, %v4926_v45  ;;  %v2024_v48 = vpop.permute.xlu0 %2023  ;;  %3250 = vmatprep.subr.bf16.mxu0 %v3742_v37 }
 0x320   : > { %2324 = vst.msk [vmem:[#allocation6 + $0x50] sm:$0xff] %vm2318_vm5, %v2308_v0  ;;  %v2310_v41 = vpop.permute.xlu1 %2309  ;;  %v3659_v0 = vld [vmem:[%s5281_s5 + $0x10] sm:$0xff]  }
 0x321   : > { %2039 = vst.msk [vmem:[#allocation6 + $0x60] sm:$0xff] %vm2032_vm0, %v2024_v48  ;;  %v2419_v33 = vld [vmem:[#allocation6 + $0x40] sm:$0xff] }
 0x322   : > { %2381 = vst.msk [vmem:[#allocation6 + $0x50] sm:$0xff] %vm2375_vm6, %v2365_v49  ;;  %2590 = vmatmul.mubr.bf16.gmra.mrb[28].mxu1 %v2419_v33  ;;  %3251 = vmatpush1.bf16.msra.mxu0 %v3659_v0  ;;  %v3105_v49 = vld [vmem:[#allocation7 + $0x3a] sm:$0xff] }
 0x323   : > { %2096 = vst.msk [vmem:[#allocation6 + $0x60] sm:$0xff] %vm2089_vm1, %v2081_v31  ;;  %3500 = vmatprep.mubr.msk.bf16.mxu1 %vm1773_vm13, %v2422_v17  ;;  %v2138_v21 = vpop.permute.xlu0 %2137  ;;  %3252 = vmatprep.subr.bf16.mxu0 %v3742_v37 }
 0x324   : > { %2153 = vst.msk [vmem:[#allocation6 + $0x60] sm:$0xff] %vm2146_vm2, %v2138_v21  ;;  %v2740_v45 = vpop.permute.xlu1 %2739 }
 0x325   : > { %2210 = vst.msk [vmem:[#allocation6 + $0x60] sm:$0xff] %vm2203_vm3, %v2195_v35 }
 0x326   : > { %2704 = vst.msk [vmem:[#allocation8] sm:$0xff] %vm1773_vm13, %v2697_v58  ;;  %3253 = vmatpush1.bf16.msra.mxu0 %v3660_v1 }
 0x327   : > { %v2252_v42 = vpop.permute.xlu0 %2251  ;;  %2760 = vst.msk [vmem:[#allocation8] sm:$0xff] %vm2032_vm0, %v2740_v45  ;;  %3254 = vmatprep.subr.bf16.mxu0 %v3742_v37 }
 0x328   : > { %2267 = vst.msk [vmem:[#allocation6 + $0x60] sm:$0xff] %vm2260_vm4, %v2252_v42 }
 0x329   : > { %v2421_v43 = vld [vmem:[#allocation6 + $0x50] sm:$0xff]  ;;  %2325 = vst.msk [vmem:[#allocation6 + $0x60] sm:$0xff] %vm2318_vm5, %v2310_v41 }
 0x32a   : > { %2598 = vmatmul.mubr.bf16.gmra.mrb[32].mxu1 %v2421_v43  ;;  %3255 = vmatpush1.bf16.msra.mxu0 %v3661_v9  ;;  %v3053_v9 = vld [vmem:[#allocation7 + $0x69] sm:$0xff] }
 0x32b   : > { %3501 = vmatprep.mubr.msk.bf16.mxu1 %vm1773_vm13, %v2424_v30  ;;  %v2367_v24 = vpop.permute.xlu0 %2366  ;;  %3256 = vmatprep.subr.bf16.mxu0 %v3742_v37 }
 0x32c   : > { %2382 = vst.msk [vmem:[#allocation6 + $0x60] sm:$0xff] %vm2375_vm6, %v2367_v24 }
 0x32e   : > { %3257 = vmatpush1.bf16.msra.mxu0 %v3662_v8 }
 0x32f   : > { %v2796_v54 = vpop.permute.xlu0 %2795  ;;  %3258 = vmatprep.subr.bf16.mxu0 %v3742_v37 }
 0x330   : > { %2816 = vst.msk [vmem:[#allocation8] sm:$0xff] %vm2089_vm1, %v2796_v54 }
 0x332   : > { %3259 = vmatpush1.bf16.msra.mxu0 %v3663_v11 }
 0x333   : > { %v2423_v44 = vld [vmem:[#allocation6 + $0x60] sm:$0xff]  ;;  %3260 = vmatprep.subr.bf16.mxu0 %v3742_v37 }
 0x334   : > { %2606 = vmatmul.mubr.bf16.gmra.mrb[36].mxu1 %v2423_v44  ;;  %v3107_v44 = vld [vmem:[#allocation7 + $0x52] sm:$0xff] }
 0x336   : > { %3261 = vmatpush1.bf16.msra.mxu0 %v3664_v59 }
 0x337   : > { %3262 = vmatprep.subr.bf16.mxu0 %v3742_v37 }
 0x33a   : > { %3263 = vmatpush1.bf16.msra.mxu0 %v3665_v5 }
 0x3b9   : > { %v2559_v55 = vpop.f32.mrb[12].mxu1 }
 0x3ba   : > { %v2560_v57 = vadd.f32 %v4989_v29, %v2559_v55  ;;  %v2561_v26 = vpop.f32.mrb[13].mxu1 }
 0x3bb   : > { %v2562_v2 = vpop.f32.mrb[14].mxu1 }
 0x3bc   : > { %v2614_v10 = vmax.f32 %v2560_v57, 0.0  ;;  %v2564_v14 = vpop.f32.mrb[15].mxu1 }
 0x3bd   : > { %v3109_v14 = vld [vmem:[#allocation7 + $0x6a] sm:$0xff] }
 0x3be   : > { %v2633_v61 = vsel %vm2631_vm7, %v2614_v10, 0.0 }
 0x3bf   : > { %2669 = vst.msk [vmem:[#allocation7 + $0x19] sm:$0xff] %vm1773_vm13, %v2633_v61 }
 0x3c6   : > { %v2879_v63 = vld [vmem:[#allocation7 + $0x19] sm:$0xff] }
 0x3c7   : > { %v2823_v39 = vld [vmem:[#allocation7 + $0x18] sm:$0xff]  ;;  %v2824_v12 = vld [vmem:[#allocation7 + $0x20] sm:$0xff]  ;;  %v2893_v51 = vpack.c.bf16 %v2880_v62, %v2879_v63 }
 0x3c8   : > { %v2837_v3 = vpack.c.bf16 %v2824_v12, %v2823_v39  ;;  %v2935_v4 = vld [vmem:[#allocation7 + $0x1a] sm:$0xff] }
 0x3c9   : > { %2907 = vrot.lane.b32.xlu0 %v2893_v51, %s3740_s22  ;;  %v2949_v6 = vpack.c.bf16 %v2936_v19, %v2935_v4 }
 0x3ca   : > { %2851 = vrot.lane.b32.xlu1 %v2837_v3, %s3739_s20  ;;  %2705 = vst.msk [vmem:[#allocation8 + $0x10] sm:$0xff] %vm1773_vm13, %v2837_v3 }
 0x3cd   : > { %2741 = vrot.lane.b32.xlu0 %v2893_v51, %s3734_s21 }
 0x3ce   : > { %2963 = vrot.lane.b32.xlu1 %v2949_v6, %s3741_s23 }
 0x3d1   : > { %v2567_v60 = vpop.f32.mrb[16].mxu1 }
 0x3d2   : > { %2797 = vrot.lane.b32.xlu1 %v2949_v6, %s3738_s8  ;;  %v2568_v15 = vadd.f32 %v4989_v29, %v2567_v60  ;;  %v2569_v52 = vpop.f32.mrb[17].mxu1  ;;  %v3111_v60 = vld [vmem:[#allocation7 + $0x82] sm:$0xff] }
 0x3d3   : > { %v2570_v7 = vpop.f32.mrb[18].mxu1 }
 0x3d4   : > { %v2616_v22 = vmax.f32 %v2568_v15, 0.0  ;;  %v2572_v36 = vpop.f32.mrb[19].mxu1 }
 0x3d6   : > { %v2635_v56 = vsel %vm2631_vm7, %v2616_v22, 0.0 }
 0x3d7   : > { %2671 = vst.msk [vmem:[#allocation7 + $0x31] sm:$0xff] %vm1773_vm13, %v2635_v56 }
 0x3de   : > { %v3104_v18 = vld [vmem:[#allocation7 + $0x32] sm:$0xff] }
 0x3df   : > { %v2992_v13 = vld [vmem:[#allocation7 + $0x30] sm:$0xff]  ;;  %v2993_v28 = vld [vmem:[#allocation7 + $0x38] sm:$0xff]  ;;  %v3118_v31 = vpack.c.bf16 %v3105_v49, %v3104_v18  ;;  %v2575_v35 = vpop.f32.mrb[20].mxu1 }
 0x3e0   : > { %v3006_v48 = vpack.c.bf16 %v2993_v28, %v2992_v13  ;;  %v3048_v33 = vld [vmem:[#allocation7 + $0x31] sm:$0xff]  ;;  %v2576_v21 = vadd.f32 %v4989_v29, %v2575_v35  ;;  %v2577_v37 = vpop.f32.mrb[21].mxu1  ;;  %v3113_v13 = vld [vmem:[#allocation7 + $0x9a] sm:$0xff] }
 0x3e1   : > { %v3062_v17 = vpack.c.bf16 %v3049_v16, %v3048_v33  ;;  %3125 = vst.msk [vmem:[#allocation8 + $0x8] sm:$0xff] %vm1773_vm13, %v3118_v31  ;;  %v2578_v41 = vpop.f32.mrb[22].mxu1  ;;  %v3055_v16 = vld [vmem:[#allocation7 + $0x81] sm:$0xff] }
 0x3e2   : > { %3020 = vrot.lane.b32.xlu0 %v3006_v48, %s3744_s19  ;;  %2706 = vst.msk [vmem:[#allocation8 + $0x20] sm:$0xff] %vm1773_vm13, %v3006_v48  ;;  %v2618_v42 = vmax.f32 %v2576_v21, 0.0  ;;  %v2580_v43 = vpop.f32.mrb[23].mxu1 }
 0x3e3   : > { %3076 = vrot.lane.b32.xlu1 %v3062_v17, %s3743_s17 }
 0x3e4   : > { %v2637_v30 = vsel %vm2631_vm7, %v2618_v42, 0.0 }
 0x3e5   : > { %2673 = vst.msk [vmem:[#allocation7 + $0x49] sm:$0xff] %vm1773_vm13, %v2637_v30 }
 0x3e6   : > { %2853 = vrot.lane.b32.xlu0 %v3006_v48, %s3739_s20 }
 0x3e7   : > { %2909 = vrot.lane.b32.xlu1 %v3062_v17, %s3740_s22 }
 0x3e8   : > { %v3133_v24 = vld [vmem:[#allocation8 + $0x8] sm:$0xff] }
 0x3e9   : > { %3512 = vmatprep.mubr.msk.bf16.mxu0 %vm1773_vm13, %v3133_v24 }
 0x3ea   : > { %2965 = vrot.lane.b32.xlu0 %v3118_v31, %s3741_s23 }
 0x3eb   : > { %2743 = vrot.lane.b32.xlu1 %v3062_v17, %s3734_s21 }
 0x3ec   : > { %v3106_v25 = vld [vmem:[#allocation7 + $0x4a] sm:$0xff] }
 0x3ed   : > { %v2583_v34 = vpop.f32.mrb[24].mxu1  ;;  %v2994_v46 = vld [vmem:[#allocation7 + $0x48] sm:$0xff]  ;;  %v2995_v47 = vld [vmem:[#allocation7 + $0x50] sm:$0xff]  ;;  %v3119_v38 = vpack.c.bf16 %v3107_v44, %v3106_v25 }
 0x3ee   : > { %2799 = vrot.lane.b32.xlu0 %v3118_v31, %s3738_s8  ;;  %v2584_v27 = vadd.f32 %v4989_v29, %v2583_v34  ;;  %v2585_v40 = vpop.f32.mrb[25].mxu1  ;;  %v3007_v32 = vpack.c.bf16 %v2995_v47, %v2994_v46  ;;  %v3050_v50 = vld [vmem:[#allocation7 + $0x49] sm:$0xff]  ;;  %v3059_v47 = vld [vmem:[#allocation7 + $0xb1] sm:$0xff] }
 0x3ef   : > { %v2586_v58 = vpop.f32.mrb[26].mxu1  ;;  %v3063_v45 = vpack.c.bf16 %v3051_v23, %v3050_v50  ;;  %3126 = vst.msk [vmem:[#allocation8 + $0x18] sm:$0xff] %vm1773_vm13, %v3119_v38  ;;  %v3117_v40 = vld [vmem:[#allocation7 + $0xca] sm:$0xff] }
 0x3f0   : > { %v2620_v54 = vmax.f32 %v2584_v27, 0.0  ;;  %v2588_v55 = vpop.f32.mrb[27].mxu1  ;;  %3022 = vrot.lane.b32.xlu1 %v3007_v32, %s3744_s19  ;;  %2707 = vst.msk [vmem:[#allocation8 + $0x30] sm:$0xff] %vm1773_vm13, %v3007_v32  ;;  %v3116_v27 = vld [vmem:[#allocation7 + $0xc2] sm:$0xff] }
 0x3f2   : > { %3078 = vrot.lane.b32.xlu0 %v3063_v45, %s3743_s17  ;;  %v2639_v57 = vsel %vm2631_vm7, %v2620_v54, 0.0  ;;  %v3005_v54 = vld [vmem:[#allocation7 + $0xc8] sm:$0xff] }
 0x3f3   : > { %2675 = vst.msk [vmem:[#allocation7 + $0x61] sm:$0xff] %vm1773_vm13, %v2639_v57  ;;  %v3060_v57 = vld [vmem:[#allocation7 + $0xc1] sm:$0xff] }
 0x3f4   : > { %2855 = vrot.lane.b32.xlu1 %v3007_v32, %s3739_s20  ;;  %v3124_v32 = vpack.c.bf16 %v3117_v40, %v3116_v27 }
 0x3f5   : > { %v2591_v26 = vpop.f32.mrb[28].mxu1 }
 0x3f6   : > { %2911 = vrot.lane.b32.xlu0 %v3063_v45, %s3740_s22  ;;  %v2592_v2 = vadd.f32 %v4989_v29, %v2591_v26  ;;  %v2593_v10 = vpop.f32.mrb[29].mxu1  ;;  %3131 = vst.msk [vmem:[#allocation8 + $0x68] sm:$0xff] %vm1773_vm13, %v3124_v32  ;;  %v3061_v26 = vld [vmem:[#allocation7 + $0xc9] sm:$0xff] }
 0x3f7   : > { %v2594_v20 = vpop.f32.mrb[30].mxu1 }
 0x3f8   : > { %2967 = vrot.lane.b32.xlu1 %v3119_v38, %s3741_s23  ;;  %v2622_v61 = vmax.f32 %v2592_v2, 0.0  ;;  %v2596_v0 = vpop.f32.mrb[31].mxu1  ;;  %v3068_v2 = vpack.c.bf16 %v3061_v26, %v3060_v57 }
 0x3fa   : > { %2745 = vrot.lane.b32.xlu0 %v3063_v45, %s3734_s21  ;;  %v3108_v62 = vld [vmem:[#allocation7 + $0x62] sm:$0xff]  ;;  %v2641_v12 = vsel %vm2631_vm7, %v2622_v61, 0.0 }
 0x3fb   : > { %v2996_v1 = vld [vmem:[#allocation7 + $0x60] sm:$0xff]  ;;  %v2997_v63 = vld [vmem:[#allocation7 + $0x68] sm:$0xff]  ;;  %v3120_v39 = vpack.c.bf16 %v3109_v14, %v3108_v62  ;;  %2677 = vst.msk [vmem:[#allocation7 + $0x79] sm:$0xff] %vm1773_vm13, %v2641_v12 }
 0x3fc   : > { %v3008_v51 = vpack.c.bf16 %v2997_v63, %v2996_v1  ;;  %v3052_v3 = vld [vmem:[#allocation7 + $0x61] sm:$0xff]  ;;  %2801 = vrot.lane.b32.xlu1 %v3119_v38, %s3738_s8 }
 0x3fd   : > { %3127 = vst.msk [vmem:[#allocation8 + $0x28] sm:$0xff] %vm1773_vm13, %v3120_v39  ;;  %v2599_v4 = vpop.f32.mrb[32].mxu1  ;;  %v3064_v19 = vpack.c.bf16 %v3053_v9, %v3052_v3  ;;  %v3004_v45 = vld [vmem:[#allocation7 + $0xc0] sm:$0xff]  ;;  %v3135_v9 = vld [vmem:[#allocation8 + $0x18] sm:$0xff] }
 0x3fe   : > { %3024 = vrot.lane.b32.xlu0 %v3008_v51, %s3744_s19  ;;  %2708 = vst.msk [vmem:[#allocation8 + $0x40] sm:$0xff] %vm1773_vm13, %v3008_v51  ;;  %v2600_v6 = vadd.f32 %v4989_v29, %v2599_v4  ;;  %v2601_v8 = vpop.f32.mrb[33].mxu1  ;;  %v3012_v55 = vpack.c.bf16 %v3005_v54, %v3004_v45  ;;  %v3145_v32 = vld [vmem:[#allocation8 + $0x68] sm:$0xff] }
 0x3ff   : > { %v2602_v11 = vpop.f32.mrb[34].mxu1 }
 0x400   : > { %3080 = vrot.lane.b32.xlu1 %v3064_v19, %s3743_s17  ;;  %v2624_v15 = vmax.f32 %v2600_v6, 0.0  ;;  %v2604_v52 = vpop.f32.mrb[35].mxu1 }
 0x402   : > { %2857 = vrot.lane.b32.xlu0 %v3008_v51, %s3739_s20  ;;  %v3110_v7 = vld [vmem:[#allocation7 + $0x7a] sm:$0xff]  ;;  %v2643_v22 = vsel %vm2631_vm7, %v2624_v15, 0.0 }
 0x403   : > { %v2998_v36 = vld [vmem:[#allocation7 + $0x78] sm:$0xff]  ;;  %v2999_v59 = vld [vmem:[#allocation7 + $0x80] sm:$0xff]  ;;  %v3121_v56 = vpack.c.bf16 %v3111_v60, %v3110_v7  ;;  %2679 = vst.msk [vmem:[#allocation7 + $0x91] sm:$0xff] %vm1773_vm13, %v2643_v22 }
 0x404   : > { %2913 = vrot.lane.b32.xlu1 %v3064_v19, %s3740_s22  ;;  %v3009_v5 = vpack.c.bf16 %v2999_v59, %v2998_v36  ;;  %v3054_v49 = vld [vmem:[#allocation7 + $0x79] sm:$0xff] }
 0x405   : > { %3128 = vst.msk [vmem:[#allocation8 + $0x38] sm:$0xff] %vm1773_vm13, %v3121_v56  ;;  %v3065_v35 = vpack.c.bf16 %v3055_v16, %v3054_v49  ;;  %v3137_v7 = vld [vmem:[#allocation8 + $0x28] sm:$0xff] }
 0x406   : > { %2969 = vrot.lane.b32.xlu0 %v3120_v39, %s3741_s23  ;;  %2709 = vst.msk [vmem:[#allocation8 + $0x50] sm:$0xff] %vm1773_vm13, %v3009_v5 }
 0x407   : > { %v2607_v18 = vpop.f32.mrb[36].mxu1 }
 0x408   : > { %2747 = vrot.lane.b32.xlu1 %v3064_v19, %s3734_s21  ;;  %v2608_v28 = vadd.f32 %v4989_v29, %v2607_v18  ;;  %v2609_v31 = vpop.f32.mrb[37].mxu1  ;;  %v3115_v29 = vld [vmem:[#allocation7 + $0xb2] sm:$0xff] }
 0x409   : > { %v2610_v48 = vpop.f32.mrb[38].mxu1 }
 0x40a   : > { %2803 = vrot.lane.b32.xlu0 %v3120_v39, %s3738_s8  ;;  %v3112_v33 = vld [vmem:[#allocation7 + $0x92] sm:$0xff]  ;;  %v2626_v17 = vmax.f32 %v2608_v28, 0.0  ;;  %v2612_v21 = vpop.f32.mrb[39].mxu1 }
 0x40b   : > { %v3000_v37 = vld [vmem:[#allocation7 + $0x90] sm:$0xff]  ;;  %v3001_v41 = vld [vmem:[#allocation7 + $0x98] sm:$0xff]  ;;  %v3122_v42 = vpack.c.bf16 %v3113_v13, %v3112_v33 }
 0x40c   : > { %3026 = vrot.lane.b32.xlu1 %v3009_v5, %s3744_s19  ;;  %v3010_v43 = vpack.c.bf16 %v3001_v41, %v3000_v37  ;;  %v2645_v30 = vsel %vm2631_vm7, %v2626_v17, 0.0  ;;  %v3056_v23 = vld [vmem:[#allocation7 + $0x91] sm:$0xff] }
 0x40d   : > { %3129 = vst.msk [vmem:[#allocation8 + $0x48] sm:$0xff] %vm1773_vm13, %v3122_v42  ;;  %2681 = vst.msk [vmem:[#allocation7 + $0xa9] sm:$0xff] %vm1773_vm13, %v2645_v30  ;;  %v3066_v25 = vpack.c.bf16 %v3057_v53, %v3056_v23  ;;  %v3139_v28 = vld [vmem:[#allocation8 + $0x38] sm:$0xff] }
 0x40e   : > { %3082 = vrot.lane.b32.xlu0 %v3065_v35, %s3743_s17  ;;  %2710 = vst.msk [vmem:[#allocation8 + $0x60] sm:$0xff] %vm1773_vm13, %v3010_v43 }
 0x410   : > { %2859 = vrot.lane.b32.xlu1 %v3009_v5, %s3739_s20 }
 0x412   : > { %2915 = vrot.lane.b32.xlu0 %v3065_v35, %s3740_s22 }
 0x414   : > { %2971 = vrot.lane.b32.xlu1 %v3121_v56, %s3741_s23  ;;  %v3114_v24 = vld [vmem:[#allocation7 + $0xaa] sm:$0xff]  ;;  %v3141_v41 = vld [vmem:[#allocation8 + $0x48] sm:$0xff] }
 0x415   : > { %v3123_v44 = vpack.c.bf16 %v3115_v29, %v3114_v24  ;;  %v3002_v34 = vld [vmem:[#allocation7 + $0xa8] sm:$0xff]  ;;  %v3003_v46 = vld [vmem:[#allocation7 + $0xb0] sm:$0xff] }
 0x416   : > { %2749 = vrot.lane.b32.xlu0 %v3065_v35, %s3734_s21  ;;  %v3058_v38 = vld [vmem:[#allocation7 + $0xa9] sm:$0xff]  ;;  %v3011_v50 = vpack.c.bf16 %v3003_v46, %v3002_v34 }
 0x417   : > { %3130 = vst.msk [vmem:[#allocation8 + $0x58] sm:$0xff] %vm1773_vm13, %v3123_v44  ;;  %v3067_v58 = vpack.c.bf16 %v3059_v47, %v3058_v38 }
 0x418   : > { %2805 = vrot.lane.b32.xlu1 %v3121_v56, %s3738_s8 }
 0x41a   : > { %3028 = vrot.lane.b32.xlu0 %v3010_v43, %s3744_s19 }
 0x41c   : > { %3084 = vrot.lane.b32.xlu1 %v3066_v25, %s3743_s17 }
 0x41e   : > { %2861 = vrot.lane.b32.xlu0 %v3010_v43, %s3739_s20  ;;  %v3143_v34 = vld [vmem:[#allocation8 + $0x58] sm:$0xff] }
 0x420   : > { %2917 = vrot.lane.b32.xlu1 %v3066_v25, %s3740_s22 }
 0x422   : > { %2973 = vrot.lane.b32.xlu0 %v3122_v42, %s3741_s23 }
 0x424   : > { %2751 = vrot.lane.b32.xlu1 %v3066_v25, %s3734_s21  ;;  %s3670_s21 = sshll.u32 %s3745_s9, 4  ;;  %s3671_s21 = int_to_ptr.vmem [resolvable:$false] %s3670_s21 }
 0x426   : > { %2807 = vrot.lane.b32.xlu0 %v3122_v42, %s3738_s8  ;;  %s3672_s8 = scalar_lea.vmem %s3671_s21, 512 }
 0x428   : > { %3030 = vrot.lane.b32.xlu1 %v3011_v50, %s3744_s19 }
 0x42a   : > { %3086 = vrot.lane.b32.xlu0 %v3067_v58, %s3743_s17 }
 0x42c   : > { %2863 = vrot.lane.b32.xlu1 %v3011_v50, %s3739_s20  ;;  %s269_s20 = sand.u32 1, %s3720_s25  }
 0x42e   : > { %2919 = vrot.lane.b32.xlu0 %v3067_v58, %s3740_s22 }
 0x430   : > { %2975 = vrot.lane.b32.xlu1 %v3123_v44, %s3741_s23  ;;  %s3462_s23 = sshll.u32 %s269_s20, 4 }
 0x432   : > { %3032 = vrot.lane.b32.xlu0 %v3012_v55, %s3744_s19  ;;  %v5174_v55 = vld [vmem:[%s5282_s6] ss:$0 sm:$0xff]  ;;  %s3525_s19 = sshll.u32 %s3807_s28, 8  ;;  %s5232_s28 = scalar_lea.sflag [#allocation11], %s269_s20 }
 0x433   : > { %s5218_s15 = scalar_lea.hbm %s5283_s7, %s3525_s19 }
 0x434   : > { %3088 = vrot.lane.b32.xlu1 %v3068_v2, %s3743_s17  ;;  %s5181_s17 = scalar_lea.vmem [#allocation10], %s3462_s23 }
 0x435   : > { %s3396_s29 = sshll.u32 %s5181_s17, 4  ;;  %s5220_s29 = int_to_ptr.vmem [resolvable:$true] %s3396_s29 }
 0x436   : > { %s3666_s16 = scalar_lea.vmem %s5220_s29, 256  ;;  %p3673_p0 = scmp.lt.s32.totalorder %s5220_s29, %s3671_s21 }
 0x437   : > { %p3667_p11 = scmp.ne.s32.totalorder %s5220_s29, %s3666_s16  ;;  %p3674_p1 = scmp.lt.s32.totalorder %s3672_s8, %s3666_s16 }
 0x439   : > { %p3668_p12 = pnand %p3667_p11, %p3824_p5  ;;  %p3675_p2 = por %p3674_p1, %p3673_p0 }
 0x43b   : > { %v2908_v10 = vpop.permute.xlu0 %2907  ;;  %p3669_p13 = pneg %p3668_p12 }
 0x43c   : > { %v2852_v14 = vpop.permute.xlu1 %2851 }
 0x43d   : > { %2872 = vst.msk [vmem:[#allocation8] sm:$0xff] %vm2146_vm2, %v2852_v14  ;;  %p3676_p3 = pnand %p3675_p2, %p3669_p13 }
 0x43e   : > { %2928 = vst.msk [vmem:[#allocation8] sm:$0xff] %vm2203_vm3, %v2908_v10 }
 0x43f   : > { %v2742_v20 = vpop.permute.xlu0 %2741 }
 0x440   : > { %v2964_v61 = vpop.permute.xlu1 %2963  ;;  %2761 = vst.msk [vmem:[#allocation8 + $0x10] sm:$0xff] %vm2032_vm0, %v2742_v20 }
 0x441   : > { %2984 = vst.msk [vmem:[#allocation8] sm:$0xff] %vm2260_vm4, %v2964_v61 }
 0x444   : > { %v2798_v0 = vpop.permute.xlu1 %2797 }
 0x445   : > { %2817 = vst.msk [vmem:[#allocation8 + $0x10] sm:$0xff] %vm2089_vm1, %v2798_v0 }
 0x454   : > { %v3021_v62 = vpop.permute.xlu0 %3020 }
 0x455   : > { %3041 = vst.msk [vmem:[#allocation8] sm:$0xff] %vm2318_vm5, %v3021_v62  ;;  %v3077_v1 = vpop.permute.xlu1 %3076 }
 0x456   : > { %3097 = vst.msk [vmem:[#allocation8] sm:$0xff] %vm2375_vm6, %v3077_v1 }
 0x458   : > { %v2854_v63 = vpop.permute.xlu0 %2853 }
 0x459   : > { %2873 = vst.msk [vmem:[#allocation8 + $0x10] sm:$0xff] %vm2146_vm2, %v2854_v63  ;;  %v2910_v39 = vpop.permute.xlu1 %2909 }
 0x45a   : > { %2929 = vst.msk [vmem:[#allocation8 + $0x10] sm:$0xff] %vm2203_vm3, %v2910_v39 }
 0x45c   : > { %v2966_v12 = vpop.permute.xlu0 %2965 }
 0x45d   : > { %2985 = vst.msk [vmem:[#allocation8 + $0x10] sm:$0xff] %vm2260_vm4, %v2966_v12  ;;  %v2744_v51 = vpop.permute.xlu1 %2743  ;;  %v3132_v3 = vld [vmem:[#allocation8] sm:$0xff] }
 0x45e   : > { %2762 = vst.msk [vmem:[#allocation8 + $0x20] sm:$0xff] %vm2032_vm0, %v2744_v51  ;;  %3279 = vmatmul.mubr.bf16.vlgmr.msra.gmra.mrb[20].mxu0 %v3132_v3 }
 0x45f   : > { %3513 = vmatprep.mubr.msk.bf16.mxu0 %vm1773_vm13, %v3135_v9 }
 0x460   : > { %v2800_v4 = vpop.permute.xlu0 %2799 }
 0x461   : > { %2818 = vst.msk [vmem:[#allocation8 + $0x20] sm:$0xff] %vm2089_vm1, %v2800_v4 }
 0x462   : > { %v3023_v19 = vpop.permute.xlu1 %3022 }
 0x463   : > { %3042 = vst.msk [vmem:[#allocation8 + $0x10] sm:$0xff] %vm2318_vm5, %v3023_v19 }
 0x464   : > { %v3079_v6 = vpop.permute.xlu0 %3078 }
 0x465   : > { %3098 = vst.msk [vmem:[#allocation8 + $0x10] sm:$0xff] %vm2375_vm6, %v3079_v6 }
 0x466   : > { %v2856_v8 = vpop.permute.xlu1 %2855 }
 0x467   : > { %2874 = vst.msk [vmem:[#allocation8 + $0x20] sm:$0xff] %vm2146_vm2, %v2856_v8 }
 0x468   : > { %v2912_v11 = vpop.permute.xlu0 %2911 }
 0x469   : > { %2930 = vst.msk [vmem:[#allocation8 + $0x20] sm:$0xff] %vm2203_vm3, %v2912_v11 }
 0x46a   : > { %v2968_v60 = vpop.permute.xlu1 %2967 }
 0x46b   : > { %2986 = vst.msk [vmem:[#allocation8 + $0x20] sm:$0xff] %vm2260_vm4, %v2968_v60 }
 0x46c   : > { %v2746_v15 = vpop.permute.xlu0 %2745  ;;  %v3134_v52 = vld [vmem:[#allocation8 + $0x10] sm:$0xff] }
 0x46d   : > { %2763 = vst.msk [vmem:[#allocation8 + $0x30] sm:$0xff] %vm2032_vm0, %v2746_v15  ;;  %3287 = vmatmul.mubr.bf16.gmra.mrb[24].mxu0 %v3134_v52 }
 0x46e   : > { %3514 = vmatprep.mubr.msk.bf16.mxu0 %vm1773_vm13, %v3137_v7  ;;  %v2802_v22 = vpop.permute.xlu1 %2801 }
 0x46f   : > { %2819 = vst.msk [vmem:[#allocation8 + $0x30] sm:$0xff] %vm2089_vm1, %v2802_v22 }
 0x470   : > { %v3025_v36 = vpop.permute.xlu0 %3024 }
 0x471   : > { %3043 = vst.msk [vmem:[#allocation8 + $0x20] sm:$0xff] %vm2318_vm5, %v3025_v36 }
 0x472   : > { %v3081_v59 = vpop.permute.xlu1 %3080 }
 0x473   : > { %3099 = vst.msk [vmem:[#allocation8 + $0x20] sm:$0xff] %vm2375_vm6, %v3081_v59 }
 0x474   : > { %v2858_v56 = vpop.permute.xlu0 %2857 }
 0x475   : > { %2875 = vst.msk [vmem:[#allocation8 + $0x30] sm:$0xff] %vm2146_vm2, %v2858_v56 }
 0x476   : > { %v2914_v5 = vpop.permute.xlu1 %2913 }
 0x477   : > { %2931 = vst.msk [vmem:[#allocation8 + $0x30] sm:$0xff] %vm2203_vm3, %v2914_v5 }
 0x478   : > { %v2970_v49 = vpop.permute.xlu0 %2969 }
 0x479   : > { %2987 = vst.msk [vmem:[#allocation8 + $0x30] sm:$0xff] %vm2260_vm4, %v2970_v49 }
 0x47a   : > { %v2748_v16 = vpop.permute.xlu1 %2747  ;;  %v3136_v18 = vld [vmem:[#allocation8 + $0x20] sm:$0xff] }
 0x47b   : > { %2764 = vst.msk [vmem:[#allocation8 + $0x40] sm:$0xff] %vm2032_vm0, %v2748_v16  ;;  %3293 = vmatmul.mubr.bf16.gmra.mrb[28].mxu0 %v3136_v18 }
 0x47c   : > { %v2804_v13 = vpop.permute.xlu0 %2803  ;;  %3515 = vmatprep.mubr.msk.bf16.mxu0 %vm1773_vm13, %v3139_v28 }
 0x47d   : > { %2820 = vst.msk [vmem:[#allocation8 + $0x40] sm:$0xff] %vm2089_vm1, %v2804_v13 }
 0x47e   : > { %v3027_v31 = vpop.permute.xlu1 %3026 }
 0x47f   : > { %3044 = vst.msk [vmem:[#allocation8 + $0x30] sm:$0xff] %vm2318_vm5, %v3027_v31 }
 0x480   : > { %v3083_v48 = vpop.permute.xlu0 %3082 }
 0x481   : > { %3100 = vst.msk [vmem:[#allocation8 + $0x30] sm:$0xff] %vm2375_vm6, %v3083_v48 }
 0x482   : > { %v2860_v33 = vpop.permute.xlu1 %2859 }
 0x483   : > { %2876 = vst.msk [vmem:[#allocation8 + $0x40] sm:$0xff] %vm2146_vm2, %v2860_v33 }
 0x484   : > { %v2916_v35 = vpop.permute.xlu0 %2915 }
 0x485   : > { %2932 = vst.msk [vmem:[#allocation8 + $0x40] sm:$0xff] %vm2203_vm3, %v2916_v35 }
 0x486   : > { %v2972_v17 = vpop.permute.xlu1 %2971 }
 0x487   : > { %2988 = vst.msk [vmem:[#allocation8 + $0x40] sm:$0xff] %vm2260_vm4, %v2972_v17 }
 0x488   : > { %v2750_v21 = vpop.permute.xlu0 %2749  ;;  %v3138_v37 = vld [vmem:[#allocation8 + $0x30] sm:$0xff] }
 0x489   : > { %2765 = vst.msk [vmem:[#allocation8 + $0x50] sm:$0xff] %vm2032_vm0, %v2750_v21  ;;  %3301 = vmatmul.mubr.bf16.gmra.mrb[32].mxu0 %v3138_v37 }
 0x48a   : > { %3516 = vmatprep.mubr.msk.bf16.mxu0 %vm1773_vm13, %v3141_v41  ;;  %v2806_v42 = vpop.permute.xlu1 %2805 }
 0x48b   : > { %2821 = vst.msk [vmem:[#allocation8 + $0x50] sm:$0xff] %vm2089_vm1, %v2806_v42 }
 0x48c   : > { %v3029_v43 = vpop.permute.xlu0 %3028 }
 0x48d   : > { %3045 = vst.msk [vmem:[#allocation8 + $0x40] sm:$0xff] %vm2318_vm5, %v3029_v43 }
 0x48e   : > { %v3085_v30 = vpop.permute.xlu1 %3084 }
 0x48f   : > { %3101 = vst.msk [vmem:[#allocation8 + $0x40] sm:$0xff] %vm2375_vm6, %v3085_v30 }
 0x490   : > { %v2862_v29 = vpop.permute.xlu0 %2861 }
 0x491   : > { %2877 = vst.msk [vmem:[#allocation8 + $0x50] sm:$0xff] %vm2146_vm2, %v2862_v29 }
 0x492   : > { %v2918_v24 = vpop.permute.xlu1 %2917 }
 0x493   : > { %2933 = vst.msk [vmem:[#allocation8 + $0x50] sm:$0xff] %vm2203_vm3, %v2918_v24 }
 0x494   : > { %v2974_v44 = vpop.permute.xlu0 %2973 }
 0x495   : > { %2989 = vst.msk [vmem:[#allocation8 + $0x50] sm:$0xff] %vm2260_vm4, %v2974_v44 }
 0x496   : > { %v2752_v23 = vpop.permute.xlu1 %2751  ;;  %v3140_v53 = vld [vmem:[#allocation8 + $0x40] sm:$0xff] }
 0x497   : > { %2766 = vst.msk [vmem:[#allocation8 + $0x60] sm:$0xff] %vm2032_vm0, %v2752_v23  ;;  %3307 = vmatmul.mubr.bf16.gmra.mrb[36].mxu0 %v3140_v53 }
 0x498   : > { %v2808_v25 = vpop.permute.xlu0 %2807  ;;  %3517 = vmatprep.mubr.msk.bf16.mxu0 %vm1773_vm13, %v3143_v34 }
 0x499   : > { %2822 = vst.msk [vmem:[#allocation8 + $0x60] sm:$0xff] %vm2089_vm1, %v2808_v25 }
 0x49a   : > { %v3031_v46 = vpop.permute.xlu1 %3030 }
 0x49b   : > { %3046 = vst.msk [vmem:[#allocation8 + $0x50] sm:$0xff] %vm2318_vm5, %v3031_v46 }
 0x49c   : > { %v3087_v47 = vpop.permute.xlu0 %3086 }
 0x49d   : > { %3102 = vst.msk [vmem:[#allocation8 + $0x50] sm:$0xff] %vm2375_vm6, %v3087_v47 }
 0x49e   : > { %v2864_v38 = vpop.permute.xlu1 %2863 }
 0x49f   : > { %2878 = vst.msk [vmem:[#allocation8 + $0x60] sm:$0xff] %vm2146_vm2, %v2864_v38 }
 0x4a0   : > { %v2920_v27 = vpop.permute.xlu0 %2919 }
 0x4a1   : > { %2934 = vst.msk [vmem:[#allocation8 + $0x60] sm:$0xff] %vm2203_vm3, %v2920_v27 }
 0x4a2   : > { %v2976_v40 = vpop.permute.xlu1 %2975 }
 0x4a3   : > { %2990 = vst.msk [vmem:[#allocation8 + $0x60] sm:$0xff] %vm2260_vm4, %v2976_v40 }
 0x4a4   : > { %v3142_v50 = vld [vmem:[#allocation8 + $0x50] sm:$0xff]  ;;  %v3033_v58 = vpop.permute.xlu0 %3032 }
 0x4a5   : > { %3315 = vmatmul.mubr.bf16.gmra.mrb[40].mxu0 %v3142_v50  ;;  %3047 = vst.msk [vmem:[#allocation8 + $0x60] sm:$0xff] %vm2318_vm5, %v3033_v58 }
 0x4a6   : > { %3518 = vmatprep.mubr.msk.bf16.mxu0 %vm1773_vm13, %v3145_v32  ;;  %v3089_v45 = vpop.permute.xlu1 %3088 }
 0x4a7   : > { %3103 = vst.msk [vmem:[#allocation8 + $0x60] sm:$0xff] %vm2375_vm6, %v3089_v45 }
 0x4ae   : > { %v3144_v54 = vld [vmem:[#allocation8 + $0x60] sm:$0xff] }
 0x4af   : > { %3321 = vmatmul.mubr.bf16.gmra.mrb[44].mxu0 %v3144_v54 }
 0x531   : > { %v3280_v57 = vpop.f32.mrb[20].mxu0 }
 0x532   : > { %v3281_v26 = vadd.f32 %v5174_v55, %v3280_v57  ;;  %v3282_v2 = vpop.f32.mrb[21].mxu0 }
 0x533   : > { %v3283_v10 = vpop.f32.mrb[22].mxu0 }
 0x534   : > { %v3329_v14 = vmax.f32 %v3281_v26, 0.0  ;;  %v3285_v20 = vpop.f32.mrb[23].mxu0 }
 0x536   : > { %3338 = vst.msk [vmem:[#allocation9] sm:$0xff] %vm3337_vm8, %v3329_v14 }
 0x53d   : > { %v3349_v61 = vld [vmem:[#allocation9] sm:$0x1]  ;;  %v3358_v0 = vld [vmem:[#allocation9 + $0x2] sm:$0x1]  ;;  %v3366_v62 = vld [vmem:[#allocation9 + $0x4] sm:$0x1] }
 0x53e   : > { %3354 = vst.msk [vmem:[%s5181_s17] sm:$0x1] %vm3353_vm9, %v3349_v61  ;;  %3362 = vst.msk [vmem:[%s5181_s17 + $0x1] sm:$0x1] %vm3353_vm9, %v3358_v0  ;;  %v3374_v1 = vld [vmem:[#allocation9 + $0x6] sm:$0x1] }
 0x53f   : > { %3370 = vst.msk [vmem:[%s5181_s17 + $0x2] sm:$0x1] %vm3353_vm9, %v3366_v62  ;;  %3378 = vst.msk [vmem:[%s5181_s17 + $0x3] sm:$0x1] %vm3353_vm9, %v3374_v1 }
 0x540   : > { %v3288_v63 = vpop.f32.mrb[24].mxu0 }
 0x541   : > { %v3289_v39 = vpop.f32.mrb[25].mxu0 }
 0x542   : > { %v3290_v12 = vpop.f32.mrb[26].mxu0 }
 0x543   : > { %v3291_v51 = vpop.f32.mrb[27].mxu0 }
 0x54e   : > { %v3294_v3 = vpop.f32.mrb[28].mxu0 }
 0x54f   : > { %v3295_v9 = vadd.f32 %v5174_v55, %v3294_v3  ;;  %v3296_v4 = vpop.f32.mrb[29].mxu0 }
 0x550   : > { %v3297_v19 = vpop.f32.mrb[30].mxu0 }
 0x551   : > { %v3331_v6 = vmax.f32 %v3295_v9, 0.0  ;;  %v3299_v8 = vpop.f32.mrb[31].mxu0 }
 0x553   : > { %3341 = vst.msk [vmem:[#allocation9 + $0x10] sm:$0xff] %vm3337_vm8, %v3331_v6 }
 0x55a   : > { %v3350_v11 = vld [vmem:[#allocation9 + $0x10] sm:$0x1]  ;;  %v3359_v60 = vld [vmem:[#allocation9 + $0x12] sm:$0x1]  ;;  %v3367_v15 = vld [vmem:[#allocation9 + $0x14] sm:$0x1] }
 0x55b   : > { %3355 = vst.msk [vmem:[%s5181_s17 + $0x4] sm:$0x1] %vm3353_vm9, %v3350_v11  ;;  %3363 = vst.msk [vmem:[%s5181_s17 + $0x5] sm:$0x1] %vm3353_vm9, %v3359_v60  ;;  %v3375_v52 = vld [vmem:[#allocation9 + $0x16] sm:$0x1] }
 0x55c   : > { %3371 = vst.msk [vmem:[%s5181_s17 + $0x6] sm:$0x1] %vm3353_vm9, %v3367_v15  ;;  %v3302_v7 = vpop.f32.mrb[32].mxu0  ;;  %3379 = vst.msk [vmem:[%s5181_s17 + $0x7] sm:$0x1] %vm3353_vm9, %v3375_v52 }
 0x55d   : > { %v3303_v22 = vpop.f32.mrb[33].mxu0 }
 0x55e   : > { %v3304_v36 = vpop.f32.mrb[34].mxu0 }
 0x55f   : > { %v3305_v59 = vpop.f32.mrb[35].mxu0 }
 0x56a   : > { %v3308_v56 = vpop.f32.mrb[36].mxu0 }
 0x56b   : > { %v3309_v5 = vadd.f32 %v5174_v55, %v3308_v56  ;;  %v3310_v49 = vpop.f32.mrb[37].mxu0 }
 0x56c   : > { %v3311_v16 = vpop.f32.mrb[38].mxu0 }
 0x56d   : > { %v3333_v18 = vmax.f32 %v3309_v5, 0.0  ;;  %v3313_v13 = vpop.f32.mrb[39].mxu0 }
 0x56f   : > { %3344 = vst.msk [vmem:[#allocation9 + $0x20] sm:$0xff] %vm3337_vm8, %v3333_v18 }
 0x576   : > { %v3351_v28 = vld [vmem:[#allocation9 + $0x20] sm:$0x1]  ;;  %v3360_v31 = vld [vmem:[#allocation9 + $0x22] sm:$0x1]  ;;  %v3368_v48 = vld [vmem:[#allocation9 + $0x24] sm:$0x1] }
 0x577   : > { %3356 = vst.msk [vmem:[%s5181_s17 + $0x8] sm:$0x1] %vm3353_vm9, %v3351_v28  ;;  %3364 = vst.msk [vmem:[%s5181_s17 + $0x9] sm:$0x1] %vm3353_vm9, %v3360_v31  ;;  %v3376_v33 = vld [vmem:[#allocation9 + $0x26] sm:$0x1] }
 0x578   : > { %3372 = vst.msk [vmem:[%s5181_s17 + $0xa] sm:$0x1] %vm3353_vm9, %v3368_v48  ;;  %v3316_v35 = vpop.f32.mrb[40].mxu0  ;;  %3380 = vst.msk [vmem:[%s5181_s17 + $0xb] sm:$0x1] %vm3353_vm9, %v3376_v33 }
 0x579   : > { %v3317_v17 = vpop.f32.mrb[41].mxu0 }
 0x57a   : > { %v3318_v21 = vpop.f32.mrb[42].mxu0 }
 0x57b   : > { %v3319_v37 = vpop.f32.mrb[43].mxu0 }
 0x582   : > { %v3322_v41 = vpop.f32.mrb[44].mxu0 }
 0x583   : > { %v3323_v42 = vadd.f32 %v5174_v55, %v3322_v41  ;;  %v3324_v43 = vpop.f32.mrb[45].mxu0 }
 0x584   : > { %v3325_v30 = vpop.f32.mrb[46].mxu0 }
 0x585   : > { %v3335_v29 = vmax.f32 %v3323_v42, 0.0  ;;  %v3327_v24 = vpop.f32.mrb[47].mxu0 }
 0x587   : > { %3347 = vst.msk [vmem:[#allocation9 + $0x30] sm:$0xff] %vm3337_vm8, %v3335_v29 }
 0x58e   : > { %v3352_v44 = vld [vmem:[#allocation9 + $0x30] sm:$0x1]  ;;  %v3361_v23 = vld [vmem:[#allocation9 + $0x32] sm:$0x1]  ;;  %v3369_v53 = vld [vmem:[#allocation9 + $0x34] sm:$0x1] }
 0x58f   : > { %3357 = vst.msk [vmem:[%s5181_s17 + $0xc] sm:$0x1] %vm3353_vm9, %v3352_v44  ;;  %3365 = vst.msk [vmem:[%s5181_s17 + $0xd] sm:$0x1] %vm3353_vm9, %v3361_v23  ;;  %v3377_v25 = vld [vmem:[#allocation9 + $0x36] sm:$0x1] }
 0x590   : > { %3373 = vst.msk [vmem:[%s5181_s17 + $0xe] sm:$0x1] %vm3353_vm9, %v3369_v53  ;;  %3381 = vst.msk [vmem:[%s5181_s17 + $0xf] sm:$0x1] %vm3353_vm9, %v3377_v25 }
 0x591   : > { %3679 = shalt.err (!%p3676_p3)
}
 0x592   : > { %s3680_s20 = scalar_lea.hbm %s5218_s15, 256  ;;  %s3684_s19 = scalar_lea.hbm %s5283_s7, 512 }
 0x593   : > { %p3681_p4 = scmp.ne.s32.totalorder %s5218_s15, %s3680_s20  ;;  %p3685_p9 = scmp.lt.u32.totalorder %s5218_s15, %s5283_s7 }
 0x594   : > { %p3686_p10 = scmp.lt.u32.totalorder %s3684_s19, %s3680_s20  ;;  %p3688_p12 = scmp.lt.u32.totalorder %s3680_s20, %s5218_s15 }
 0x595   : > { %p3682_p7 = pnand %p3681_p4, %p3824_p5 }
 0x596   : > { %p3687_p11 = por %p3686_p10, %p3685_p9 }
 0x597   : > { %p3683_p8 = pneg %p3682_p7 }
 0x598   : > { %p3689_p13 = por %p3688_p12, %p3687_p11 }
 0x59a   : > { %p3690_p0 = pnand %p3689_p13, %p3683_p8 }
 0x59c   : > { %3693 = shalt.err (!%p3690_p0)
}
 0x59d   : > { %3591 = dma.vmem_to_hbm [thread:$0]  (%p3824_p5), %s5220_s29, 256, %s5218_s15, %s5232_s28, %s3740_s22, %s3740_s22, %s3731_s18  }
 0x59e PF: > { %p3597_p1 = scmp.ge.s32.totalorder %s3728_s27, 2  ;;  %s3411_s16 = sand.u32 1, %s3716_s24  }
 0x59f   : > { %s3412_s9 = scalar_lea.sflag [#allocation11], %s3411_s16 }
 0x5a0   : > { %p3594_p2 = pnand %p3597_p1, %p3828_p6 }
 0x5a2   : > { %3711 = dma.done.wait (!%p3594_p2), %s3412_s9, 256  }
 0x5a3   : > { %3713 = vsyncadd (!%p3594_p2), %s3412_s9, 4294967040  ;;  %p17_p3 = scmp.ge.s32.totalorder %s3811_s30, 4   ;;  %s5286_s24 = smov %s3720_s25 }
 0x5a4   : > { %s5287_s25 = smov %s3724_s26  ;;  %s5288_s26 = smov %s3822_s10 }
 0x5a5   : > { %s5289_s27 = smov %s3811_s30  ;;  %19 = sbr.rel (!%p17_p3) target bundleno = 3 (0x3), region = 101 }
 0x5ac   :  { %3417 = vsyncpa [#allocation11], 1 }
 0x5ad   :  { %3419 = vsyncpa [#allocation11 + $0x1], 1 }

</bundles_post_ra>
